<compile_context>
chip_gen: v6e
topology: v6e:2x2x1
jax: 0.10.0
libtpu: 0.0.40
codegen_flags: <defaults>
</compile_context>

<pallas_src>
import functools

import jax
import jax.numpy as jnp
from jax.experimental import pallas as pl
from jax.experimental.pallas import tpu as pltpu

NEG_SLOPE = -2.579492

C_IN, C_OUT = 8, 10
KH, KW = 4, 7
SH, SW = 2, 2
PH, PW = 3, 0
K = KH * KW * C_IN  # 224


def _conv_leaky_kernel(x_ref, w_ref, b_ref, o_ref, *, oh, ow):
    """Fused im2col + matmul + leaky-relu for one image.

    x_ref: (1, 2, 2, H2, C_IN, W2)  stride-2 phase-decomposed padded image
    w_ref: (C_OUT, K)               K ordered as (kh, kw, ci)
    b_ref: (C_OUT, 1)
    o_ref: (1, C_OUT, OH*OW)        NCHW-flattened output block (lane-dense)
    """
    wm = w_ref[...]                      # (C_OUT, K)  stays resident
    bv = b_ref[...]                      # (C_OUT, 1)
    # Static unroll over output rows (OH is small here; for very large OH this
    # would become a second grid axis).
    for r in range(oh):
        taps = []
        for kh in range(KH):
            ph_h, qh = kh % SH, kh // SH
            for kw in range(KW):
                ph_w, qw = kw % SW, kw // SW
                # (C_IN, OW) contiguous static slice of the resident slab:
                # element [ci, c] == x_padded[ci, r*SH + kh, c*SW + kw]
                taps.append(x_ref[0, ph_h, ph_w, r + qh, :, qw:qw + ow])
        patch = jnp.concatenate(taps, axis=0)                          # (K, OW)
        acc = jnp.dot(wm, patch, preferred_element_type=jnp.float32)   # (C_OUT, OW)
        acc = acc + bv
        y = jnp.where(acc > 0, acc, acc * NEG_SLOPE)
        o_ref[0, :, r * ow:(r + 1) * ow] = y


def conv_leaky_pallas(x_nchw, weight, bias):
    """x_nchw: (N, 8, H, W) f32; weight: (10, 8, 4, 7); bias: (10,)."""
    n, c, h, w = x_nchw.shape
    assert c == C_IN and SH == 2 and SW == 2
    oh = (h + 2 * PH - KH) // SH + 1
    ow = (w + 2 * PW - KW) // SW + 1

    # Phase-slab extents: h2 = r + kh//2 in [0, oh + 1), w2 = c + kw//2 in [0, ow + 3).
    h2 = oh + (KH - 1) // SH
    w2 = ow + (KW - 1) // SW

    # Pad spatially to exactly (2*h2, 2*w2) so the stride-2 decomposition is a reshape.
    pad_bottom = 2 * h2 - h - PH
    pad_right = 2 * w2 - w - PW
    assert pad_bottom >= 0 and pad_right >= 0
    xp = jnp.pad(x_nchw, ((0, 0), (0, 0), (PH, pad_bottom), (PW, pad_right)))

    # (N, C, 2*H2, 2*W2) -> (N, phase_h, phase_w, H2, C_IN, W2): pure rearrangement (1x data).
    xph = xp.reshape(n, C_IN, h2, SH, w2, SW)
    xph = jnp.transpose(xph, (0, 3, 5, 2, 1, 4))

    # (C_OUT, C_IN, KH, KW) -> (C_OUT, KH, KW, C_IN) -> (C_OUT, K); matches tap order.
    w_mat = jnp.transpose(weight, (0, 2, 3, 1)).reshape(C_OUT, K)
    b_mat = bias.reshape(C_OUT, 1)

    kern = functools.partial(_conv_leaky_kernel, oh=oh, ow=ow)
    out_flat = pl.pallas_call(
        kern,
        out_shape=jax.ShapeDtypeStruct((n, C_OUT, oh * ow), jnp.float32),
        grid=(n,),
        in_specs=[
            pl.BlockSpec((1, SH, SW, h2, C_IN, w2), lambda i: (i, 0, 0, 0, 0, 0)),
            pl.BlockSpec((C_OUT, K), lambda i: (0, 0)),
            pl.BlockSpec((C_OUT, 1), lambda i: (0, 0)),
        ],
        out_specs=pl.BlockSpec((1, C_OUT, oh * ow), lambda i: (i, 0, 0)),
        compiler_params=pltpu.CompilerParams(
            dimension_semantics=("parallel",),
            vmem_limit_bytes=32 * 1024 * 1024),
    )(xph, w_mat, b_mat)

    # (N, C_OUT, OH*OW) is already NCHW order -> free reshape, no transpose.
    return out_flat.reshape(n, C_OUT, oh, ow)


def _reference(x_nchw, weight, bias):
    y = jax.lax.conv_general_dilated(
        x_nchw, weight, window_strides=(SH, SW),
        padding=((PH, PH), (PW, PW)),
        dimension_numbers=("NCHW", "OIHW", "NCHW"))
    y = y + bias.reshape(1, C_OUT, 1, 1)
    return jnp.where(y > 0, y, y * NEG_SLOPE)


if __name__ == "__main__":
    key = jax.random.PRNGKey(0)
    kx, kw_, kb = jax.random.split(key, 3)

    # Deterministic parameter init (PyTorch-style uniform bounds).
    fan_in = C_IN * KH * KW
    bound = 1.0 / (fan_in ** 0.5)
    weight = jax.random.uniform(kw_, (C_OUT, C_IN, KH, KW), jnp.float32, -bound, bound)
    bias = jax.random.uniform(kb, (C_OUT,), jnp.float32, -bound, bound)

    # Small input: batch=2, channels=8 (fixed by the conv), 16x16 spatial.
    x = jax.random.normal(kx, (2, C_IN, 16, 16), jnp.float32)

    fn = jax.jit(conv_leaky_pallas)
    out = jax.block_until_ready(fn(x, weight, bias))

    ref = _reference(x, weight, bias)
    assert out.shape == ref.shape, (out.shape, ref.shape)
    assert jnp.allclose(out, ref, atol=1e-4, rtol=1e-4), "mismatch vs reference"

    print("KERNEL_OK")
</pallas_src>

<mosaic_0001>
module attributes {stable_mosaic.version = 11 : i64} {
  func.func @_conv_leaky_kernel(%arg0: i32, %arg1: memref<1x2x2x11x8x8xf32, #tpu.memory_space<vmem>>, %arg2: memref<10x224xf32, #tpu.memory_space<vmem>>, %arg3: memref<10x1xf32, #tpu.memory_space<vmem>>, %arg4: memref<1x10x50xf32, #tpu.memory_space<vmem>>) attributes {dimension_semantics = [#tpu.dimension_semantics<parallel>], iteration_bounds = array<i64: 2>, scalar_prefetch = 0 : i64, scratch_operands = 0 : i64, tpu.core_type = #tpu.core_type<tc>, window_params = [{transform_indices = @transform_0, window_bounds = array<i64: 1, 2, 2, 11, 8, 8>}, {pipeline_mode = #tpu.pipeline_mode<synchronous>, transform_indices = @transform_1, window_bounds = array<i64: 10, 224>}, {pipeline_mode = #tpu.pipeline_mode<synchronous>, transform_indices = @transform_2, window_bounds = array<i64: 10, 1>}, {transform_indices = @transform_3, window_bounds = array<i64: 1, 10, 50>}]} {
    %c0 = arith.constant 0 : index
    %c0_0 = arith.constant 0 : index
    %0 = vector.load %arg2[%c0, %c0_0] : memref<10x224xf32, #tpu.memory_space<vmem>>, vector<10x224xf32>
    %c0_1 = arith.constant 0 : index
    %c0_2 = arith.constant 0 : index
    %1 = vector.load %arg3[%c0_1, %c0_2] : memref<10x1xf32, #tpu.memory_space<vmem>>, vector<10x1xf32>
    %c0_3 = arith.constant 0 : index
    %c0_4 = arith.constant 0 : index
    %c0_5 = arith.constant 0 : index
    %c0_6 = arith.constant 0 : index
    %c0_7 = arith.constant 0 : index
    %c0_8 = arith.constant 0 : index
    %2 = vector.load %arg1[%c0_3, %c0_4, %c0_5, %c0_6, %c0_7, %c0_8] : memref<1x2x2x11x8x8xf32, #tpu.memory_space<vmem>>, vector<1x1x1x1x8x5xf32>
    %3 = vector.shape_cast %2 : vector<1x1x1x1x8x5xf32> to vector<8x5xf32>
    %c0_9 = arith.constant 0 : index
    %c0_10 = arith.constant 0 : index
    %c1 = arith.constant 1 : index
    %c0_11 = arith.constant 0 : index
    %c0_12 = arith.constant 0 : index
    %c0_13 = arith.constant 0 : index
    %4 = vector.load %arg1[%c0_9, %c0_10, %c1, %c0_11, %c0_12, %c0_13] : memref<1x2x2x11x8x8xf32, #tpu.memory_space<vmem>>, vector<1x1x1x1x8x5xf32>
    %5 = vector.shape_cast %4 : vector<1x1x1x1x8x5xf32> to vector<8x5xf32>
    %c0_14 = arith.constant 0 : index
    %c0_15 = arith.constant 0 : index
    %c0_16 = arith.constant 0 : index
    %c0_17 = arith.constant 0 : index
    %c0_18 = arith.constant 0 : index
    %c1_19 = arith.constant 1 : index
    %6 = vector.load %arg1[%c0_14, %c0_15, %c0_16, %c0_17, %c0_18, %c1_19] : memref<1x2x2x11x8x8xf32, #tpu.memory_space<vmem>>, vector<1x1x1x1x8x5xf32>
    %7 = vector.shape_cast %6 : vector<1x1x1x1x8x5xf32> to vector<8x5xf32>
    %c0_20 = arith.constant 0 : index
    %c0_21 = arith.constant 0 : index
    %c1_22 = arith.constant 1 : index
    %c0_23 = arith.constant 0 : index
    %c0_24 = arith.constant 0 : index
    %c1_25 = arith.constant 1 : index
    %8 = vector.load %arg1[%c0_20, %c0_21, %c1_22, %c0_23, %c0_24, %c1_25] : memref<1x2x2x11x8x8xf32, #tpu.memory_space<vmem>>, vector<1x1x1x1x8x5xf32>
    %9 = vector.shape_cast %8 : vector<1x1x1x1x8x5xf32> to vector<8x5xf32>
    %c0_26 = arith.constant 0 : index
    %c0_27 = arith.constant 0 : index
    %c0_28 = arith.constant 0 : index
    %c0_29 = arith.constant 0 : index
    %c0_30 = arith.constant 0 : index
    %c2 = arith.constant 2 : index
    %10 = vector.load %arg1[%c0_26, %c0_27, %c0_28, %c0_29, %c0_30, %c2] : memref<1x2x2x11x8x8xf32, #tpu.memory_space<vmem>>, vector<1x1x1x1x8x5xf32>
    %11 = vector.shape_cast %10 : vector<1x1x1x1x8x5xf32> to vector<8x5xf32>
    %c0_31 = arith.constant 0 : index
    %c0_32 = arith.constant 0 : index
    %c1_33 = arith.constant 1 : index
    %c0_34 = arith.constant 0 : index
    %c0_35 = arith.constant 0 : index
    %c2_36 = arith.constant 2 : index
    %12 = vector.load %arg1[%c0_31, %c0_32, %c1_33, %c0_34, %c0_35, %c2_36] : memref<1x2x2x11x8x8xf32, #tpu.memory_space<vmem>>, vector<1x1x1x1x8x5xf32>
    %13 = vector.shape_cast %12 : vector<1x1x1x1x8x5xf32> to vector<8x5xf32>
    %c0_37 = arith.constant 0 : index
    %c0_38 = arith.constant 0 : index
    %c0_39 = arith.constant 0 : index
    %c0_40 = arith.constant 0 : index
    %c0_41 = arith.constant 0 : index
    %c3 = arith.constant 3 : index
    %14 = vector.load %arg1[%c0_37, %c0_38, %c0_39, %c0_40, %c0_41, %c3] : memref<1x2x2x11x8x8xf32, #tpu.memory_space<vmem>>, vector<1x1x1x1x8x5xf32>
    %15 = vector.shape_cast %14 : vector<1x1x1x1x8x5xf32> to vector<8x5xf32>
    %c0_42 = arith.constant 0 : index
    %c1_43 = arith.constant 1 : index
    %c0_44 = arith.constant 0 : index
    %c0_45 = arith.constant 0 : index
    %c0_46 = arith.constant 0 : index
    %c0_47 = arith.constant 0 : index
    %16 = vector.load %arg1[%c0_42, %c1_43, %c0_44, %c0_45, %c0_46, %c0_47] : memref<1x2x2x11x8x8xf32, #tpu.memory_space<vmem>>, vector<1x1x1x1x8x5xf32>
    %17 = vector.shape_cast %16 : vector<1x1x1x1x8x5xf32> to vector<8x5xf32>
    %c0_48 = arith.constant 0 : index
    %c1_49 = arith.constant 1 : index
    %c1_50 = arith.constant 1 : index
    %c0_51 = arith.constant 0 : index
    %c0_52 = arith.constant 0 : index
    %c0_53 = arith.constant 0 : index
    %18 = vector.load %arg1[%c0_48, %c1_49, %c1_50, %c0_51, %c0_52, %c0_53] : memref<1x2x2x11x8x8xf32, #tpu.memory_space<vmem>>, vector<1x1x1x1x8x5xf32>
    %19 = vector.shape_cast %18 : vector<1x1x1x1x8x5xf32> to vector<8x5xf32>
    %c0_54 = arith.constant 0 : index
    %c1_55 = arith.constant 1 : index
    %c0_56 = arith.constant 0 : index
    %c0_57 = arith.constant 0 : index
    %c0_58 = arith.constant 0 : index
    %c1_59 = arith.constant 1 : index
    %20 = vector.load %arg1[%c0_54, %c1_55, %c0_56, %c0_57, %c0_58, %c1_59] : memref<1x2x2x11x8x8xf32, #tpu.memory_space<vmem>>, vector<1x1x1x1x8x5xf32>
    %21 = vector.shape_cast %20 : vector<1x1x1x1x8x5xf32> to vector<8x5xf32>
    %c0_60 = arith.constant 0 : index
    %c1_61 = arith.constant 1 : index
    %c1_62 = arith.constant 1 : index
    %c0_63 = arith.constant 0 : index
    %c0_64 = arith.constant 0 : index
    %c1_65 = arith.constant 1 : index
    %22 = vector.load %arg1[%c0_60, %c1_61, %c1_62, %c0_63, %c0_64, %c1_65] : memref<1x2x2x11x8x8xf32, #tpu.memory_space<vmem>>, vector<1x1x1x1x8x5xf32>
    %23 = vector.shape_cast %22 : vector<1x1x1x1x8x5xf32> to vector<8x5xf32>
    %c0_66 = arith.constant 0 : index
    %c1_67 = arith.constant 1 : index
    %c0_68 = arith.constant 0 : index
    %c0_69 = arith.constant 0 : index
    %c0_70 = arith.constant 0 : index
    %c2_71 = arith.constant 2 : index
    %24 = vector.load %arg1[%c0_66, %c1_67, %c0_68, %c0_69, %c0_70, %c2_71] : memref<1x2x2x11x8x8xf32, #tpu.memory_space<vmem>>, vector<1x1x1x1x8x5xf32>
    %25 = vector.shape_cast %24 : vector<1x1x1x1x8x5xf32> to vector<8x5xf32>
    %c0_72 = arith.constant 0 : index
    %c1_73 = arith.constant 1 : index
    %c1_74 = arith.constant 1 : index
    %c0_75 = arith.constant 0 : index
    %c0_76 = arith.constant 0 : index
    %c2_77 = arith.constant 2 : index
    %26 = vector.load %arg1[%c0_72, %c1_73, %c1_74, %c0_75, %c0_76, %c2_77] : memref<1x2x2x11x8x8xf32, #tpu.memory_space<vmem>>, vector<1x1x1x1x8x5xf32>
    %27 = vector.shape_cast %26 : vector<1x1x1x1x8x5xf32> to vector<8x5xf32>
    %c0_78 = arith.constant 0 : index
    %c1_79 = arith.constant 1 : index
    %c0_80 = arith.constant 0 : index
    %c0_81 = arith.constant 0 : index
    %c0_82 = arith.constant 0 : index
    %c3_83 = arith.constant 3 : index
    %28 = vector.load %arg1[%c0_78, %c1_79, %c0_80, %c0_81, %c0_82, %c3_83] : memref<1x2x2x11x8x8xf32, #tpu.memory_space<vmem>>, vector<1x1x1x1x8x5xf32>
    %29 = vector.shape_cast %28 : vector<1x1x1x1x8x5xf32> to vector<8x5xf32>
    %c0_84 = arith.constant 0 : index
    %c0_85 = arith.constant 0 : index
    %c0_86 = arith.constant 0 : index
    %c1_87 = arith.constant 1 : index
    %c0_88 = arith.constant 0 : index
    %c0_89 = arith.constant 0 : index
    %30 = vector.load %arg1[%c0_84, %c0_85, %c0_86, %c1_87, %c0_88, %c0_89] : memref<1x2x2x11x8x8xf32, #tpu.memory_space<vmem>>, vector<1x1x1x1x8x5xf32>
    %31 = vector.shape_cast %30 : vector<1x1x1x1x8x5xf32> to vector<8x5xf32>
    %c0_90 = arith.constant 0 : index
    %c0_91 = arith.constant 0 : index
    %c1_92 = arith.constant 1 : index
    %c1_93 = arith.constant 1 : index
    %c0_94 = arith.constant 0 : index
    %c0_95 = arith.constant 0 : index
    %32 = vector.load %arg1[%c0_90, %c0_91, %c1_92, %c1_93, %c0_94, %c0_95] : memref<1x2x2x11x8x8xf32, #tpu.memory_space<vmem>>, vector<1x1x1x1x8x5xf32>
    %33 = vector.shape_cast %32 : vector<1x1x1x1x8x5xf32> to vector<8x5xf32>
    %c0_96 = arith.constant 0 : index
    %c0_97 = arith.constant 0 : index
    %c0_98 = arith.constant 0 : index
    %c1_99 = arith.constant 1 : index
    %c0_100 = arith.constant 0 : index
    %c1_101 = arith.constant 1 : index
    %34 = vector.load %arg1[%c0_96, %c0_97, %c0_98, %c1_99, %c0_100, %c1_101] : memref<1x2x2x11x8x8xf32, #tpu.memory_space<vmem>>, vector<1x1x1x1x8x5xf32>
    %35 = vector.shape_cast %34 : vector<1x1x1x1x8x5xf32> to vector<8x5xf32>
    %c0_102 = arith.constant 0 : index
    %c0_103 = arith.constant 0 : index
    %c1_104 = arith.constant 1 : index
    %c1_105 = arith.constant 1 : index
    %c0_106 = arith.constant 0 : index
    %c1_107 = arith.constant 1 : index
    %36 = vector.load %arg1[%c0_102, %c0_103, %c1_104, %c1_105, %c0_106, %c1_107] : memref<1x2x2x11x8x8xf32, #tpu.memory_space<vmem>>, vector<1x1x1x1x8x5xf32>
    %37 = vector.shape_cast %36 : vector<1x1x1x1x8x5xf32> to vector<8x5xf32>
    %c0_108 = arith.constant 0 : index
    %c0_109 = arith.constant 0 : index
    %c0_110 = arith.constant 0 : index
    %c1_111 = arith.constant 1 : index
    %c0_112 = arith.constant 0 : index
    %c2_113 = arith.constant 2 : index
    %38 = vector.load %arg1[%c0_108, %c0_109, %c0_110, %c1_111, %c0_112, %c2_113] : memref<1x2x2x11x8x8xf32, #tpu.memory_space<vmem>>, vector<1x1x1x1x8x5xf32>
    %39 = vector.shape_cast %38 : vector<1x1x1x1x8x5xf32> to vector<8x5xf32>
    %c0_114 = arith.constant 0 : index
    %c0_115 = arith.constant 0 : index
    %c1_116 = arith.constant 1 : index
    %c1_117 = arith.constant 1 : index
    %c0_118 = arith.constant 0 : index
    %c2_119 = arith.constant 2 : index
    %40 = vector.load %arg1[%c0_114, %c0_115, %c1_116, %c1_117, %c0_118, %c2_119] : memref<1x2x2x11x8x8xf32, #tpu.memory_space<vmem>>, vector<1x1x1x1x8x5xf32>
    %41 = vector.shape_cast %40 : vector<1x1x1x1x8x5xf32> to vector<8x5xf32>
    %c0_120 = arith.constant 0 : index
    %c0_121 = arith.constant 0 : index
    %c0_122 = arith.constant 0 : index
    %c1_123 = arith.constant 1 : index
    %c0_124 = arith.constant 0 : index
    %c3_125 = arith.constant 3 : index
    %42 = vector.load %arg1[%c0_120, %c0_121, %c0_122, %c1_123, %c0_124, %c3_125] : memref<1x2x2x11x8x8xf32, #tpu.memory_space<vmem>>, vector<1x1x1x1x8x5xf32>
    %43 = vector.shape_cast %42 : vector<1x1x1x1x8x5xf32> to vector<8x5xf32>
    %c0_126 = arith.constant 0 : index
    %c1_127 = arith.constant 1 : index
    %c0_128 = arith.constant 0 : index
    %c1_129 = arith.constant 1 : index
    %c0_130 = arith.constant 0 : index
    %c0_131 = arith.constant 0 : index
    %44 = vector.load %arg1[%c0_126, %c1_127, %c0_128, %c1_129, %c0_130, %c0_131] : memref<1x2x2x11x8x8xf32, #tpu.memory_space<vmem>>, vector<1x1x1x1x8x5xf32>
    %45 = vector.shape_cast %44 : vector<1x1x1x1x8x5xf32> to vector<8x5xf32>
    %c0_132 = arith.constant 0 : index
    %c1_133 = arith.constant 1 : index
    %c1_134 = arith.constant 1 : index
    %c1_135 = arith.constant 1 : index
    %c0_136 = arith.constant 0 : index
    %c0_137 = arith.constant 0 : index
    %46 = vector.load %arg1[%c0_132, %c1_133, %c1_134, %c1_135, %c0_136, %c0_137] : memref<1x2x2x11x8x8xf32, #tpu.memory_space<vmem>>, vector<1x1x1x1x8x5xf32>
    %47 = vector.shape_cast %46 : vector<1x1x1x1x8x5xf32> to vector<8x5xf32>
    %c0_138 = arith.constant 0 : index
    %c1_139 = arith.constant 1 : index
    %c0_140 = arith.constant 0 : index
    %c1_141 = arith.constant 1 : index
    %c0_142 = arith.constant 0 : index
    %c1_143 = arith.constant 1 : index
    %48 = vector.load %arg1[%c0_138, %c1_139, %c0_140, %c1_141, %c0_142, %c1_143] : memref<1x2x2x11x8x8xf32, #tpu.memory_space<vmem>>, vector<1x1x1x1x8x5xf32>
    %49 = vector.shape_cast %48 : vector<1x1x1x1x8x5xf32> to vector<8x5xf32>
    %c0_144 = arith.constant 0 : index
    %c1_145 = arith.constant 1 : index
    %c1_146 = arith.constant 1 : index
    %c1_147 = arith.constant 1 : index
    %c0_148 = arith.constant 0 : index
    %c1_149 = arith.constant 1 : index
    %50 = vector.load %arg1[%c0_144, %c1_145, %c1_146, %c1_147, %c0_148, %c1_149] : memref<1x2x2x11x8x8xf32, #tpu.memory_space<vmem>>, vector<1x1x1x1x8x5xf32>
    %51 = vector.shape_cast %50 : vector<1x1x1x1x8x5xf32> to vector<8x5xf32>
    %c0_150 = arith.constant 0 : index
    %c1_151 = arith.constant 1 : index
    %c0_152 = arith.constant 0 : index
    %c1_153 = arith.constant 1 : index
    %c0_154 = arith.constant 0 : index
    %c2_155 = arith.constant 2 : index
    %52 = vector.load %arg1[%c0_150, %c1_151, %c0_152, %c1_153, %c0_154, %c2_155] : memref<1x2x2x11x8x8xf32, #tpu.memory_space<vmem>>, vector<1x1x1x1x8x5xf32>
    %53 = vector.shape_cast %52 : vector<1x1x1x1x8x5xf32> to vector<8x5xf32>
    %c0_156 = arith.constant 0 : index
    %c1_157 = arith.constant 1 : index
    %c1_158 = arith.constant 1 : index
    %c1_159 = arith.constant 1 : index
    %c0_160 = arith.constant 0 : index
    %c2_161 = arith.constant 2 : index
    %54 = vector.load %arg1[%c0_156, %c1_157, %c1_158, %c1_159, %c0_160, %c2_161] : memref<1x2x2x11x8x8xf32, #tpu.memory_space<vmem>>, vector<1x1x1x1x8x5xf32>
    %55 = vector.shape_cast %54 : vector<1x1x1x1x8x5xf32> to vector<8x5xf32>
    %c0_162 = arith.constant 0 : index
    %c1_163 = arith.constant 1 : index
    %c0_164 = arith.constant 0 : index
    %c1_165 = arith.constant 1 : index
    %c0_166 = arith.constant 0 : index
    %c3_167 = arith.constant 3 : index
    %56 = vector.load %arg1[%c0_162, %c1_163, %c0_164, %c1_165, %c0_166, %c3_167] : memref<1x2x2x11x8x8xf32, #tpu.memory_space<vmem>>, vector<1x1x1x1x8x5xf32>
    %57 = vector.shape_cast %56 : vector<1x1x1x1x8x5xf32> to vector<8x5xf32>
    %58 = tpu.concatenate %3, %5, %7, %9, %11, %13, %15, %17, %19, %21, %23, %25, %27, %29, %31, %33 in 0 : vector<8x5xf32>, vector<8x5xf32>, vector<8x5xf32>, vector<8x5xf32>, vector<8x5xf32>, vector<8x5xf32>, vector<8x5xf32>, vector<8x5xf32>, vector<8x5xf32>, vector<8x5xf32>, vector<8x5xf32>, vector<8x5xf32>, vector<8x5xf32>, vector<8x5xf32>, vector<8x5xf32>, vector<8x5xf32> -> vector<128x5xf32>
    %59 = tpu.concatenate %35, %37, %39, %41, %43, %45, %47, %49, %51, %53, %55, %57 in 0 : vector<8x5xf32>, vector<8x5xf32>, vector<8x5xf32>, vector<8x5xf32>, vector<8x5xf32>, vector<8x5xf32>, vector<8x5xf32>, vector<8x5xf32>, vector<8x5xf32>, vector<8x5xf32>, vector<8x5xf32>, vector<8x5xf32> -> vector<96x5xf32>
    %60 = tpu.concatenate %58, %59 in 0 : vector<128x5xf32>, vector<96x5xf32> -> vector<224x5xf32>
    %cst = arith.constant dense<0.000000e+00> : vector<10x5xf32>
    %61 = tpu.matmul %0, %60, %cst {dimension_numbers = #tpu.dot_dimension_numbers<[1], [0], [0], [1], [0, 0, 1, 1], [], []>} : vector<10x224xf32>, vector<224x5xf32>, vector<10x5xf32> -> vector<10x5xf32>
    %62 = vector.broadcast %1 : vector<10x1xf32> to vector<10x5xf32>
    %63 = arith.addf %61, %62 : vector<10x5xf32>
    %cst_168 = arith.constant 0.000000e+00 : f32
    %64 = vector.broadcast %cst_168 : f32 to vector<10x5xf32>
    %65 = arith.cmpf ogt, %63, %64 : vector<10x5xf32>
    %cst_169 = arith.constant -2.57949209 : f32
    %66 = vector.broadcast %cst_169 : f32 to vector<10x5xf32>
    %67 = arith.mulf %63, %66 : vector<10x5xf32>
    %68 = arith.select %65, %63, %67 : vector<10x5xi1>, vector<10x5xf32>
    %c0_170 = arith.constant 0 : index
    %c0_171 = arith.constant 0 : index
    %c0_172 = arith.constant 0 : index
    %69 = vector.load %arg4[%c0_170, %c0_171, %c0_172] : memref<1x10x50xf32, #tpu.memory_space<vmem>>, vector<1x10x5xf32>
    %70 = vector.shape_cast %69 : vector<1x10x5xf32> to vector<10x5xf32>
    %71 = vector.shape_cast %68 : vector<10x5xf32> to vector<1x10x5xf32>
    tpu.vector_store %arg4[%c0_170, %c0_171, %c0_172], %71 {strides = array<i32>} : memref<1x10x50xf32, #tpu.memory_space<vmem>>, vector<1x10x5xf32>,
    %c0_173 = arith.constant 0 : index
    %c0_174 = arith.constant 0 : index
    %c0_175 = arith.constant 0 : index
    %c1_176 = arith.constant 1 : index
    %c0_177 = arith.constant 0 : index
    %c0_178 = arith.constant 0 : index
    %72 = vector.load %arg1[%c0_173, %c0_174, %c0_175, %c1_176, %c0_177, %c0_178] : memref<1x2x2x11x8x8xf32, #tpu.memory_space<vmem>>, vector<1x1x1x1x8x5xf32>
    %73 = vector.shape_cast %72 : vector<1x1x1x1x8x5xf32> to vector<8x5xf32>
    %c0_179 = arith.constant 0 : index
    %c0_180 = arith.constant 0 : index
    %c1_181 = arith.constant 1 : index
    %c1_182 = arith.constant 1 : index
    %c0_183 = arith.constant 0 : index
    %c0_184 = arith.constant 0 : index
    %74 = vector.load %arg1[%c0_179, %c0_180, %c1_181, %c1_182, %c0_183, %c0_184] : memref<1x2x2x11x8x8xf32, #tpu.memory_space<vmem>>, vector<1x1x1x1x8x5xf32>
    %75 = vector.shape_cast %74 : vector<1x1x1x1x8x5xf32> to vector<8x5xf32>
    %c0_185 = arith.constant 0 : index
    %c0_186 = arith.constant 0 : index
    %c0_187 = arith.constant 0 : index
    %c1_188 = arith.constant 1 : index
    %c0_189 = arith.constant 0 : index
    %c1_190 = arith.constant 1 : index
    %76 = vector.load %arg1[%c0_185, %c0_186, %c0_187, %c1_188, %c0_189, %c1_190] : memref<1x2x2x11x8x8xf32, #tpu.memory_space<vmem>>, vector<1x1x1x1x8x5xf32>
    %77 = vector.shape_cast %76 : vector<1x1x1x1x8x5xf32> to vector<8x5xf32>
    %c0_191 = arith.constant 0 : index
    %c0_192 = arith.constant 0 : index
    %c1_193 = arith.constant 1 : index
    %c1_194 = arith.constant 1 : index
    %c0_195 = arith.constant 0 : index
    %c1_196 = arith.constant 1 : index
    %78 = vector.load %arg1[%c0_191, %c0_192, %c1_193, %c1_194, %c0_195, %c1_196] : memref<1x2x2x11x8x8xf32, #tpu.memory_space<vmem>>, vector<1x1x1x1x8x5xf32>
    %79 = vector.shape_cast %78 : vector<1x1x1x1x8x5xf32> to vector<8x5xf32>
    %c0_197 = arith.constant 0 : index
    %c0_198 = arith.constant 0 : index
    %c0_199 = arith.constant 0 : index
    %c1_200 = arith.constant 1 : index
    %c0_201 = arith.constant 0 : index
    %c2_202 = arith.constant 2 : index
    %80 = vector.load %arg1[%c0_197, %c0_198, %c0_199, %c1_200, %c0_201, %c2_202] : memref<1x2x2x11x8x8xf32, #tpu.memory_space<vmem>>, vector<1x1x1x1x8x5xf32>
    %81 = vector.shape_cast %80 : vector<1x1x1x1x8x5xf32> to vector<8x5xf32>
    %c0_203 = arith.constant 0 : index
    %c0_204 = arith.constant 0 : index
    %c1_205 = arith.constant 1 : index
    %c1_206 = arith.constant 1 : index
    %c0_207 = arith.constant 0 : index
    %c2_208 = arith.constant 2 : index
    %82 = vector.load %arg1[%c0_203, %c0_204, %c1_205, %c1_206, %c0_207, %c2_208] : memref<1x2x2x11x8x8xf32, #tpu.memory_space<vmem>>, vector<1x1x1x1x8x5xf32>
    %83 = vector.shape_cast %82 : vector<1x1x1x1x8x5xf32> to vector<8x5xf32>
    %c0_209 = arith.constant 0 : index
    %c0_210 = arith.constant 0 : index
    %c0_211 = arith.constant 0 : index
    %c1_212 = arith.constant 1 : index
    %c0_213 = arith.constant 0 : index
    %c3_214 = arith.constant 3 : index
    %84 = vector.load %arg1[%c0_209, %c0_210, %c0_211, %c1_212, %c0_213, %c3_214] : memref<1x2x2x11x8x8xf32, #tpu.memory_space<vmem>>, vector<1x1x1x1x8x5xf32>
    %85 = vector.shape_cast %84 : vector<1x1x1x1x8x5xf32> to vector<8x5xf32>
    %c0_215 = arith.constant 0 : index
    %c1_216 = arith.constant 1 : index
    %c0_217 = arith.constant 0 : index
    %c1_218 = arith.constant 1 : index
    %c0_219 = arith.constant 0 : index
    %c0_220 = arith.constant 0 : index
    %86 = vector.load %arg1[%c0_215, %c1_216, %c0_217, %c1_218, %c0_219, %c0_220] : memref<1x2x2x11x8x8xf32, #tpu.memory_space<vmem>>, vector<1x1x1x1x8x5xf32>
    %87 = vector.shape_cast %86 : vector<1x1x1x1x8x5xf32> to vector<8x5xf32>
    %c0_221 = arith.constant 0 : index
    %c1_222 = arith.constant 1 : index
    %c1_223 = arith.constant 1 : index
    %c1_224 = arith.constant 1 : index
    %c0_225 = arith.constant 0 : index
    %c0_226 = arith.constant 0 : index
    %88 = vector.load %arg1[%c0_221, %c1_222, %c1_223, %c1_224, %c0_225, %c0_226] : memref<1x2x2x11x8x8xf32, #tpu.memory_space<vmem>>, vector<1x1x1x1x8x5xf32>
    %89 = vector.shape_cast %88 : vector<1x1x1x1x8x5xf32> to vector<8x5xf32>
    %c0_227 = arith.constant 0 : index
    %c1_228 = arith.constant 1 : index
    %c0_229 = arith.constant 0 : index
    %c1_230 = arith.constant 1 : index
    %c0_231 = arith.constant 0 : index
    %c1_232 = arith.constant 1 : index
    %90 = vector.load %arg1[%c0_227, %c1_228, %c0_229, %c1_230, %c0_231, %c1_232] : memref<1x2x2x11x8x8xf32, #tpu.memory_space<vmem>>, vector<1x1x1x1x8x5xf32>
    %91 = vector.shape_cast %90 : vector<1x1x1x1x8x5xf32> to vector<8x5xf32>
    %c0_233 = arith.constant 0 : index
    %c1_234 = arith.constant 1 : index
    %c1_235 = arith.constant 1 : index
    %c1_236 = arith.constant 1 : index
    %c0_237 = arith.constant 0 : index
    %c1_238 = arith.constant 1 : index
    %92 = vector.load %arg1[%c0_233, %c1_234, %c1_235, %c1_236, %c0_237, %c1_238] : memref<1x2x2x11x8x8xf32, #tpu.memory_space<vmem>>, vector<1x1x1x1x8x5xf32>
    %93 = vector.shape_cast %92 : vector<1x1x1x1x8x5xf32> to vector<8x5xf32>
    %c0_239 = arith.constant 0 : index
    %c1_240 = arith.constant 1 : index
    %c0_241 = arith.constant 0 : index
    %c1_242 = arith.constant 1 : index
    %c0_243 = arith.constant 0 : index
    %c2_244 = arith.constant 2 : index
    %94 = vector.load %arg1[%c0_239, %c1_240, %c0_241, %c1_242, %c0_243, %c2_244] : memref<1x2x2x11x8x8xf32, #tpu.memory_space<vmem>>, vector<1x1x1x1x8x5xf32>
    %95 = vector.shape_cast %94 : vector<1x1x1x1x8x5xf32> to vector<8x5xf32>
    %c0_245 = arith.constant 0 : index
    %c1_246 = arith.constant 1 : index
    %c1_247 = arith.constant 1 : index
    %c1_248 = arith.constant 1 : index
    %c0_249 = arith.constant 0 : index
    %c2_250 = arith.constant 2 : index
    %96 = vector.load %arg1[%c0_245, %c1_246, %c1_247, %c1_248, %c0_249, %c2_250] : memref<1x2x2x11x8x8xf32, #tpu.memory_space<vmem>>, vector<1x1x1x1x8x5xf32>
    %97 = vector.shape_cast %96 : vector<1x1x1x1x8x5xf32> to vector<8x5xf32>
    %c0_251 = arith.constant 0 : index
    %c1_252 = arith.constant 1 : index
    %c0_253 = arith.constant 0 : index
    %c1_254 = arith.constant 1 : index
    %c0_255 = arith.constant 0 : index
    %c3_256 = arith.constant 3 : index
    %98 = vector.load %arg1[%c0_251, %c1_252, %c0_253, %c1_254, %c0_255, %c3_256] : memref<1x2x2x11x8x8xf32, #tpu.memory_space<vmem>>, vector<1x1x1x1x8x5xf32>
    %99 = vector.shape_cast %98 : vector<1x1x1x1x8x5xf32> to vector<8x5xf32>
    %c0_257 = arith.constant 0 : index
    %c0_258 = arith.constant 0 : index
    %c0_259 = arith.constant 0 : index
    %c2_260 = arith.constant 2 : index
    %c0_261 = arith.constant 0 : index
    %c0_262 = arith.constant 0 : index
    %100 = vector.load %arg1[%c0_257, %c0_258, %c0_259, %c2_260, %c0_261, %c0_262] : memref<1x2x2x11x8x8xf32, #tpu.memory_space<vmem>>, vector<1x1x1x1x8x5xf32>
    %101 = vector.shape_cast %100 : vector<1x1x1x1x8x5xf32> to vector<8x5xf32>
    %c0_263 = arith.constant 0 : index
    %c0_264 = arith.constant 0 : index
    %c1_265 = arith.constant 1 : index
    %c2_266 = arith.constant 2 : index
    %c0_267 = arith.constant 0 : index
    %c0_268 = arith.constant 0 : index
    %102 = vector.load %arg1[%c0_263, %c0_264, %c1_265, %c2_266, %c0_267, %c0_268] : memref<1x2x2x11x8x8xf32, #tpu.memory_space<vmem>>, vector<1x1x1x1x8x5xf32>
    %103 = vector.shape_cast %102 : vector<1x1x1x1x8x5xf32> to vector<8x5xf32>
    %c0_269 = arith.constant 0 : index
    %c0_270 = arith.constant 0 : index
    %c0_271 = arith.constant 0 : index
    %c2_272 = arith.constant 2 : index
    %c0_273 = arith.constant 0 : index
    %c1_274 = arith.constant 1 : index
    %104 = vector.load %arg1[%c0_269, %c0_270, %c0_271, %c2_272, %c0_273, %c1_274] : memref<1x2x2x11x8x8xf32, #tpu.memory_space<vmem>>, vector<1x1x1x1x8x5xf32>
    %105 = vector.shape_cast %104 : vector<1x1x1x1x8x5xf32> to vector<8x5xf32>
    %c0_275 = arith.constant 0 : index
    %c0_276 = arith.constant 0 : index
    %c1_277 = arith.constant 1 : index
    %c2_278 = arith.constant 2 : index
    %c0_279 = arith.constant 0 : index
    %c1_280 = arith.constant 1 : index
    %106 = vector.load %arg1[%c0_275, %c0_276, %c1_277, %c2_278, %c0_279, %c1_280] : memref<1x2x2x11x8x8xf32, #tpu.memory_space<vmem>>, vector<1x1x1x1x8x5xf32>
    %107 = vector.shape_cast %106 : vector<1x1x1x1x8x5xf32> to vector<8x5xf32>
    %c0_281 = arith.constant 0 : index
    %c0_282 = arith.constant 0 : index
    %c0_283 = arith.constant 0 : index
    %c2_284 = arith.constant 2 : index
    %c0_285 = arith.constant 0 : index
    %c2_286 = arith.constant 2 : index
    %108 = vector.load %arg1[%c0_281, %c0_282, %c0_283, %c2_284, %c0_285, %c2_286] : memref<1x2x2x11x8x8xf32, #tpu.memory_space<vmem>>, vector<1x1x1x1x8x5xf32>
    %109 = vector.shape_cast %108 : vector<1x1x1x1x8x5xf32> to vector<8x5xf32>
    %c0_287 = arith.constant 0 : index
    %c0_288 = arith.constant 0 : index
    %c1_289 = arith.constant 1 : index
    %c2_290 = arith.constant 2 : index
    %c0_291 = arith.constant 0 : index
    %c2_292 = arith.constant 2 : index
    %110 = vector.load %arg1[%c0_287, %c0_288, %c1_289, %c2_290, %c0_291, %c2_292] : memref<1x2x2x11x8x8xf32, #tpu.memory_space<vmem>>, vector<1x1x1x1x8x5xf32>
    %111 = vector.shape_cast %110 : vector<1x1x1x1x8x5xf32> to vector<8x5xf32>
    %c0_293 = arith.constant 0 : index
    %c0_294 = arith.constant 0 : index
    %c0_295 = arith.constant 0 : index
    %c2_296 = arith.constant 2 : index
    %c0_297 = arith.constant 0 : index
    %c3_298 = arith.constant 3 : index
    %112 = vector.load %arg1[%c0_293, %c0_294, %c0_295, %c2_296, %c0_297, %c3_298] : memref<1x2x2x11x8x8xf32, #tpu.memory_space<vmem>>, vector<1x1x1x1x8x5xf32>
    %113 = vector.shape_cast %112 : vector<1x1x1x1x8x5xf32> to vector<8x5xf32>
    %c0_299 = arith.constant 0 : index
    %c1_300 = arith.constant 1 : index
    %c0_301 = arith.constant 0 : index
    %c2_302 = arith.constant 2 : index
    %c0_303 = arith.constant 0 : index
    %c0_304 = arith.constant 0 : index
    %114 = vector.load %arg1[%c0_299, %c1_300, %c0_301, %c2_302, %c0_303, %c0_304] : memref<1x2x2x11x8x8xf32, #tpu.memory_space<vmem>>, vector<1x1x1x1x8x5xf32>
    %115 = vector.shape_cast %114 : vector<1x1x1x1x8x5xf32> to vector<8x5xf32>
    %c0_305 = arith.constant 0 : index
    %c1_306 = arith.constant 1 : index
    %c1_307 = arith.constant 1 : index
    %c2_308 = arith.constant 2 : index
    %c0_309 = arith.constant 0 : index
    %c0_310 = arith.constant 0 : index
    %116 = vector.load %arg1[%c0_305, %c1_306, %c1_307, %c2_308, %c0_309, %c0_310] : memref<1x2x2x11x8x8xf32, #tpu.memory_space<vmem>>, vector<1x1x1x1x8x5xf32>
    %117 = vector.shape_cast %116 : vector<1x1x1x1x8x5xf32> to vector<8x5xf32>
    %c0_311 = arith.constant 0 : index
    %c1_312 = arith.constant 1 : index
    %c0_313 = arith.constant 0 : index
    %c2_314 = arith.constant 2 : index
    %c0_315 = arith.constant 0 : index
    %c1_316 = arith.constant 1 : index
    %118 = vector.load %arg1[%c0_311, %c1_312, %c0_313, %c2_314, %c0_315, %c1_316] : memref<1x2x2x11x8x8xf32, #tpu.memory_space<vmem>>, vector<1x1x1x1x8x5xf32>
    %119 = vector.shape_cast %118 : vector<1x1x1x1x8x5xf32> to vector<8x5xf32>
    %c0_317 = arith.constant 0 : index
    %c1_318 = arith.constant 1 : index
    %c1_319 = arith.constant 1 : index
    %c2_320 = arith.constant 2 : index
    %c0_321 = arith.constant 0 : index
    %c1_322 = arith.constant 1 : index
    %120 = vector.load %arg1[%c0_317, %c1_318, %c1_319, %c2_320, %c0_321, %c1_322] : memref<1x2x2x11x8x8xf32, #tpu.memory_space<vmem>>, vector<1x1x1x1x8x5xf32>
    %121 = vector.shape_cast %120 : vector<1x1x1x1x8x5xf32> to vector<8x5xf32>
    %c0_323 = arith.constant 0 : index
    %c1_324 = arith.constant 1 : index
    %c0_325 = arith.constant 0 : index
    %c2_326 = arith.constant 2 : index
    %c0_327 = arith.constant 0 : index
    %c2_328 = arith.constant 2 : index
    %122 = vector.load %arg1[%c0_323, %c1_324, %c0_325, %c2_326, %c0_327, %c2_328] : memref<1x2x2x11x8x8xf32, #tpu.memory_space<vmem>>, vector<1x1x1x1x8x5xf32>
    %123 = vector.shape_cast %122 : vector<1x1x1x1x8x5xf32> to vector<8x5xf32>
    %c0_329 = arith.constant 0 : index
    %c1_330 = arith.constant 1 : index
    %c1_331 = arith.constant 1 : index
    %c2_332 = arith.constant 2 : index
    %c0_333 = arith.constant 0 : index
    %c2_334 = arith.constant 2 : index
    %124 = vector.load %arg1[%c0_329, %c1_330, %c1_331, %c2_332, %c0_333, %c2_334] : memref<1x2x2x11x8x8xf32, #tpu.memory_space<vmem>>, vector<1x1x1x1x8x5xf32>
    %125 = vector.shape_cast %124 : vector<1x1x1x1x8x5xf32> to vector<8x5xf32>
    %c0_335 = arith.constant 0 : index
    %c1_336 = arith.constant 1 : index
    %c0_337 = arith.constant 0 : index
    %c2_338 = arith.constant 2 : index
    %c0_339 = arith.constant 0 : index
    %c3_340 = arith.constant 3 : index
    %126 = vector.load %arg1[%c0_335, %c1_336, %c0_337, %c2_338, %c0_339, %c3_340] : memref<1x2x2x11x8x8xf32, #tpu.memory_space<vmem>>, vector<1x1x1x1x8x5xf32>
    %127 = vector.shape_cast %126 : vector<1x1x1x1x8x5xf32> to vector<8x5xf32>
    %128 = tpu.concatenate %73, %75, %77, %79, %81, %83, %85, %87, %89, %91, %93, %95, %97, %99, %101, %103 in 0 : vector<8x5xf32>, vector<8x5xf32>, vector<8x5xf32>, vector<8x5xf32>, vector<8x5xf32>, vector<8x5xf32>, vector<8x5xf32>, vector<8x5xf32>, vector<8x5xf32>, vector<8x5xf32>, vector<8x5xf32>, vector<8x5xf32>, vector<8x5xf32>, vector<8x5xf32>, vector<8x5xf32>, vector<8x5xf32> -> vector<128x5xf32>
    %129 = tpu.concatenate %105, %107, %109, %111, %113, %115, %117, %119, %121, %123, %125, %127 in 0 : vector<8x5xf32>, vector<8x5xf32>, vector<8x5xf32>, vector<8x5xf32>, vector<8x5xf32>, vector<8x5xf32>, vector<8x5xf32>, vector<8x5xf32>, vector<8x5xf32>, vector<8x5xf32>, vector<8x5xf32>, vector<8x5xf32> -> vector<96x5xf32>
    %130 = tpu.concatenate %128, %129 in 0 : vector<128x5xf32>, vector<96x5xf32> -> vector<224x5xf32>
    %cst_341 = arith.constant dense<0.000000e+00> : vector<10x5xf32>
    %131 = tpu.matmul %0, %130, %cst_341 {dimension_numbers = #tpu.dot_dimension_numbers<[1], [0], [0], [1], [0, 0, 1, 1], [], []>} : vector<10x224xf32>, vector<224x5xf32>, vector<10x5xf32> -> vector<10x5xf32>
    %132 = vector.broadcast %1 : vector<10x1xf32> to vector<10x5xf32>
    %133 = arith.addf %131, %132 : vector<10x5xf32>
    %cst_342 = arith.constant 0.000000e+00 : f32
    %134 = vector.broadcast %cst_342 : f32 to vector<10x5xf32>
    %135 = arith.cmpf ogt, %133, %134 : vector<10x5xf32>
    %cst_343 = arith.constant -2.57949209 : f32
    %136 = vector.broadcast %cst_343 : f32 to vector<10x5xf32>
    %137 = arith.mulf %133, %136 : vector<10x5xf32>
    %138 = arith.select %135, %133, %137 : vector<10x5xi1>, vector<10x5xf32>
    %c0_344 = arith.constant 0 : index
    %c0_345 = arith.constant 0 : index
    %c5 = arith.constant 5 : index
    %139 = vector.load %arg4[%c0_344, %c0_345, %c5] : memref<1x10x50xf32, #tpu.memory_space<vmem>>, vector<1x10x5xf32>
    %140 = vector.shape_cast %139 : vector<1x10x5xf32> to vector<10x5xf32>
    %141 = vector.shape_cast %138 : vector<10x5xf32> to vector<1x10x5xf32>
    tpu.vector_store %arg4[%c0_344, %c0_345, %c5], %141 {strides = array<i32>} : memref<1x10x50xf32, #tpu.memory_space<vmem>>, vector<1x10x5xf32>,
    %c0_346 = arith.constant 0 : index
    %c0_347 = arith.constant 0 : index
    %c0_348 = arith.constant 0 : index
    %c2_349 = arith.constant 2 : index
    %c0_350 = arith.constant 0 : index
    %c0_351 = arith.constant 0 : index
    %142 = vector.load %arg1[%c0_346, %c0_347, %c0_348, %c2_349, %c0_350, %c0_351] : memref<1x2x2x11x8x8xf32, #tpu.memory_space<vmem>>, vector<1x1x1x1x8x5xf32>
    %143 = vector.shape_cast %142 : vector<1x1x1x1x8x5xf32> to vector<8x5xf32>
    %c0_352 = arith.constant 0 : index
    %c0_353 = arith.constant 0 : index
    %c1_354 = arith.constant 1 : index
    %c2_355 = arith.constant 2 : index
    %c0_356 = arith.constant 0 : index
    %c0_357 = arith.constant 0 : index
    %144 = vector.load %arg1[%c0_352, %c0_353, %c1_354, %c2_355, %c0_356, %c0_357] : memref<1x2x2x11x8x8xf32, #tpu.memory_space<vmem>>, vector<1x1x1x1x8x5xf32>
    %145 = vector.shape_cast %144 : vector<1x1x1x1x8x5xf32> to vector<8x5xf32>
    %c0_358 = arith.constant 0 : index
    %c0_359 = arith.constant 0 : index
    %c0_360 = arith.constant 0 : index
    %c2_361 = arith.constant 2 : index
    %c0_362 = arith.constant 0 : index
    %c1_363 = arith.constant 1 : index
    %146 = vector.load %arg1[%c0_358, %c0_359, %c0_360, %c2_361, %c0_362, %c1_363] : memref<1x2x2x11x8x8xf32, #tpu.memory_space<vmem>>, vector<1x1x1x1x8x5xf32>
    %147 = vector.shape_cast %146 : vector<1x1x1x1x8x5xf32> to vector<8x5xf32>
    %c0_364 = arith.constant 0 : index
    %c0_365 = arith.constant 0 : index
    %c1_366 = arith.constant 1 : index
    %c2_367 = arith.constant 2 : index
    %c0_368 = arith.constant 0 : index
    %c1_369 = arith.constant 1 : index
    %148 = vector.load %arg1[%c0_364, %c0_365, %c1_366, %c2_367, %c0_368, %c1_369] : memref<1x2x2x11x8x8xf32, #tpu.memory_space<vmem>>, vector<1x1x1x1x8x5xf32>
    %149 = vector.shape_cast %148 : vector<1x1x1x1x8x5xf32> to vector<8x5xf32>
    %c0_370 = arith.constant 0 : index
    %c0_371 = arith.constant 0 : index
    %c0_372 = arith.constant 0 : index
    %c2_373 = arith.constant 2 : index
    %c0_374 = arith.constant 0 : index
    %c2_375 = arith.constant 2 : index
    %150 = vector.load %arg1[%c0_370, %c0_371, %c0_372, %c2_373, %c0_374, %c2_375] : memref<1x2x2x11x8x8xf32, #tpu.memory_space<vmem>>, vector<1x1x1x1x8x5xf32>
    %151 = vector.shape_cast %150 : vector<1x1x1x1x8x5xf32> to vector<8x5xf32>
    %c0_376 = arith.constant 0 : index
    %c0_377 = arith.constant 0 : index
    %c1_378 = arith.constant 1 : index
    %c2_379 = arith.constant 2 : index
    %c0_380 = arith.constant 0 : index
    %c2_381 = arith.constant 2 : index
    %152 = vector.load %arg1[%c0_376, %c0_377, %c1_378, %c2_379, %c0_380, %c2_381] : memref<1x2x2x11x8x8xf32, #tpu.memory_space<vmem>>, vector<1x1x1x1x8x5xf32>
    %153 = vector.shape_cast %152 : vector<1x1x1x1x8x5xf32> to vector<8x5xf32>
    %c0_382 = arith.constant 0 : index
    %c0_383 = arith.constant 0 : index
    %c0_384 = arith.constant 0 : index
    %c2_385 = arith.constant 2 : index
    %c0_386 = arith.constant 0 : index
    %c3_387 = arith.constant 3 : index
    %154 = vector.load %arg1[%c0_382, %c0_383, %c0_384, %c2_385, %c0_386, %c3_387] : memref<1x2x2x11x8x8xf32, #tpu.memory_space<vmem>>, vector<1x1x1x1x8x5xf32>
    %155 = vector.shape_cast %154 : vector<1x1x1x1x8x5xf32> to vector<8x5xf32>
    %c0_388 = arith.constant 0 : index
    %c1_389 = arith.constant 1 : index
    %c0_390 = arith.constant 0 : index
    %c2_391 = arith.constant 2 : index
    %c0_392 = arith.constant 0 : index
    %c0_393 = arith.constant 0 : index
    %156 = vector.load %arg1[%c0_388, %c1_389, %c0_390, %c2_391, %c0_392, %c0_393] : memref<1x2x2x11x8x8xf32, #tpu.memory_space<vmem>>, vector<1x1x1x1x8x5xf32>
    %157 = vector.shape_cast %156 : vector<1x1x1x1x8x5xf32> to vector<8x5xf32>
    %c0_394 = arith.constant 0 : index
    %c1_395 = arith.constant 1 : index
    %c1_396 = arith.constant 1 : index
    %c2_397 = arith.constant 2 : index
    %c0_398 = arith.constant 0 : index
    %c0_399 = arith.constant 0 : index
    %158 = vector.load %arg1[%c0_394, %c1_395, %c1_396, %c2_397, %c0_398, %c0_399] : memref<1x2x2x11x8x8xf32, #tpu.memory_space<vmem>>, vector<1x1x1x1x8x5xf32>
    %159 = vector.shape_cast %158 : vector<1x1x1x1x8x5xf32> to vector<8x5xf32>
    %c0_400 = arith.constant 0 : index
    %c1_401 = arith.constant 1 : index
    %c0_402 = arith.constant 0 : index
    %c2_403 = arith.constant 2 : index
    %c0_404 = arith.constant 0 : index
    %c1_405 = arith.constant 1 : index
    %160 = vector.load %arg1[%c0_400, %c1_401, %c0_402, %c2_403, %c0_404, %c1_405] : memref<1x2x2x11x8x8xf32, #tpu.memory_space<vmem>>, vector<1x1x1x1x8x5xf32>
    %161 = vector.shape_cast %160 : vector<1x1x1x1x8x5xf32> to vector<8x5xf32>
    %c0_406 = arith.constant 0 : index
    %c1_407 = arith.constant 1 : index
    %c1_408 = arith.constant 1 : index
    %c2_409 = arith.constant 2 : index
    %c0_410 = arith.constant 0 : index
    %c1_411 = arith.constant 1 : index
    %162 = vector.load %arg1[%c0_406, %c1_407, %c1_408, %c2_409, %c0_410, %c1_411] : memref<1x2x2x11x8x8xf32, #tpu.memory_space<vmem>>, vector<1x1x1x1x8x5xf32>
    %163 = vector.shape_cast %162 : vector<1x1x1x1x8x5xf32> to vector<8x5xf32>
    %c0_412 = arith.constant 0 : index
    %c1_413 = arith.constant 1 : index
    %c0_414 = arith.constant 0 : index
    %c2_415 = arith.constant 2 : index
    %c0_416 = arith.constant 0 : index
    %c2_417 = arith.constant 2 : index
    %164 = vector.load %arg1[%c0_412, %c1_413, %c0_414, %c2_415, %c0_416, %c2_417] : memref<1x2x2x11x8x8xf32, #tpu.memory_space<vmem>>, vector<1x1x1x1x8x5xf32>
    %165 = vector.shape_cast %164 : vector<1x1x1x1x8x5xf32> to vector<8x5xf32>
    %c0_418 = arith.constant 0 : index
    %c1_419 = arith.constant 1 : index
    %c1_420 = arith.constant 1 : index
    %c2_421 = arith.constant 2 : index
    %c0_422 = arith.constant 0 : index
    %c2_423 = arith.constant 2 : index
    %166 = vector.load %arg1[%c0_418, %c1_419, %c1_420, %c2_421, %c0_422, %c2_423] : memref<1x2x2x11x8x8xf32, #tpu.memory_space<vmem>>, vector<1x1x1x1x8x5xf32>
    %167 = vector.shape_cast %166 : vector<1x1x1x1x8x5xf32> to vector<8x5xf32>
    %c0_424 = arith.constant 0 : index
    %c1_425 = arith.constant 1 : index
    %c0_426 = arith.constant 0 : index
    %c2_427 = arith.constant 2 : index
    %c0_428 = arith.constant 0 : index
    %c3_429 = arith.constant 3 : index
    %168 = vector.load %arg1[%c0_424, %c1_425, %c0_426, %c2_427, %c0_428, %c3_429] : memref<1x2x2x11x8x8xf32, #tpu.memory_space<vmem>>, vector<1x1x1x1x8x5xf32>
    %169 = vector.shape_cast %168 : vector<1x1x1x1x8x5xf32> to vector<8x5xf32>
    %c0_430 = arith.constant 0 : index
    %c0_431 = arith.constant 0 : index
    %c0_432 = arith.constant 0 : index
    %c3_433 = arith.constant 3 : index
    %c0_434 = arith.constant 0 : index
    %c0_435 = arith.constant 0 : index
    %170 = vector.load %arg1[%c0_430, %c0_431, %c0_432, %c3_433, %c0_434, %c0_435] : memref<1x2x2x11x8x8xf32, #tpu.memory_space<vmem>>, vector<1x1x1x1x8x5xf32>
    %171 = vector.shape_cast %170 : vector<1x1x1x1x8x5xf32> to vector<8x5xf32>
    %c0_436 = arith.constant 0 : index
    %c0_437 = arith.constant 0 : index
    %c1_438 = arith.constant 1 : index
    %c3_439 = arith.constant 3 : index
    %c0_440 = arith.constant 0 : index
    %c0_441 = arith.constant 0 : index
    %172 = vector.load %arg1[%c0_436, %c0_437, %c1_438, %c3_439, %c0_440, %c0_441] : memref<1x2x2x11x8x8xf32, #tpu.memory_space<vmem>>, vector<1x1x1x1x8x5xf32>
    %173 = vector.shape_cast %172 : vector<1x1x1x1x8x5xf32> to vector<8x5xf32>
    %c0_442 = arith.constant 0 : index
    %c0_443 = arith.constant 0 : index
    %c0_444 = arith.constant 0 : index
    %c3_445 = arith.constant 3 : index
    %c0_446 = arith.constant 0 : index
    %c1_447 = arith.constant 1 : index
    %174 = vector.load %arg1[%c0_442, %c0_443, %c0_444, %c3_445, %c0_446, %c1_447] : memref<1x2x2x11x8x8xf32, #tpu.memory_space<vmem>>, vector<1x1x1x1x8x5xf32>
    %175 = vector.shape_cast %174 : vector<1x1x1x1x8x5xf32> to vector<8x5xf32>
    %c0_448 = arith.constant 0 : index
    %c0_449 = arith.constant 0 : index
    %c1_450 = arith.constant 1 : index
    %c3_451 = arith.constant 3 : index
    %c0_452 = arith.constant 0 : index
    %c1_453 = arith.constant 1 : index
    %176 = vector.load %arg1[%c0_448, %c0_449, %c1_450, %c3_451, %c0_452, %c1_453] : memref<1x2x2x11x8x8xf32, #tpu.memory_space<vmem>>, vector<1x1x1x1x8x5xf32>
    %177 = vector.shape_cast %176 : vector<1x1x1x1x8x5xf32> to vector<8x5xf32>
    %c0_454 = arith.constant 0 : index
    %c0_455 = arith.constant 0 : index
    %c0_456 = arith.constant 0 : index
    %c3_457 = arith.constant 3 : index
    %c0_458 = arith.constant 0 : index
    %c2_459 = arith.constant 2 : index
    %178 = vector.load %arg1[%c0_454, %c0_455, %c0_456, %c3_457, %c0_458, %c2_459] : memref<1x2x2x11x8x8xf32, #tpu.memory_space<vmem>>, vector<1x1x1x1x8x5xf32>
    %179 = vector.shape_cast %178 : vector<1x1x1x1x8x5xf32> to vector<8x5xf32>
    %c0_460 = arith.constant 0 : index
    %c0_461 = arith.constant 0 : index
    %c1_462 = arith.constant 1 : index
    %c3_463 = arith.constant 3 : index
    %c0_464 = arith.constant 0 : index
    %c2_465 = arith.constant 2 : index
    %180 = vector.load %arg1[%c0_460, %c0_461, %c1_462, %c3_463, %c0_464, %c2_465] : memref<1x2x2x11x8x8xf32, #tpu.memory_space<vmem>>, vector<1x1x1x1x8x5xf32>
    %181 = vector.shape_cast %180 : vector<1x1x1x1x8x5xf32> to vector<8x5xf32>
    %c0_466 = arith.constant 0 : index
    %c0_467 = arith.constant 0 : index
    %c0_468 = arith.constant 0 : index
    %c3_469 = arith.constant 3 : index
    %c0_470 = arith.constant 0 : index
    %c3_471 = arith.constant 3 : index
    %182 = vector.load %arg1[%c0_466, %c0_467, %c0_468, %c3_469, %c0_470, %c3_471] : memref<1x2x2x11x8x8xf32, #tpu.memory_space<vmem>>, vector<1x1x1x1x8x5xf32>
    %183 = vector.shape_cast %182 : vector<1x1x1x1x8x5xf32> to vector<8x5xf32>
    %c0_472 = arith.constant 0 : index
    %c1_473 = arith.constant 1 : index
    %c0_474 = arith.constant 0 : index
    %c3_475 = arith.constant 3 : index
    %c0_476 = arith.constant 0 : index
    %c0_477 = arith.constant 0 : index
    %184 = vector.load %arg1[%c0_472, %c1_473, %c0_474, %c3_475, %c0_476, %c0_477] : memref<1x2x2x11x8x8xf32, #tpu.memory_space<vmem>>, vector<1x1x1x1x8x5xf32>
    %185 = vector.shape_cast %184 : vector<1x1x1x1x8x5xf32> to vector<8x5xf32>
    %c0_478 = arith.constant 0 : index
    %c1_479 = arith.constant 1 : index
    %c1_480 = arith.constant 1 : index
    %c3_481 = arith.constant 3 : index
    %c0_482 = arith.constant 0 : index
    %c0_483 = arith.constant 0 : index
    %186 = vector.load %arg1[%c0_478, %c1_479, %c1_480, %c3_481, %c0_482, %c0_483] : memref<1x2x2x11x8x8xf32, #tpu.memory_space<vmem>>, vector<1x1x1x1x8x5xf32>
    %187 = vector.shape_cast %186 : vector<1x1x1x1x8x5xf32> to vector<8x5xf32>
    %c0_484 = arith.constant 0 : index
    %c1_485 = arith.constant 1 : index
    %c0_486 = arith.constant 0 : index
    %c3_487 = arith.constant 3 : index
    %c0_488 = arith.constant 0 : index
    %c1_489 = arith.constant 1 : index
    %188 = vector.load %arg1[%c0_484, %c1_485, %c0_486, %c3_487, %c0_488, %c1_489] : memref<1x2x2x11x8x8xf32, #tpu.memory_space<vmem>>, vector<1x1x1x1x8x5xf32>
    %189 = vector.shape_cast %188 : vector<1x1x1x1x8x5xf32> to vector<8x5xf32>
    %c0_490 = arith.constant 0 : index
    %c1_491 = arith.constant 1 : index
    %c1_492 = arith.constant 1 : index
    %c3_493 = arith.constant 3 : index
    %c0_494 = arith.constant 0 : index
    %c1_495 = arith.constant 1 : index
    %190 = vector.load %arg1[%c0_490, %c1_491, %c1_492, %c3_493, %c0_494, %c1_495] : memref<1x2x2x11x8x8xf32, #tpu.memory_space<vmem>>, vector<1x1x1x1x8x5xf32>
    %191 = vector.shape_cast %190 : vector<1x1x1x1x8x5xf32> to vector<8x5xf32>
    %c0_496 = arith.constant 0 : index
    %c1_497 = arith.constant 1 : index
    %c0_498 = arith.constant 0 : index
    %c3_499 = arith.constant 3 : index
    %c0_500 = arith.constant 0 : index
    %c2_501 = arith.constant 2 : index
    %192 = vector.load %arg1[%c0_496, %c1_497, %c0_498, %c3_499, %c0_500, %c2_501] : memref<1x2x2x11x8x8xf32, #tpu.memory_space<vmem>>, vector<1x1x1x1x8x5xf32>
    %193 = vector.shape_cast %192 : vector<1x1x1x1x8x5xf32> to vector<8x5xf32>
    %c0_502 = arith.constant 0 : index
    %c1_503 = arith.constant 1 : index
    %c1_504 = arith.constant 1 : index
    %c3_505 = arith.constant 3 : index
    %c0_506 = arith.constant 0 : index
    %c2_507 = arith.constant 2 : index
    %194 = vector.load %arg1[%c0_502, %c1_503, %c1_504, %c3_505, %c0_506, %c2_507] : memref<1x2x2x11x8x8xf32, #tpu.memory_space<vmem>>, vector<1x1x1x1x8x5xf32>
    %195 = vector.shape_cast %194 : vector<1x1x1x1x8x5xf32> to vector<8x5xf32>
    %c0_508 = arith.constant 0 : index
    %c1_509 = arith.constant 1 : index
    %c0_510 = arith.constant 0 : index
    %c3_511 = arith.constant 3 : index
    %c0_512 = arith.constant 0 : index
    %c3_513 = arith.constant 3 : index
    %196 = vector.load %arg1[%c0_508, %c1_509, %c0_510, %c3_511, %c0_512, %c3_513] : memref<1x2x2x11x8x8xf32, #tpu.memory_space<vmem>>, vector<1x1x1x1x8x5xf32>
    %197 = vector.shape_cast %196 : vector<1x1x1x1x8x5xf32> to vector<8x5xf32>
    %198 = tpu.concatenate %143, %145, %147, %149, %151, %153, %155, %157, %159, %161, %163, %165, %167, %169, %171, %173 in 0 : vector<8x5xf32>, vector<8x5xf32>, vector<8x5xf32>, vector<8x5xf32>, vector<8x5xf32>, vector<8x5xf32>, vector<8x5xf32>, vector<8x5xf32>, vector<8x5xf32>, vector<8x5xf32>, vector<8x5xf32>, vector<8x5xf32>, vector<8x5xf32>, vector<8x5xf32>, vector<8x5xf32>, vector<8x5xf32> -> vector<128x5xf32>
    %199 = tpu.concatenate %175, %177, %179, %181, %183, %185, %187, %189, %191, %193, %195, %197 in 0 : vector<8x5xf32>, vector<8x5xf32>, vector<8x5xf32>, vector<8x5xf32>, vector<8x5xf32>, vector<8x5xf32>, vector<8x5xf32>, vector<8x5xf32>, vector<8x5xf32>, vector<8x5xf32>, vector<8x5xf32>, vector<8x5xf32> -> vector<96x5xf32>
    %200 = tpu.concatenate %198, %199 in 0 : vector<128x5xf32>, vector<96x5xf32> -> vector<224x5xf32>
    %cst_514 = arith.constant dense<0.000000e+00> : vector<10x5xf32>
    %201 = tpu.matmul %0, %200, %cst_514 {dimension_numbers = #tpu.dot_dimension_numbers<[1], [0], [0], [1], [0, 0, 1, 1], [], []>} : vector<10x224xf32>, vector<224x5xf32>, vector<10x5xf32> -> vector<10x5xf32>
    %202 = vector.broadcast %1 : vector<10x1xf32> to vector<10x5xf32>
    %203 = arith.addf %201, %202 : vector<10x5xf32>
    %cst_515 = arith.constant 0.000000e+00 : f32
    %204 = vector.broadcast %cst_515 : f32 to vector<10x5xf32>
    %205 = arith.cmpf ogt, %203, %204 : vector<10x5xf32>
    %cst_516 = arith.constant -2.57949209 : f32
    %206 = vector.broadcast %cst_516 : f32 to vector<10x5xf32>
    %207 = arith.mulf %203, %206 : vector<10x5xf32>
    %208 = arith.select %205, %203, %207 : vector<10x5xi1>, vector<10x5xf32>
    %c0_517 = arith.constant 0 : index
    %c0_518 = arith.constant 0 : index
    %c10 = arith.constant 10 : index
    %209 = vector.load %arg4[%c0_517, %c0_518, %c10] : memref<1x10x50xf32, #tpu.memory_space<vmem>>, vector<1x10x5xf32>
    %210 = vector.shape_cast %209 : vector<1x10x5xf32> to vector<10x5xf32>
    %211 = vector.shape_cast %208 : vector<10x5xf32> to vector<1x10x5xf32>
    tpu.vector_store %arg4[%c0_517, %c0_518, %c10], %211 {strides = array<i32>} : memref<1x10x50xf32, #tpu.memory_space<vmem>>, vector<1x10x5xf32>,
    %c0_519 = arith.constant 0 : index
    %c0_520 = arith.constant 0 : index
    %c0_521 = arith.constant 0 : index
    %c3_522 = arith.constant 3 : index
    %c0_523 = arith.constant 0 : index
    %c0_524 = arith.constant 0 : index
    %212 = vector.load %arg1[%c0_519, %c0_520, %c0_521, %c3_522, %c0_523, %c0_524] : memref<1x2x2x11x8x8xf32, #tpu.memory_space<vmem>>, vector<1x1x1x1x8x5xf32>
    %213 = vector.shape_cast %212 : vector<1x1x1x1x8x5xf32> to vector<8x5xf32>
    %c0_525 = arith.constant 0 : index
    %c0_526 = arith.constant 0 : index
    %c1_527 = arith.constant 1 : index
    %c3_528 = arith.constant 3 : index
    %c0_529 = arith.constant 0 : index
    %c0_530 = arith.constant 0 : index
    %214 = vector.load %arg1[%c0_525, %c0_526, %c1_527, %c3_528, %c0_529, %c0_530] : memref<1x2x2x11x8x8xf32, #tpu.memory_space<vmem>>, vector<1x1x1x1x8x5xf32>
    %215 = vector.shape_cast %214 : vector<1x1x1x1x8x5xf32> to vector<8x5xf32>
    %c0_531 = arith.constant 0 : index
    %c0_532 = arith.constant 0 : index
    %c0_533 = arith.constant 0 : index
    %c3_534 = arith.constant 3 : index
    %c0_535 = arith.constant 0 : index
    %c1_536 = arith.constant 1 : index
    %216 = vector.load %arg1[%c0_531, %c0_532, %c0_533, %c3_534, %c0_535, %c1_536] : memref<1x2x2x11x8x8xf32, #tpu.memory_space<vmem>>, vector<1x1x1x1x8x5xf32>
    %217 = vector.shape_cast %216 : vector<1x1x1x1x8x5xf32> to vector<8x5xf32>
    %c0_537 = arith.constant 0 : index
    %c0_538 = arith.constant 0 : index
    %c1_539 = arith.constant 1 : index
    %c3_540 = arith.constant 3 : index
    %c0_541 = arith.constant 0 : index
    %c1_542 = arith.constant 1 : index
    %218 = vector.load %arg1[%c0_537, %c0_538, %c1_539, %c3_540, %c0_541, %c1_542] : memref<1x2x2x11x8x8xf32, #tpu.memory_space<vmem>>, vector<1x1x1x1x8x5xf32>
    %219 = vector.shape_cast %218 : vector<1x1x1x1x8x5xf32> to vector<8x5xf32>
    %c0_543 = arith.constant 0 : index
    %c0_544 = arith.constant 0 : index
    %c0_545 = arith.constant 0 : index
    %c3_546 = arith.constant 3 : index
    %c0_547 = arith.constant 0 : index
    %c2_548 = arith.constant 2 : index
    %220 = vector.load %arg1[%c0_543, %c0_544, %c0_545, %c3_546, %c0_547, %c2_548] : memref<1x2x2x11x8x8xf32, #tpu.memory_space<vmem>>, vector<1x1x1x1x8x5xf32>
    %221 = vector.shape_cast %220 : vector<1x1x1x1x8x5xf32> to vector<8x5xf32>
    %c0_549 = arith.constant 0 : index
    %c0_550 = arith.constant 0 : index
    %c1_551 = arith.constant 1 : index
    %c3_552 = arith.constant 3 : index
    %c0_553 = arith.constant 0 : index
    %c2_554 = arith.constant 2 : index
    %222 = vector.load %arg1[%c0_549, %c0_550, %c1_551, %c3_552, %c0_553, %c2_554] : memref<1x2x2x11x8x8xf32, #tpu.memory_space<vmem>>, vector<1x1x1x1x8x5xf32>
    %223 = vector.shape_cast %222 : vector<1x1x1x1x8x5xf32> to vector<8x5xf32>
    %c0_555 = arith.constant 0 : index
    %c0_556 = arith.constant 0 : index
    %c0_557 = arith.constant 0 : index
    %c3_558 = arith.constant 3 : index
    %c0_559 = arith.constant 0 : index
    %c3_560 = arith.constant 3 : index
    %224 = vector.load %arg1[%c0_555, %c0_556, %c0_557, %c3_558, %c0_559, %c3_560] : memref<1x2x2x11x8x8xf32, #tpu.memory_space<vmem>>, vector<1x1x1x1x8x5xf32>
    %225 = vector.shape_cast %224 : vector<1x1x1x1x8x5xf32> to vector<8x5xf32>
    %c0_561 = arith.constant 0 : index
    %c1_562 = arith.constant 1 : index
    %c0_563 = arith.constant 0 : index
    %c3_564 = arith.constant 3 : index
    %c0_565 = arith.constant 0 : index
    %c0_566 = arith.constant 0 : index
    %226 = vector.load %arg1[%c0_561, %c1_562, %c0_563, %c3_564, %c0_565, %c0_566] : memref<1x2x2x11x8x8xf32, #tpu.memory_space<vmem>>, vector<1x1x1x1x8x5xf32>
    %227 = vector.shape_cast %226 : vector<1x1x1x1x8x5xf32> to vector<8x5xf32>
    %c0_567 = arith.constant 0 : index
    %c1_568 = arith.constant 1 : index
    %c1_569 = arith.constant 1 : index
    %c3_570 = arith.constant 3 : index
    %c0_571 = arith.constant 0 : index
    %c0_572 = arith.constant 0 : index
    %228 = vector.load %arg1[%c0_567, %c1_568, %c1_569, %c3_570, %c0_571, %c0_572] : memref<1x2x2x11x8x8xf32, #tpu.memory_space<vmem>>, vector<1x1x1x1x8x5xf32>
    %229 = vector.shape_cast %228 : vector<1x1x1x1x8x5xf32> to vector<8x5xf32>
    %c0_573 = arith.constant 0 : index
    %c1_574 = arith.constant 1 : index
    %c0_575 = arith.constant 0 : index
    %c3_576 = arith.constant 3 : index
    %c0_577 = arith.constant 0 : index
    %c1_578 = arith.constant 1 : index
    %230 = vector.load %arg1[%c0_573, %c1_574, %c0_575, %c3_576, %c0_577, %c1_578] : memref<1x2x2x11x8x8xf32, #tpu.memory_space<vmem>>, vector<1x1x1x1x8x5xf32>
    %231 = vector.shape_cast %230 : vector<1x1x1x1x8x5xf32> to vector<8x5xf32>
    %c0_579 = arith.constant 0 : index
    %c1_580 = arith.constant 1 : index
    %c1_581 = arith.constant 1 : index
    %c3_582 = arith.constant 3 : index
    %c0_583 = arith.constant 0 : index
    %c1_584 = arith.constant 1 : index
    %232 = vector.load %arg1[%c0_579, %c1_580, %c1_581, %c3_582, %c0_583, %c1_584] : memref<1x2x2x11x8x8xf32, #tpu.memory_space<vmem>>, vector<1x1x1x1x8x5xf32>
    %233 = vector.shape_cast %232 : vector<1x1x1x1x8x5xf32> to vector<8x5xf32>
    %c0_585 = arith.constant 0 : index
    %c1_586 = arith.constant 1 : index
    %c0_587 = arith.constant 0 : index
    %c3_588 = arith.constant 3 : index
    %c0_589 = arith.constant 0 : index
    %c2_590 = arith.constant 2 : index
    %234 = vector.load %arg1[%c0_585, %c1_586, %c0_587, %c3_588, %c0_589, %c2_590] : memref<1x2x2x11x8x8xf32, #tpu.memory_space<vmem>>, vector<1x1x1x1x8x5xf32>
    %235 = vector.shape_cast %234 : vector<1x1x1x1x8x5xf32> to vector<8x5xf32>
    %c0_591 = arith.constant 0 : index
    %c1_592 = arith.constant 1 : index
    %c1_593 = arith.constant 1 : index
    %c3_594 = arith.constant 3 : index
    %c0_595 = arith.constant 0 : index
    %c2_596 = arith.constant 2 : index
    %236 = vector.load %arg1[%c0_591, %c1_592, %c1_593, %c3_594, %c0_595, %c2_596] : memref<1x2x2x11x8x8xf32, #tpu.memory_space<vmem>>, vector<1x1x1x1x8x5xf32>
    %237 = vector.shape_cast %236 : vector<1x1x1x1x8x5xf32> to vector<8x5xf32>
    %c0_597 = arith.constant 0 : index
    %c1_598 = arith.constant 1 : index
    %c0_599 = arith.constant 0 : index
    %c3_600 = arith.constant 3 : index
    %c0_601 = arith.constant 0 : index
    %c3_602 = arith.constant 3 : index
    %238 = vector.load %arg1[%c0_597, %c1_598, %c0_599, %c3_600, %c0_601, %c3_602] : memref<1x2x2x11x8x8xf32, #tpu.memory_space<vmem>>, vector<1x1x1x1x8x5xf32>
    %239 = vector.shape_cast %238 : vector<1x1x1x1x8x5xf32> to vector<8x5xf32>
    %c0_603 = arith.constant 0 : index
    %c0_604 = arith.constant 0 : index
    %c0_605 = arith.constant 0 : index
    %c4 = arith.constant 4 : index
    %c0_606 = arith.constant 0 : index
    %c0_607 = arith.constant 0 : index
    %240 = vector.load %arg1[%c0_603, %c0_604, %c0_605, %c4, %c0_606, %c0_607] : memref<1x2x2x11x8x8xf32, #tpu.memory_space<vmem>>, vector<1x1x1x1x8x5xf32>
    %241 = vector.shape_cast %240 : vector<1x1x1x1x8x5xf32> to vector<8x5xf32>
    %c0_608 = arith.constant 0 : index
    %c0_609 = arith.constant 0 : index
    %c1_610 = arith.constant 1 : index
    %c4_611 = arith.constant 4 : index
    %c0_612 = arith.constant 0 : index
    %c0_613 = arith.constant 0 : index
    %242 = vector.load %arg1[%c0_608, %c0_609, %c1_610, %c4_611, %c0_612, %c0_613] : memref<1x2x2x11x8x8xf32, #tpu.memory_space<vmem>>, vector<1x1x1x1x8x5xf32>
    %243 = vector.shape_cast %242 : vector<1x1x1x1x8x5xf32> to vector<8x5xf32>
    %c0_614 = arith.constant 0 : index
    %c0_615 = arith.constant 0 : index
    %c0_616 = arith.constant 0 : index
    %c4_617 = arith.constant 4 : index
    %c0_618 = arith.constant 0 : index
    %c1_619 = arith.constant 1 : index
    %244 = vector.load %arg1[%c0_614, %c0_615, %c0_616, %c4_617, %c0_618, %c1_619] : memref<1x2x2x11x8x8xf32, #tpu.memory_space<vmem>>, vector<1x1x1x1x8x5xf32>
    %245 = vector.shape_cast %244 : vector<1x1x1x1x8x5xf32> to vector<8x5xf32>
    %c0_620 = arith.constant 0 : index
    %c0_621 = arith.constant 0 : index
    %c1_622 = arith.constant 1 : index
    %c4_623 = arith.constant 4 : index
    %c0_624 = arith.constant 0 : index
    %c1_625 = arith.constant 1 : index
    %246 = vector.load %arg1[%c0_620, %c0_621, %c1_622, %c4_623, %c0_624, %c1_625] : memref<1x2x2x11x8x8xf32, #tpu.memory_space<vmem>>, vector<1x1x1x1x8x5xf32>
    %247 = vector.shape_cast %246 : vector<1x1x1x1x8x5xf32> to vector<8x5xf32>
    %c0_626 = arith.constant 0 : index
    %c0_627 = arith.constant 0 : index
    %c0_628 = arith.constant 0 : index
    %c4_629 = arith.constant 4 : index
    %c0_630 = arith.constant 0 : index
    %c2_631 = arith.constant 2 : index
    %248 = vector.load %arg1[%c0_626, %c0_627, %c0_628, %c4_629, %c0_630, %c2_631] : memref<1x2x2x11x8x8xf32, #tpu.memory_space<vmem>>, vector<1x1x1x1x8x5xf32>
    %249 = vector.shape_cast %248 : vector<1x1x1x1x8x5xf32> to vector<8x5xf32>
    %c0_632 = arith.constant 0 : index
    %c0_633 = arith.constant 0 : index
    %c1_634 = arith.constant 1 : index
    %c4_635 = arith.constant 4 : index
    %c0_636 = arith.constant 0 : index
    %c2_637 = arith.constant 2 : index
    %250 = vector.load %arg1[%c0_632, %c0_633, %c1_634, %c4_635, %c0_636, %c2_637] : memref<1x2x2x11x8x8xf32, #tpu.memory_space<vmem>>, vector<1x1x1x1x8x5xf32>
    %251 = vector.shape_cast %250 : vector<1x1x1x1x8x5xf32> to vector<8x5xf32>
    %c0_638 = arith.constant 0 : index
    %c0_639 = arith.constant 0 : index
    %c0_640 = arith.constant 0 : index
    %c4_641 = arith.constant 4 : index
    %c0_642 = arith.constant 0 : index
    %c3_643 = arith.constant 3 : index
    %252 = vector.load %arg1[%c0_638, %c0_639, %c0_640, %c4_641, %c0_642, %c3_643] : memref<1x2x2x11x8x8xf32, #tpu.memory_space<vmem>>, vector<1x1x1x1x8x5xf32>
    %253 = vector.shape_cast %252 : vector<1x1x1x1x8x5xf32> to vector<8x5xf32>
    %c0_644 = arith.constant 0 : index
    %c1_645 = arith.constant 1 : index
    %c0_646 = arith.constant 0 : index
    %c4_647 = arith.constant 4 : index
    %c0_648 = arith.constant 0 : index
    %c0_649 = arith.constant 0 : index
    %254 = vector.load %arg1[%c0_644, %c1_645, %c0_646, %c4_647, %c0_648, %c0_649] : memref<1x2x2x11x8x8xf32, #tpu.memory_space<vmem>>, vector<1x1x1x1x8x5xf32>
    %255 = vector.shape_cast %254 : vector<1x1x1x1x8x5xf32> to vector<8x5xf32>
    %c0_650 = arith.constant 0 : index
    %c1_651 = arith.constant 1 : index
    %c1_652 = arith.constant 1 : index
    %c4_653 = arith.constant 4 : index
    %c0_654 = arith.constant 0 : index
    %c0_655 = arith.constant 0 : index
    %256 = vector.load %arg1[%c0_650, %c1_651, %c1_652, %c4_653, %c0_654, %c0_655] : memref<1x2x2x11x8x8xf32, #tpu.memory_space<vmem>>, vector<1x1x1x1x8x5xf32>
    %257 = vector.shape_cast %256 : vector<1x1x1x1x8x5xf32> to vector<8x5xf32>
    %c0_656 = arith.constant 0 : index
    %c1_657 = arith.constant 1 : index
    %c0_658 = arith.constant 0 : index
    %c4_659 = arith.constant 4 : index
    %c0_660 = arith.constant 0 : index
    %c1_661 = arith.constant 1 : index
    %258 = vector.load %arg1[%c0_656, %c1_657, %c0_658, %c4_659, %c0_660, %c1_661] : memref<1x2x2x11x8x8xf32, #tpu.memory_space<vmem>>, vector<1x1x1x1x8x5xf32>
    %259 = vector.shape_cast %258 : vector<1x1x1x1x8x5xf32> to vector<8x5xf32>
    %c0_662 = arith.constant 0 : index
    %c1_663 = arith.constant 1 : index
    %c1_664 = arith.constant 1 : index
    %c4_665 = arith.constant 4 : index
    %c0_666 = arith.constant 0 : index
    %c1_667 = arith.constant 1 : index
    %260 = vector.load %arg1[%c0_662, %c1_663, %c1_664, %c4_665, %c0_666, %c1_667] : memref<1x2x2x11x8x8xf32, #tpu.memory_space<vmem>>, vector<1x1x1x1x8x5xf32>
    %261 = vector.shape_cast %260 : vector<1x1x1x1x8x5xf32> to vector<8x5xf32>
    %c0_668 = arith.constant 0 : index
    %c1_669 = arith.constant 1 : index
    %c0_670 = arith.constant 0 : index
    %c4_671 = arith.constant 4 : index
    %c0_672 = arith.constant 0 : index
    %c2_673 = arith.constant 2 : index
    %262 = vector.load %arg1[%c0_668, %c1_669, %c0_670, %c4_671, %c0_672, %c2_673] : memref<1x2x2x11x8x8xf32, #tpu.memory_space<vmem>>, vector<1x1x1x1x8x5xf32>
    %263 = vector.shape_cast %262 : vector<1x1x1x1x8x5xf32> to vector<8x5xf32>
    %c0_674 = arith.constant 0 : index
    %c1_675 = arith.constant 1 : index
    %c1_676 = arith.constant 1 : index
    %c4_677 = arith.constant 4 : index
    %c0_678 = arith.constant 0 : index
    %c2_679 = arith.constant 2 : index
    %264 = vector.load %arg1[%c0_674, %c1_675, %c1_676, %c4_677, %c0_678, %c2_679] : memref<1x2x2x11x8x8xf32, #tpu.memory_space<vmem>>, vector<1x1x1x1x8x5xf32>
    %265 = vector.shape_cast %264 : vector<1x1x1x1x8x5xf32> to vector<8x5xf32>
    %c0_680 = arith.constant 0 : index
    %c1_681 = arith.constant 1 : index
    %c0_682 = arith.constant 0 : index
    %c4_683 = arith.constant 4 : index
    %c0_684 = arith.constant 0 : index
    %c3_685 = arith.constant 3 : index
    %266 = vector.load %arg1[%c0_680, %c1_681, %c0_682, %c4_683, %c0_684, %c3_685] : memref<1x2x2x11x8x8xf32, #tpu.memory_space<vmem>>, vector<1x1x1x1x8x5xf32>
    %267 = vector.shape_cast %266 : vector<1x1x1x1x8x5xf32> to vector<8x5xf32>
    %268 = tpu.concatenate %213, %215, %217, %219, %221, %223, %225, %227, %229, %231, %233, %235, %237, %239, %241, %243 in 0 : vector<8x5xf32>, vector<8x5xf32>, vector<8x5xf32>, vector<8x5xf32>, vector<8x5xf32>, vector<8x5xf32>, vector<8x5xf32>, vector<8x5xf32>, vector<8x5xf32>, vector<8x5xf32>, vector<8x5xf32>, vector<8x5xf32>, vector<8x5xf32>, vector<8x5xf32>, vector<8x5xf32>, vector<8x5xf32> -> vector<128x5xf32>
    %269 = tpu.concatenate %245, %247, %249, %251, %253, %255, %257, %259, %261, %263, %265, %267 in 0 : vector<8x5xf32>, vector<8x5xf32>, vector<8x5xf32>, vector<8x5xf32>, vector<8x5xf32>, vector<8x5xf32>, vector<8x5xf32>, vector<8x5xf32>, vector<8x5xf32>, vector<8x5xf32>, vector<8x5xf32>, vector<8x5xf32> -> vector<96x5xf32>
    %270 = tpu.concatenate %268, %269 in 0 : vector<128x5xf32>, vector<96x5xf32> -> vector<224x5xf32>
    %cst_686 = arith.constant dense<0.000000e+00> : vector<10x5xf32>
    %271 = tpu.matmul %0, %270, %cst_686 {dimension_numbers = #tpu.dot_dimension_numbers<[1], [0], [0], [1], [0, 0, 1, 1], [], []>} : vector<10x224xf32>, vector<224x5xf32>, vector<10x5xf32> -> vector<10x5xf32>
    %272 = vector.broadcast %1 : vector<10x1xf32> to vector<10x5xf32>
    %273 = arith.addf %271, %272 : vector<10x5xf32>
    %cst_687 = arith.constant 0.000000e+00 : f32
    %274 = vector.broadcast %cst_687 : f32 to vector<10x5xf32>
    %275 = arith.cmpf ogt, %273, %274 : vector<10x5xf32>
    %cst_688 = arith.constant -2.57949209 : f32
    %276 = vector.broadcast %cst_688 : f32 to vector<10x5xf32>
    %277 = arith.mulf %273, %276 : vector<10x5xf32>
    %278 = arith.select %275, %273, %277 : vector<10x5xi1>, vector<10x5xf32>
    %c0_689 = arith.constant 0 : index
    %c0_690 = arith.constant 0 : index
    %c15 = arith.constant 15 : index
    %279 = vector.load %arg4[%c0_689, %c0_690, %c15] : memref<1x10x50xf32, #tpu.memory_space<vmem>>, vector<1x10x5xf32>
    %280 = vector.shape_cast %279 : vector<1x10x5xf32> to vector<10x5xf32>
    %281 = vector.shape_cast %278 : vector<10x5xf32> to vector<1x10x5xf32>
    tpu.vector_store %arg4[%c0_689, %c0_690, %c15], %281 {strides = array<i32>} : memref<1x10x50xf32, #tpu.memory_space<vmem>>, vector<1x10x5xf32>,
    %c0_691 = arith.constant 0 : index
    %c0_692 = arith.constant 0 : index
    %c0_693 = arith.constant 0 : index
    %c4_694 = arith.constant 4 : index
    %c0_695 = arith.constant 0 : index
    %c0_696 = arith.constant 0 : index
    %282 = vector.load %arg1[%c0_691, %c0_692, %c0_693, %c4_694, %c0_695, %c0_696] : memref<1x2x2x11x8x8xf32, #tpu.memory_space<vmem>>, vector<1x1x1x1x8x5xf32>
    %283 = vector.shape_cast %282 : vector<1x1x1x1x8x5xf32> to vector<8x5xf32>
    %c0_697 = arith.constant 0 : index
    %c0_698 = arith.constant 0 : index
    %c1_699 = arith.constant 1 : index
    %c4_700 = arith.constant 4 : index
    %c0_701 = arith.constant 0 : index
    %c0_702 = arith.constant 0 : index
    %284 = vector.load %arg1[%c0_697, %c0_698, %c1_699, %c4_700, %c0_701, %c0_702] : memref<1x2x2x11x8x8xf32, #tpu.memory_space<vmem>>, vector<1x1x1x1x8x5xf32>
    %285 = vector.shape_cast %284 : vector<1x1x1x1x8x5xf32> to vector<8x5xf32>
    %c0_703 = arith.constant 0 : index
    %c0_704 = arith.constant 0 : index
    %c0_705 = arith.constant 0 : index
    %c4_706 = arith.constant 4 : index
    %c0_707 = arith.constant 0 : index
    %c1_708 = arith.constant 1 : index
    %286 = vector.load %arg1[%c0_703, %c0_704, %c0_705, %c4_706, %c0_707, %c1_708] : memref<1x2x2x11x8x8xf32, #tpu.memory_space<vmem>>, vector<1x1x1x1x8x5xf32>
    %287 = vector.shape_cast %286 : vector<1x1x1x1x8x5xf32> to vector<8x5xf32>
    %c0_709 = arith.constant 0 : index
    %c0_710 = arith.constant 0 : index
    %c1_711 = arith.constant 1 : index
    %c4_712 = arith.constant 4 : index
    %c0_713 = arith.constant 0 : index
    %c1_714 = arith.constant 1 : index
    %288 = vector.load %arg1[%c0_709, %c0_710, %c1_711, %c4_712, %c0_713, %c1_714] : memref<1x2x2x11x8x8xf32, #tpu.memory_space<vmem>>, vector<1x1x1x1x8x5xf32>
    %289 = vector.shape_cast %288 : vector<1x1x1x1x8x5xf32> to vector<8x5xf32>
    %c0_715 = arith.constant 0 : index
    %c0_716 = arith.constant 0 : index
    %c0_717 = arith.constant 0 : index
    %c4_718 = arith.constant 4 : index
    %c0_719 = arith.constant 0 : index
    %c2_720 = arith.constant 2 : index
    %290 = vector.load %arg1[%c0_715, %c0_716, %c0_717, %c4_718, %c0_719, %c2_720] : memref<1x2x2x11x8x8xf32, #tpu.memory_space<vmem>>, vector<1x1x1x1x8x5xf32>
    %291 = vector.shape_cast %290 : vector<1x1x1x1x8x5xf32> to vector<8x5xf32>
    %c0_721 = arith.constant 0 : index
    %c0_722 = arith.constant 0 : index
    %c1_723 = arith.constant 1 : index
    %c4_724 = arith.constant 4 : index
    %c0_725 = arith.constant 0 : index
    %c2_726 = arith.constant 2 : index
    %292 = vector.load %arg1[%c0_721, %c0_722, %c1_723, %c4_724, %c0_725, %c2_726] : memref<1x2x2x11x8x8xf32, #tpu.memory_space<vmem>>, vector<1x1x1x1x8x5xf32>
    %293 = vector.shape_cast %292 : vector<1x1x1x1x8x5xf32> to vector<8x5xf32>
    %c0_727 = arith.constant 0 : index
    %c0_728 = arith.constant 0 : index
    %c0_729 = arith.constant 0 : index
    %c4_730 = arith.constant 4 : index
    %c0_731 = arith.constant 0 : index
    %c3_732 = arith.constant 3 : index
    %294 = vector.load %arg1[%c0_727, %c0_728, %c0_729, %c4_730, %c0_731, %c3_732] : memref<1x2x2x11x8x8xf32, #tpu.memory_space<vmem>>, vector<1x1x1x1x8x5xf32>
    %295 = vector.shape_cast %294 : vector<1x1x1x1x8x5xf32> to vector<8x5xf32>
    %c0_733 = arith.constant 0 : index
    %c1_734 = arith.constant 1 : index
    %c0_735 = arith.constant 0 : index
    %c4_736 = arith.constant 4 : index
    %c0_737 = arith.constant 0 : index
    %c0_738 = arith.constant 0 : index
    %296 = vector.load %arg1[%c0_733, %c1_734, %c0_735, %c4_736, %c0_737, %c0_738] : memref<1x2x2x11x8x8xf32, #tpu.memory_space<vmem>>, vector<1x1x1x1x8x5xf32>
    %297 = vector.shape_cast %296 : vector<1x1x1x1x8x5xf32> to vector<8x5xf32>
    %c0_739 = arith.constant 0 : index
    %c1_740 = arith.constant 1 : index
    %c1_741 = arith.constant 1 : index
    %c4_742 = arith.constant 4 : index
    %c0_743 = arith.constant 0 : index
    %c0_744 = arith.constant 0 : index
    %298 = vector.load %arg1[%c0_739, %c1_740, %c1_741, %c4_742, %c0_743, %c0_744] : memref<1x2x2x11x8x8xf32, #tpu.memory_space<vmem>>, vector<1x1x1x1x8x5xf32>
    %299 = vector.shape_cast %298 : vector<1x1x1x1x8x5xf32> to vector<8x5xf32>
    %c0_745 = arith.constant 0 : index
    %c1_746 = arith.constant 1 : index
    %c0_747 = arith.constant 0 : index
    %c4_748 = arith.constant 4 : index
    %c0_749 = arith.constant 0 : index
    %c1_750 = arith.constant 1 : index
    %300 = vector.load %arg1[%c0_745, %c1_746, %c0_747, %c4_748, %c0_749, %c1_750] : memref<1x2x2x11x8x8xf32, #tpu.memory_space<vmem>>, vector<1x1x1x1x8x5xf32>
    %301 = vector.shape_cast %300 : vector<1x1x1x1x8x5xf32> to vector<8x5xf32>
    %c0_751 = arith.constant 0 : index
    %c1_752 = arith.constant 1 : index
    %c1_753 = arith.constant 1 : index
    %c4_754 = arith.constant 4 : index
    %c0_755 = arith.constant 0 : index
    %c1_756 = arith.constant 1 : index
    %302 = vector.load %arg1[%c0_751, %c1_752, %c1_753, %c4_754, %c0_755, %c1_756] : memref<1x2x2x11x8x8xf32, #tpu.memory_space<vmem>>, vector<1x1x1x1x8x5xf32>
    %303 = vector.shape_cast %302 : vector<1x1x1x1x8x5xf32> to vector<8x5xf32>
    %c0_757 = arith.constant 0 : index
    %c1_758 = arith.constant 1 : index
    %c0_759 = arith.constant 0 : index
    %c4_760 = arith.constant 4 : index
    %c0_761 = arith.constant 0 : index
    %c2_762 = arith.constant 2 : index
    %304 = vector.load %arg1[%c0_757, %c1_758, %c0_759, %c4_760, %c0_761, %c2_762] : memref<1x2x2x11x8x8xf32, #tpu.memory_space<vmem>>, vector<1x1x1x1x8x5xf32>
    %305 = vector.shape_cast %304 : vector<1x1x1x1x8x5xf32> to vector<8x5xf32>
    %c0_763 = arith.constant 0 : index
    %c1_764 = arith.constant 1 : index
    %c1_765 = arith.constant 1 : index
    %c4_766 = arith.constant 4 : index
    %c0_767 = arith.constant 0 : index
    %c2_768 = arith.constant 2 : index
    %306 = vector.load %arg1[%c0_763, %c1_764, %c1_765, %c4_766, %c0_767, %c2_768] : memref<1x2x2x11x8x8xf32, #tpu.memory_space<vmem>>, vector<1x1x1x1x8x5xf32>
    %307 = vector.shape_cast %306 : vector<1x1x1x1x8x5xf32> to vector<8x5xf32>
    %c0_769 = arith.constant 0 : index
    %c1_770 = arith.constant 1 : index
    %c0_771 = arith.constant 0 : index
    %c4_772 = arith.constant 4 : index
    %c0_773 = arith.constant 0 : index
    %c3_774 = arith.constant 3 : index
    %308 = vector.load %arg1[%c0_769, %c1_770, %c0_771, %c4_772, %c0_773, %c3_774] : memref<1x2x2x11x8x8xf32, #tpu.memory_space<vmem>>, vector<1x1x1x1x8x5xf32>
    %309 = vector.shape_cast %308 : vector<1x1x1x1x8x5xf32> to vector<8x5xf32>
    %c0_775 = arith.constant 0 : index
    %c0_776 = arith.constant 0 : index
    %c0_777 = arith.constant 0 : index
    %c5_778 = arith.constant 5 : index
    %c0_779 = arith.constant 0 : index
    %c0_780 = arith.constant 0 : index
    %310 = vector.load %arg1[%c0_775, %c0_776, %c0_777, %c5_778, %c0_779, %c0_780] : memref<1x2x2x11x8x8xf32, #tpu.memory_space<vmem>>, vector<1x1x1x1x8x5xf32>
    %311 = vector.shape_cast %310 : vector<1x1x1x1x8x5xf32> to vector<8x5xf32>
    %c0_781 = arith.constant 0 : index
    %c0_782 = arith.constant 0 : index
    %c1_783 = arith.constant 1 : index
    %c5_784 = arith.constant 5 : index
    %c0_785 = arith.constant 0 : index
    %c0_786 = arith.constant 0 : index
    %312 = vector.load %arg1[%c0_781, %c0_782, %c1_783, %c5_784, %c0_785, %c0_786] : memref<1x2x2x11x8x8xf32, #tpu.memory_space<vmem>>, vector<1x1x1x1x8x5xf32>
    %313 = vector.shape_cast %312 : vector<1x1x1x1x8x5xf32> to vector<8x5xf32>
    %c0_787 = arith.constant 0 : index
    %c0_788 = arith.constant 0 : index
    %c0_789 = arith.constant 0 : index
    %c5_790 = arith.constant 5 : index
    %c0_791 = arith.constant 0 : index
    %c1_792 = arith.constant 1 : index
    %314 = vector.load %arg1[%c0_787, %c0_788, %c0_789, %c5_790, %c0_791, %c1_792] : memref<1x2x2x11x8x8xf32, #tpu.memory_space<vmem>>, vector<1x1x1x1x8x5xf32>
    %315 = vector.shape_cast %314 : vector<1x1x1x1x8x5xf32> to vector<8x5xf32>
    %c0_793 = arith.constant 0 : index
    %c0_794 = arith.constant 0 : index
    %c1_795 = arith.constant 1 : index
    %c5_796 = arith.constant 5 : index
    %c0_797 = arith.constant 0 : index
    %c1_798 = arith.constant 1 : index
    %316 = vector.load %arg1[%c0_793, %c0_794, %c1_795, %c5_796, %c0_797, %c1_798] : memref<1x2x2x11x8x8xf32, #tpu.memory_space<vmem>>, vector<1x1x1x1x8x5xf32>
    %317 = vector.shape_cast %316 : vector<1x1x1x1x8x5xf32> to vector<8x5xf32>
    %c0_799 = arith.constant 0 : index
    %c0_800 = arith.constant 0 : index
    %c0_801 = arith.constant 0 : index
    %c5_802 = arith.constant 5 : index
    %c0_803 = arith.constant 0 : index
    %c2_804 = arith.constant 2 : index
    %318 = vector.load %arg1[%c0_799, %c0_800, %c0_801, %c5_802, %c0_803, %c2_804] : memref<1x2x2x11x8x8xf32, #tpu.memory_space<vmem>>, vector<1x1x1x1x8x5xf32>
    %319 = vector.shape_cast %318 : vector<1x1x1x1x8x5xf32> to vector<8x5xf32>
    %c0_805 = arith.constant 0 : index
    %c0_806 = arith.constant 0 : index
    %c1_807 = arith.constant 1 : index
    %c5_808 = arith.constant 5 : index
    %c0_809 = arith.constant 0 : index
    %c2_810 = arith.constant 2 : index
    %320 = vector.load %arg1[%c0_805, %c0_806, %c1_807, %c5_808, %c0_809, %c2_810] : memref<1x2x2x11x8x8xf32, #tpu.memory_space<vmem>>, vector<1x1x1x1x8x5xf32>
    %321 = vector.shape_cast %320 : vector<1x1x1x1x8x5xf32> to vector<8x5xf32>
    %c0_811 = arith.constant 0 : index
    %c0_812 = arith.constant 0 : index
    %c0_813 = arith.constant 0 : index
    %c5_814 = arith.constant 5 : index
    %c0_815 = arith.constant 0 : index
    %c3_816 = arith.constant 3 : index
    %322 = vector.load %arg1[%c0_811, %c0_812, %c0_813, %c5_814, %c0_815, %c3_816] : memref<1x2x2x11x8x8xf32, #tpu.memory_space<vmem>>, vector<1x1x1x1x8x5xf32>
    %323 = vector.shape_cast %322 : vector<1x1x1x1x8x5xf32> to vector<8x5xf32>
    %c0_817 = arith.constant 0 : index
    %c1_818 = arith.constant 1 : index
    %c0_819 = arith.constant 0 : index
    %c5_820 = arith.constant 5 : index
    %c0_821 = arith.constant 0 : index
    %c0_822 = arith.constant 0 : index
    %324 = vector.load %arg1[%c0_817, %c1_818, %c0_819, %c5_820, %c0_821, %c0_822] : memref<1x2x2x11x8x8xf32, #tpu.memory_space<vmem>>, vector<1x1x1x1x8x5xf32>
    %325 = vector.shape_cast %324 : vector<1x1x1x1x8x5xf32> to vector<8x5xf32>
    %c0_823 = arith.constant 0 : index
    %c1_824 = arith.constant 1 : index
    %c1_825 = arith.constant 1 : index
    %c5_826 = arith.constant 5 : index
    %c0_827 = arith.constant 0 : index
    %c0_828 = arith.constant 0 : index
    %326 = vector.load %arg1[%c0_823, %c1_824, %c1_825, %c5_826, %c0_827, %c0_828] : memref<1x2x2x11x8x8xf32, #tpu.memory_space<vmem>>, vector<1x1x1x1x8x5xf32>
    %327 = vector.shape_cast %326 : vector<1x1x1x1x8x5xf32> to vector<8x5xf32>
    %c0_829 = arith.constant 0 : index
    %c1_830 = arith.constant 1 : index
    %c0_831 = arith.constant 0 : index
    %c5_832 = arith.constant 5 : index
    %c0_833 = arith.constant 0 : index
    %c1_834 = arith.constant 1 : index
    %328 = vector.load %arg1[%c0_829, %c1_830, %c0_831, %c5_832, %c0_833, %c1_834] : memref<1x2x2x11x8x8xf32, #tpu.memory_space<vmem>>, vector<1x1x1x1x8x5xf32>
    %329 = vector.shape_cast %328 : vector<1x1x1x1x8x5xf32> to vector<8x5xf32>
    %c0_835 = arith.constant 0 : index
    %c1_836 = arith.constant 1 : index
    %c1_837 = arith.constant 1 : index
    %c5_838 = arith.constant 5 : index
    %c0_839 = arith.constant 0 : index
    %c1_840 = arith.constant 1 : index
    %330 = vector.load %arg1[%c0_835, %c1_836, %c1_837, %c5_838, %c0_839, %c1_840] : memref<1x2x2x11x8x8xf32, #tpu.memory_space<vmem>>, vector<1x1x1x1x8x5xf32>
    %331 = vector.shape_cast %330 : vector<1x1x1x1x8x5xf32> to vector<8x5xf32>
    %c0_841 = arith.constant 0 : index
    %c1_842 = arith.constant 1 : index
    %c0_843 = arith.constant 0 : index
    %c5_844 = arith.constant 5 : index
    %c0_845 = arith.constant 0 : index
    %c2_846 = arith.constant 2 : index
    %332 = vector.load %arg1[%c0_841, %c1_842, %c0_843, %c5_844, %c0_845, %c2_846] : memref<1x2x2x11x8x8xf32, #tpu.memory_space<vmem>>, vector<1x1x1x1x8x5xf32>
    %333 = vector.shape_cast %332 : vector<1x1x1x1x8x5xf32> to vector<8x5xf32>
    %c0_847 = arith.constant 0 : index
    %c1_848 = arith.constant 1 : index
    %c1_849 = arith.constant 1 : index
    %c5_850 = arith.constant 5 : index
    %c0_851 = arith.constant 0 : index
    %c2_852 = arith.constant 2 : index
    %334 = vector.load %arg1[%c0_847, %c1_848, %c1_849, %c5_850, %c0_851, %c2_852] : memref<1x2x2x11x8x8xf32, #tpu.memory_space<vmem>>, vector<1x1x1x1x8x5xf32>
    %335 = vector.shape_cast %334 : vector<1x1x1x1x8x5xf32> to vector<8x5xf32>
    %c0_853 = arith.constant 0 : index
    %c1_854 = arith.constant 1 : index
    %c0_855 = arith.constant 0 : index
    %c5_856 = arith.constant 5 : index
    %c0_857 = arith.constant 0 : index
    %c3_858 = arith.constant 3 : index
    %336 = vector.load %arg1[%c0_853, %c1_854, %c0_855, %c5_856, %c0_857, %c3_858] : memref<1x2x2x11x8x8xf32, #tpu.memory_space<vmem>>, vector<1x1x1x1x8x5xf32>
    %337 = vector.shape_cast %336 : vector<1x1x1x1x8x5xf32> to vector<8x5xf32>
    %338 = tpu.concatenate %283, %285, %287, %289, %291, %293, %295, %297, %299, %301, %303, %305, %307, %309, %311, %313 in 0 : vector<8x5xf32>, vector<8x5xf32>, vector<8x5xf32>, vector<8x5xf32>, vector<8x5xf32>, vector<8x5xf32>, vector<8x5xf32>, vector<8x5xf32>, vector<8x5xf32>, vector<8x5xf32>, vector<8x5xf32>, vector<8x5xf32>, vector<8x5xf32>, vector<8x5xf32>, vector<8x5xf32>, vector<8x5xf32> -> vector<128x5xf32>
    %339 = tpu.concatenate %315, %317, %319, %321, %323, %325, %327, %329, %331, %333, %335, %337 in 0 : vector<8x5xf32>, vector<8x5xf32>, vector<8x5xf32>, vector<8x5xf32>, vector<8x5xf32>, vector<8x5xf32>, vector<8x5xf32>, vector<8x5xf32>, vector<8x5xf32>, vector<8x5xf32>, vector<8x5xf32>, vector<8x5xf32> -> vector<96x5xf32>
    %340 = tpu.concatenate %338, %339 in 0 : vector<128x5xf32>, vector<96x5xf32> -> vector<224x5xf32>
    %cst_859 = arith.constant dense<0.000000e+00> : vector<10x5xf32>
    %341 = tpu.matmul %0, %340, %cst_859 {dimension_numbers = #tpu.dot_dimension_numbers<[1], [0], [0], [1], [0, 0, 1, 1], [], []>} : vector<10x224xf32>, vector<224x5xf32>, vector<10x5xf32> -> vector<10x5xf32>
    %342 = vector.broadcast %1 : vector<10x1xf32> to vector<10x5xf32>
    %343 = arith.addf %341, %342 : vector<10x5xf32>
    %cst_860 = arith.constant 0.000000e+00 : f32
    %344 = vector.broadcast %cst_860 : f32 to vector<10x5xf32>
    %345 = arith.cmpf ogt, %343, %344 : vector<10x5xf32>
    %cst_861 = arith.constant -2.57949209 : f32
    %346 = vector.broadcast %cst_861 : f32 to vector<10x5xf32>
    %347 = arith.mulf %343, %346 : vector<10x5xf32>
    %348 = arith.select %345, %343, %347 : vector<10x5xi1>, vector<10x5xf32>
    %c0_862 = arith.constant 0 : index
    %c0_863 = arith.constant 0 : index
    %c20 = arith.constant 20 : index
    %349 = vector.load %arg4[%c0_862, %c0_863, %c20] : memref<1x10x50xf32, #tpu.memory_space<vmem>>, vector<1x10x5xf32>
    %350 = vector.shape_cast %349 : vector<1x10x5xf32> to vector<10x5xf32>
    %351 = vector.shape_cast %348 : vector<10x5xf32> to vector<1x10x5xf32>
    tpu.vector_store %arg4[%c0_862, %c0_863, %c20], %351 {strides = array<i32>} : memref<1x10x50xf32, #tpu.memory_space<vmem>>, vector<1x10x5xf32>,
    %c0_864 = arith.constant 0 : index
    %c0_865 = arith.constant 0 : index
    %c0_866 = arith.constant 0 : index
    %c5_867 = arith.constant 5 : index
    %c0_868 = arith.constant 0 : index
    %c0_869 = arith.constant 0 : index
    %352 = vector.load %arg1[%c0_864, %c0_865, %c0_866, %c5_867, %c0_868, %c0_869] : memref<1x2x2x11x8x8xf32, #tpu.memory_space<vmem>>, vector<1x1x1x1x8x5xf32>
    %353 = vector.shape_cast %352 : vector<1x1x1x1x8x5xf32> to vector<8x5xf32>
    %c0_870 = arith.constant 0 : index
    %c0_871 = arith.constant 0 : index
    %c1_872 = arith.constant 1 : index
    %c5_873 = arith.constant 5 : index
    %c0_874 = arith.constant 0 : index
    %c0_875 = arith.constant 0 : index
    %354 = vector.load %arg1[%c0_870, %c0_871, %c1_872, %c5_873, %c0_874, %c0_875] : memref<1x2x2x11x8x8xf32, #tpu.memory_space<vmem>>, vector<1x1x1x1x8x5xf32>
    %355 = vector.shape_cast %354 : vector<1x1x1x1x8x5xf32> to vector<8x5xf32>
    %c0_876 = arith.constant 0 : index
    %c0_877 = arith.constant 0 : index
    %c0_878 = arith.constant 0 : index
    %c5_879 = arith.constant 5 : index
    %c0_880 = arith.constant 0 : index
    %c1_881 = arith.constant 1 : index
    %356 = vector.load %arg1[%c0_876, %c0_877, %c0_878, %c5_879, %c0_880, %c1_881] : memref<1x2x2x11x8x8xf32, #tpu.memory_space<vmem>>, vector<1x1x1x1x8x5xf32>
    %357 = vector.shape_cast %356 : vector<1x1x1x1x8x5xf32> to vector<8x5xf32>
    %c0_882 = arith.constant 0 : index
    %c0_883 = arith.constant 0 : index
    %c1_884 = arith.constant 1 : index
    %c5_885 = arith.constant 5 : index
    %c0_886 = arith.constant 0 : index
    %c1_887 = arith.constant 1 : index
    %358 = vector.load %arg1[%c0_882, %c0_883, %c1_884, %c5_885, %c0_886, %c1_887] : memref<1x2x2x11x8x8xf32, #tpu.memory_space<vmem>>, vector<1x1x1x1x8x5xf32>
    %359 = vector.shape_cast %358 : vector<1x1x1x1x8x5xf32> to vector<8x5xf32>
    %c0_888 = arith.constant 0 : index
    %c0_889 = arith.constant 0 : index
    %c0_890 = arith.constant 0 : index
    %c5_891 = arith.constant 5 : index
    %c0_892 = arith.constant 0 : index
    %c2_893 = arith.constant 2 : index
    %360 = vector.load %arg1[%c0_888, %c0_889, %c0_890, %c5_891, %c0_892, %c2_893] : memref<1x2x2x11x8x8xf32, #tpu.memory_space<vmem>>, vector<1x1x1x1x8x5xf32>
    %361 = vector.shape_cast %360 : vector<1x1x1x1x8x5xf32> to vector<8x5xf32>
    %c0_894 = arith.constant 0 : index
    %c0_895 = arith.constant 0 : index
    %c1_896 = arith.constant 1 : index
    %c5_897 = arith.constant 5 : index
    %c0_898 = arith.constant 0 : index
    %c2_899 = arith.constant 2 : index
    %362 = vector.load %arg1[%c0_894, %c0_895, %c1_896, %c5_897, %c0_898, %c2_899] : memref<1x2x2x11x8x8xf32, #tpu.memory_space<vmem>>, vector<1x1x1x1x8x5xf32>
    %363 = vector.shape_cast %362 : vector<1x1x1x1x8x5xf32> to vector<8x5xf32>
    %c0_900 = arith.constant 0 : index
    %c0_901 = arith.constant 0 : index
    %c0_902 = arith.constant 0 : index
    %c5_903 = arith.constant 5 : index
    %c0_904 = arith.constant 0 : index
    %c3_905 = arith.constant 3 : index
    %364 = vector.load %arg1[%c0_900, %c0_901, %c0_902, %c5_903, %c0_904, %c3_905] : memref<1x2x2x11x8x8xf32, #tpu.memory_space<vmem>>, vector<1x1x1x1x8x5xf32>
    %365 = vector.shape_cast %364 : vector<1x1x1x1x8x5xf32> to vector<8x5xf32>
    %c0_906 = arith.constant 0 : index
    %c1_907 = arith.constant 1 : index
    %c0_908 = arith.constant 0 : index
    %c5_909 = arith.constant 5 : index
    %c0_910 = arith.constant 0 : index
    %c0_911 = arith.constant 0 : index
    %366 = vector.load %arg1[%c0_906, %c1_907, %c0_908, %c5_909, %c0_910, %c0_911] : memref<1x2x2x11x8x8xf32, #tpu.memory_space<vmem>>, vector<1x1x1x1x8x5xf32>
    %367 = vector.shape_cast %366 : vector<1x1x1x1x8x5xf32> to vector<8x5xf32>
    %c0_912 = arith.constant 0 : index
    %c1_913 = arith.constant 1 : index
    %c1_914 = arith.constant 1 : index
    %c5_915 = arith.constant 5 : index
    %c0_916 = arith.constant 0 : index
    %c0_917 = arith.constant 0 : index
    %368 = vector.load %arg1[%c0_912, %c1_913, %c1_914, %c5_915, %c0_916, %c0_917] : memref<1x2x2x11x8x8xf32, #tpu.memory_space<vmem>>, vector<1x1x1x1x8x5xf32>
    %369 = vector.shape_cast %368 : vector<1x1x1x1x8x5xf32> to vector<8x5xf32>
    %c0_918 = arith.constant 0 : index
    %c1_919 = arith.constant 1 : index
    %c0_920 = arith.constant 0 : index
    %c5_921 = arith.constant 5 : index
    %c0_922 = arith.constant 0 : index
    %c1_923 = arith.constant 1 : index
    %370 = vector.load %arg1[%c0_918, %c1_919, %c0_920, %c5_921, %c0_922, %c1_923] : memref<1x2x2x11x8x8xf32, #tpu.memory_space<vmem>>, vector<1x1x1x1x8x5xf32>
    %371 = vector.shape_cast %370 : vector<1x1x1x1x8x5xf32> to vector<8x5xf32>
    %c0_924 = arith.constant 0 : index
    %c1_925 = arith.constant 1 : index
    %c1_926 = arith.constant 1 : index
    %c5_927 = arith.constant 5 : index
    %c0_928 = arith.constant 0 : index
    %c1_929 = arith.constant 1 : index
    %372 = vector.load %arg1[%c0_924, %c1_925, %c1_926, %c5_927, %c0_928, %c1_929] : memref<1x2x2x11x8x8xf32, #tpu.memory_space<vmem>>, vector<1x1x1x1x8x5xf32>
    %373 = vector.shape_cast %372 : vector<1x1x1x1x8x5xf32> to vector<8x5xf32>
    %c0_930 = arith.constant 0 : index
    %c1_931 = arith.constant 1 : index
    %c0_932 = arith.constant 0 : index
    %c5_933 = arith.constant 5 : index
    %c0_934 = arith.constant 0 : index
    %c2_935 = arith.constant 2 : index
    %374 = vector.load %arg1[%c0_930, %c1_931, %c0_932, %c5_933, %c0_934, %c2_935] : memref<1x2x2x11x8x8xf32, #tpu.memory_space<vmem>>, vector<1x1x1x1x8x5xf32>
    %375 = vector.shape_cast %374 : vector<1x1x1x1x8x5xf32> to vector<8x5xf32>
    %c0_936 = arith.constant 0 : index
    %c1_937 = arith.constant 1 : index
    %c1_938 = arith.constant 1 : index
    %c5_939 = arith.constant 5 : index
    %c0_940 = arith.constant 0 : index
    %c2_941 = arith.constant 2 : index
    %376 = vector.load %arg1[%c0_936, %c1_937, %c1_938, %c5_939, %c0_940, %c2_941] : memref<1x2x2x11x8x8xf32, #tpu.memory_space<vmem>>, vector<1x1x1x1x8x5xf32>
    %377 = vector.shape_cast %376 : vector<1x1x1x1x8x5xf32> to vector<8x5xf32>
    %c0_942 = arith.constant 0 : index
    %c1_943 = arith.constant 1 : index
    %c0_944 = arith.constant 0 : index
    %c5_945 = arith.constant 5 : index
    %c0_946 = arith.constant 0 : index
    %c3_947 = arith.constant 3 : index
    %378 = vector.load %arg1[%c0_942, %c1_943, %c0_944, %c5_945, %c0_946, %c3_947] : memref<1x2x2x11x8x8xf32, #tpu.memory_space<vmem>>, vector<1x1x1x1x8x5xf32>
    %379 = vector.shape_cast %378 : vector<1x1x1x1x8x5xf32> to vector<8x5xf32>
    %c0_948 = arith.constant 0 : index
    %c0_949 = arith.constant 0 : index
    %c0_950 = arith.constant 0 : index
    %c6 = arith.constant 6 : index
    %c0_951 = arith.constant 0 : index
    %c0_952 = arith.constant 0 : index
    %380 = vector.load %arg1[%c0_948, %c0_949, %c0_950, %c6, %c0_951, %c0_952] : memref<1x2x2x11x8x8xf32, #tpu.memory_space<vmem>>, vector<1x1x1x1x8x5xf32>
    %381 = vector.shape_cast %380 : vector<1x1x1x1x8x5xf32> to vector<8x5xf32>
    %c0_953 = arith.constant 0 : index
    %c0_954 = arith.constant 0 : index
    %c1_955 = arith.constant 1 : index
    %c6_956 = arith.constant 6 : index
    %c0_957 = arith.constant 0 : index
    %c0_958 = arith.constant 0 : index
    %382 = vector.load %arg1[%c0_953, %c0_954, %c1_955, %c6_956, %c0_957, %c0_958] : memref<1x2x2x11x8x8xf32, #tpu.memory_space<vmem>>, vector<1x1x1x1x8x5xf32>
    %383 = vector.shape_cast %382 : vector<1x1x1x1x8x5xf32> to vector<8x5xf32>
    %c0_959 = arith.constant 0 : index
    %c0_960 = arith.constant 0 : index
    %c0_961 = arith.constant 0 : index
    %c6_962 = arith.constant 6 : index
    %c0_963 = arith.constant 0 : index
    %c1_964 = arith.constant 1 : index
    %384 = vector.load %arg1[%c0_959, %c0_960, %c0_961, %c6_962, %c0_963, %c1_964] : memref<1x2x2x11x8x8xf32, #tpu.memory_space<vmem>>, vector<1x1x1x1x8x5xf32>
    %385 = vector.shape_cast %384 : vector<1x1x1x1x8x5xf32> to vector<8x5xf32>
    %c0_965 = arith.constant 0 : index
    %c0_966 = arith.constant 0 : index
    %c1_967 = arith.constant 1 : index
    %c6_968 = arith.constant 6 : index
    %c0_969 = arith.constant 0 : index
    %c1_970 = arith.constant 1 : index
    %386 = vector.load %arg1[%c0_965, %c0_966, %c1_967, %c6_968, %c0_969, %c1_970] : memref<1x2x2x11x8x8xf32, #tpu.memory_space<vmem>>, vector<1x1x1x1x8x5xf32>
    %387 = vector.shape_cast %386 : vector<1x1x1x1x8x5xf32> to vector<8x5xf32>
    %c0_971 = arith.constant 0 : index
    %c0_972 = arith.constant 0 : index
    %c0_973 = arith.constant 0 : index
    %c6_974 = arith.constant 6 : index
    %c0_975 = arith.constant 0 : index
    %c2_976 = arith.constant 2 : index
    %388 = vector.load %arg1[%c0_971, %c0_972, %c0_973, %c6_974, %c0_975, %c2_976] : memref<1x2x2x11x8x8xf32, #tpu.memory_space<vmem>>, vector<1x1x1x1x8x5xf32>
    %389 = vector.shape_cast %388 : vector<1x1x1x1x8x5xf32> to vector<8x5xf32>
    %c0_977 = arith.constant 0 : index
    %c0_978 = arith.constant 0 : index
    %c1_979 = arith.constant 1 : index
    %c6_980 = arith.constant 6 : index
    %c0_981 = arith.constant 0 : index
    %c2_982 = arith.constant 2 : index
    %390 = vector.load %arg1[%c0_977, %c0_978, %c1_979, %c6_980, %c0_981, %c2_982] : memref<1x2x2x11x8x8xf32, #tpu.memory_space<vmem>>, vector<1x1x1x1x8x5xf32>
    %391 = vector.shape_cast %390 : vector<1x1x1x1x8x5xf32> to vector<8x5xf32>
    %c0_983 = arith.constant 0 : index
    %c0_984 = arith.constant 0 : index
    %c0_985 = arith.constant 0 : index
    %c6_986 = arith.constant 6 : index
    %c0_987 = arith.constant 0 : index
    %c3_988 = arith.constant 3 : index
    %392 = vector.load %arg1[%c0_983, %c0_984, %c0_985, %c6_986, %c0_987, %c3_988] : memref<1x2x2x11x8x8xf32, #tpu.memory_space<vmem>>, vector<1x1x1x1x8x5xf32>
    %393 = vector.shape_cast %392 : vector<1x1x1x1x8x5xf32> to vector<8x5xf32>
    %c0_989 = arith.constant 0 : index
    %c1_990 = arith.constant 1 : index
    %c0_991 = arith.constant 0 : index
    %c6_992 = arith.constant 6 : index
    %c0_993 = arith.constant 0 : index
    %c0_994 = arith.constant 0 : index
    %394 = vector.load %arg1[%c0_989, %c1_990, %c0_991, %c6_992, %c0_993, %c0_994] : memref<1x2x2x11x8x8xf32, #tpu.memory_space<vmem>>, vector<1x1x1x1x8x5xf32>
    %395 = vector.shape_cast %394 : vector<1x1x1x1x8x5xf32> to vector<8x5xf32>
    %c0_995 = arith.constant 0 : index
    %c1_996 = arith.constant 1 : index
    %c1_997 = arith.constant 1 : index
    %c6_998 = arith.constant 6 : index
    %c0_999 = arith.constant 0 : index
    %c0_1000 = arith.constant 0 : index
    %396 = vector.load %arg1[%c0_995, %c1_996, %c1_997, %c6_998, %c0_999, %c0_1000] : memref<1x2x2x11x8x8xf32, #tpu.memory_space<vmem>>, vector<1x1x1x1x8x5xf32>
    %397 = vector.shape_cast %396 : vector<1x1x1x1x8x5xf32> to vector<8x5xf32>
    %c0_1001 = arith.constant 0 : index
    %c1_1002 = arith.constant 1 : index
    %c0_1003 = arith.constant 0 : index
    %c6_1004 = arith.constant 6 : index
    %c0_1005 = arith.constant 0 : index
    %c1_1006 = arith.constant 1 : index
    %398 = vector.load %arg1[%c0_1001, %c1_1002, %c0_1003, %c6_1004, %c0_1005, %c1_1006] : memref<1x2x2x11x8x8xf32, #tpu.memory_space<vmem>>, vector<1x1x1x1x8x5xf32>
    %399 = vector.shape_cast %398 : vector<1x1x1x1x8x5xf32> to vector<8x5xf32>
    %c0_1007 = arith.constant 0 : index
    %c1_1008 = arith.constant 1 : index
    %c1_1009 = arith.constant 1 : index
    %c6_1010 = arith.constant 6 : index
    %c0_1011 = arith.constant 0 : index
    %c1_1012 = arith.constant 1 : index
    %400 = vector.load %arg1[%c0_1007, %c1_1008, %c1_1009, %c6_1010, %c0_1011, %c1_1012] : memref<1x2x2x11x8x8xf32, #tpu.memory_space<vmem>>, vector<1x1x1x1x8x5xf32>
    %401 = vector.shape_cast %400 : vector<1x1x1x1x8x5xf32> to vector<8x5xf32>
    %c0_1013 = arith.constant 0 : index
    %c1_1014 = arith.constant 1 : index
    %c0_1015 = arith.constant 0 : index
    %c6_1016 = arith.constant 6 : index
    %c0_1017 = arith.constant 0 : index
    %c2_1018 = arith.constant 2 : index
    %402 = vector.load %arg1[%c0_1013, %c1_1014, %c0_1015, %c6_1016, %c0_1017, %c2_1018] : memref<1x2x2x11x8x8xf32, #tpu.memory_space<vmem>>, vector<1x1x1x1x8x5xf32>
    %403 = vector.shape_cast %402 : vector<1x1x1x1x8x5xf32> to vector<8x5xf32>
    %c0_1019 = arith.constant 0 : index
    %c1_1020 = arith.constant 1 : index
    %c1_1021 = arith.constant 1 : index
    %c6_1022 = arith.constant 6 : index
    %c0_1023 = arith.constant 0 : index
    %c2_1024 = arith.constant 2 : index
    %404 = vector.load %arg1[%c0_1019, %c1_1020, %c1_1021, %c6_1022, %c0_1023, %c2_1024] : memref<1x2x2x11x8x8xf32, #tpu.memory_space<vmem>>, vector<1x1x1x1x8x5xf32>
    %405 = vector.shape_cast %404 : vector<1x1x1x1x8x5xf32> to vector<8x5xf32>
    %c0_1025 = arith.constant 0 : index
    %c1_1026 = arith.constant 1 : index
    %c0_1027 = arith.constant 0 : index
    %c6_1028 = arith.constant 6 : index
    %c0_1029 = arith.constant 0 : index
    %c3_1030 = arith.constant 3 : index
    %406 = vector.load %arg1[%c0_1025, %c1_1026, %c0_1027, %c6_1028, %c0_1029, %c3_1030] : memref<1x2x2x11x8x8xf32, #tpu.memory_space<vmem>>, vector<1x1x1x1x8x5xf32>
    %407 = vector.shape_cast %406 : vector<1x1x1x1x8x5xf32> to vector<8x5xf32>
    %408 = tpu.concatenate %353, %355, %357, %359, %361, %363, %365, %367, %369, %371, %373, %375, %377, %379, %381, %383 in 0 : vector<8x5xf32>, vector<8x5xf32>, vector<8x5xf32>, vector<8x5xf32>, vector<8x5xf32>, vector<8x5xf32>, vector<8x5xf32>, vector<8x5xf32>, vector<8x5xf32>, vector<8x5xf32>, vector<8x5xf32>, vector<8x5xf32>, vector<8x5xf32>, vector<8x5xf32>, vector<8x5xf32>, vector<8x5xf32> -> vector<128x5xf32>
    %409 = tpu.concatenate %385, %387, %389, %391, %393, %395, %397, %399, %401, %403, %405, %407 in 0 : vector<8x5xf32>, vector<8x5xf32>, vector<8x5xf32>, vector<8x5xf32>, vector<8x5xf32>, vector<8x5xf32>, vector<8x5xf32>, vector<8x5xf32>, vector<8x5xf32>, vector<8x5xf32>, vector<8x5xf32>, vector<8x5xf32> -> vector<96x5xf32>
    %410 = tpu.concatenate %408, %409 in 0 : vector<128x5xf32>, vector<96x5xf32> -> vector<224x5xf32>
    %cst_1031 = arith.constant dense<0.000000e+00> : vector<10x5xf32>
    %411 = tpu.matmul %0, %410, %cst_1031 {dimension_numbers = #tpu.dot_dimension_numbers<[1], [0], [0], [1], [0, 0, 1, 1], [], []>} : vector<10x224xf32>, vector<224x5xf32>, vector<10x5xf32> -> vector<10x5xf32>
    %412 = vector.broadcast %1 : vector<10x1xf32> to vector<10x5xf32>
    %413 = arith.addf %411, %412 : vector<10x5xf32>
    %cst_1032 = arith.constant 0.000000e+00 : f32
    %414 = vector.broadcast %cst_1032 : f32 to vector<10x5xf32>
    %415 = arith.cmpf ogt, %413, %414 : vector<10x5xf32>
    %cst_1033 = arith.constant -2.57949209 : f32
    %416 = vector.broadcast %cst_1033 : f32 to vector<10x5xf32>
    %417 = arith.mulf %413, %416 : vector<10x5xf32>
    %418 = arith.select %415, %413, %417 : vector<10x5xi1>, vector<10x5xf32>
    %c0_1034 = arith.constant 0 : index
    %c0_1035 = arith.constant 0 : index
    %c25 = arith.constant 25 : index
    %419 = vector.load %arg4[%c0_1034, %c0_1035, %c25] : memref<1x10x50xf32, #tpu.memory_space<vmem>>, vector<1x10x5xf32>
    %420 = vector.shape_cast %419 : vector<1x10x5xf32> to vector<10x5xf32>
    %421 = vector.shape_cast %418 : vector<10x5xf32> to vector<1x10x5xf32>
    tpu.vector_store %arg4[%c0_1034, %c0_1035, %c25], %421 {strides = array<i32>} : memref<1x10x50xf32, #tpu.memory_space<vmem>>, vector<1x10x5xf32>,
    %c0_1036 = arith.constant 0 : index
    %c0_1037 = arith.constant 0 : index
    %c0_1038 = arith.constant 0 : index
    %c6_1039 = arith.constant 6 : index
    %c0_1040 = arith.constant 0 : index
    %c0_1041 = arith.constant 0 : index
    %422 = vector.load %arg1[%c0_1036, %c0_1037, %c0_1038, %c6_1039, %c0_1040, %c0_1041] : memref<1x2x2x11x8x8xf32, #tpu.memory_space<vmem>>, vector<1x1x1x1x8x5xf32>
    %423 = vector.shape_cast %422 : vector<1x1x1x1x8x5xf32> to vector<8x5xf32>
    %c0_1042 = arith.constant 0 : index
    %c0_1043 = arith.constant 0 : index
    %c1_1044 = arith.constant 1 : index
    %c6_1045 = arith.constant 6 : index
    %c0_1046 = arith.constant 0 : index
    %c0_1047 = arith.constant 0 : index
    %424 = vector.load %arg1[%c0_1042, %c0_1043, %c1_1044, %c6_1045, %c0_1046, %c0_1047] : memref<1x2x2x11x8x8xf32, #tpu.memory_space<vmem>>, vector<1x1x1x1x8x5xf32>
    %425 = vector.shape_cast %424 : vector<1x1x1x1x8x5xf32> to vector<8x5xf32>
    %c0_1048 = arith.constant 0 : index
    %c0_1049 = arith.constant 0 : index
    %c0_1050 = arith.constant 0 : index
    %c6_1051 = arith.constant 6 : index
    %c0_1052 = arith.constant 0 : index
    %c1_1053 = arith.constant 1 : index
    %426 = vector.load %arg1[%c0_1048, %c0_1049, %c0_1050, %c6_1051, %c0_1052, %c1_1053] : memref<1x2x2x11x8x8xf32, #tpu.memory_space<vmem>>, vector<1x1x1x1x8x5xf32>
    %427 = vector.shape_cast %426 : vector<1x1x1x1x8x5xf32> to vector<8x5xf32>
    %c0_1054 = arith.constant 0 : index
    %c0_1055 = arith.constant 0 : index
    %c1_1056 = arith.constant 1 : index
    %c6_1057 = arith.constant 6 : index
    %c0_1058 = arith.constant 0 : index
    %c1_1059 = arith.constant 1 : index
    %428 = vector.load %arg1[%c0_1054, %c0_1055, %c1_1056, %c6_1057, %c0_1058, %c1_1059] : memref<1x2x2x11x8x8xf32, #tpu.memory_space<vmem>>, vector<1x1x1x1x8x5xf32>
    %429 = vector.shape_cast %428 : vector<1x1x1x1x8x5xf32> to vector<8x5xf32>
    %c0_1060 = arith.constant 0 : index
    %c0_1061 = arith.constant 0 : index
    %c0_1062 = arith.constant 0 : index
    %c6_1063 = arith.constant 6 : index
    %c0_1064 = arith.constant 0 : index
    %c2_1065 = arith.constant 2 : index
    %430 = vector.load %arg1[%c0_1060, %c0_1061, %c0_1062, %c6_1063, %c0_1064, %c2_1065] : memref<1x2x2x11x8x8xf32, #tpu.memory_space<vmem>>, vector<1x1x1x1x8x5xf32>
    %431 = vector.shape_cast %430 : vector<1x1x1x1x8x5xf32> to vector<8x5xf32>
    %c0_1066 = arith.constant 0 : index
    %c0_1067 = arith.constant 0 : index
    %c1_1068 = arith.constant 1 : index
    %c6_1069 = arith.constant 6 : index
    %c0_1070 = arith.constant 0 : index
    %c2_1071 = arith.constant 2 : index
    %432 = vector.load %arg1[%c0_1066, %c0_1067, %c1_1068, %c6_1069, %c0_1070, %c2_1071] : memref<1x2x2x11x8x8xf32, #tpu.memory_space<vmem>>, vector<1x1x1x1x8x5xf32>
    %433 = vector.shape_cast %432 : vector<1x1x1x1x8x5xf32> to vector<8x5xf32>
    %c0_1072 = arith.constant 0 : index
    %c0_1073 = arith.constant 0 : index
    %c0_1074 = arith.constant 0 : index
    %c6_1075 = arith.constant 6 : index
    %c0_1076 = arith.constant 0 : index
    %c3_1077 = arith.constant 3 : index
    %434 = vector.load %arg1[%c0_1072, %c0_1073, %c0_1074, %c6_1075, %c0_1076, %c3_1077] : memref<1x2x2x11x8x8xf32, #tpu.memory_space<vmem>>, vector<1x1x1x1x8x5xf32>
    %435 = vector.shape_cast %434 : vector<1x1x1x1x8x5xf32> to vector<8x5xf32>
    %c0_1078 = arith.constant 0 : index
    %c1_1079 = arith.constant 1 : index
    %c0_1080 = arith.constant 0 : index
    %c6_1081 = arith.constant 6 : index
    %c0_1082 = arith.constant 0 : index
    %c0_1083 = arith.constant 0 : index
    %436 = vector.load %arg1[%c0_1078, %c1_1079, %c0_1080, %c6_1081, %c0_1082, %c0_1083] : memref<1x2x2x11x8x8xf32, #tpu.memory_space<vmem>>, vector<1x1x1x1x8x5xf32>
    %437 = vector.shape_cast %436 : vector<1x1x1x1x8x5xf32> to vector<8x5xf32>
    %c0_1084 = arith.constant 0 : index
    %c1_1085 = arith.constant 1 : index
    %c1_1086 = arith.constant 1 : index
    %c6_1087 = arith.constant 6 : index
    %c0_1088 = arith.constant 0 : index
    %c0_1089 = arith.constant 0 : index
    %438 = vector.load %arg1[%c0_1084, %c1_1085, %c1_1086, %c6_1087, %c0_1088, %c0_1089] : memref<1x2x2x11x8x8xf32, #tpu.memory_space<vmem>>, vector<1x1x1x1x8x5xf32>
    %439 = vector.shape_cast %438 : vector<1x1x1x1x8x5xf32> to vector<8x5xf32>
    %c0_1090 = arith.constant 0 : index
    %c1_1091 = arith.constant 1 : index
    %c0_1092 = arith.constant 0 : index
    %c6_1093 = arith.constant 6 : index
    %c0_1094 = arith.constant 0 : index
    %c1_1095 = arith.constant 1 : index
    %440 = vector.load %arg1[%c0_1090, %c1_1091, %c0_1092, %c6_1093, %c0_1094, %c1_1095] : memref<1x2x2x11x8x8xf32, #tpu.memory_space<vmem>>, vector<1x1x1x1x8x5xf32>
    %441 = vector.shape_cast %440 : vector<1x1x1x1x8x5xf32> to vector<8x5xf32>
    %c0_1096 = arith.constant 0 : index
    %c1_1097 = arith.constant 1 : index
    %c1_1098 = arith.constant 1 : index
    %c6_1099 = arith.constant 6 : index
    %c0_1100 = arith.constant 0 : index
    %c1_1101 = arith.constant 1 : index
    %442 = vector.load %arg1[%c0_1096, %c1_1097, %c1_1098, %c6_1099, %c0_1100, %c1_1101] : memref<1x2x2x11x8x8xf32, #tpu.memory_space<vmem>>, vector<1x1x1x1x8x5xf32>
    %443 = vector.shape_cast %442 : vector<1x1x1x1x8x5xf32> to vector<8x5xf32>
    %c0_1102 = arith.constant 0 : index
    %c1_1103 = arith.constant 1 : index
    %c0_1104 = arith.constant 0 : index
    %c6_1105 = arith.constant 6 : index
    %c0_1106 = arith.constant 0 : index
    %c2_1107 = arith.constant 2 : index
    %444 = vector.load %arg1[%c0_1102, %c1_1103, %c0_1104, %c6_1105, %c0_1106, %c2_1107] : memref<1x2x2x11x8x8xf32, #tpu.memory_space<vmem>>, vector<1x1x1x1x8x5xf32>
    %445 = vector.shape_cast %444 : vector<1x1x1x1x8x5xf32> to vector<8x5xf32>
    %c0_1108 = arith.constant 0 : index
    %c1_1109 = arith.constant 1 : index
    %c1_1110 = arith.constant 1 : index
    %c6_1111 = arith.constant 6 : index
    %c0_1112 = arith.constant 0 : index
    %c2_1113 = arith.constant 2 : index
    %446 = vector.load %arg1[%c0_1108, %c1_1109, %c1_1110, %c6_1111, %c0_1112, %c2_1113] : memref<1x2x2x11x8x8xf32, #tpu.memory_space<vmem>>, vector<1x1x1x1x8x5xf32>
    %447 = vector.shape_cast %446 : vector<1x1x1x1x8x5xf32> to vector<8x5xf32>
    %c0_1114 = arith.constant 0 : index
    %c1_1115 = arith.constant 1 : index
    %c0_1116 = arith.constant 0 : index
    %c6_1117 = arith.constant 6 : index
    %c0_1118 = arith.constant 0 : index
    %c3_1119 = arith.constant 3 : index
    %448 = vector.load %arg1[%c0_1114, %c1_1115, %c0_1116, %c6_1117, %c0_1118, %c3_1119] : memref<1x2x2x11x8x8xf32, #tpu.memory_space<vmem>>, vector<1x1x1x1x8x5xf32>
    %449 = vector.shape_cast %448 : vector<1x1x1x1x8x5xf32> to vector<8x5xf32>
    %c0_1120 = arith.constant 0 : index
    %c0_1121 = arith.constant 0 : index
    %c0_1122 = arith.constant 0 : index
    %c7 = arith.constant 7 : index
    %c0_1123 = arith.constant 0 : index
    %c0_1124 = arith.constant 0 : index
    %450 = vector.load %arg1[%c0_1120, %c0_1121, %c0_1122, %c7, %c0_1123, %c0_1124] : memref<1x2x2x11x8x8xf32, #tpu.memory_space<vmem>>, vector<1x1x1x1x8x5xf32>
    %451 = vector.shape_cast %450 : vector<1x1x1x1x8x5xf32> to vector<8x5xf32>
    %c0_1125 = arith.constant 0 : index
    %c0_1126 = arith.constant 0 : index
    %c1_1127 = arith.constant 1 : index
    %c7_1128 = arith.constant 7 : index
    %c0_1129 = arith.constant 0 : index
    %c0_1130 = arith.constant 0 : index
    %452 = vector.load %arg1[%c0_1125, %c0_1126, %c1_1127, %c7_1128, %c0_1129, %c0_1130] : memref<1x2x2x11x8x8xf32, #tpu.memory_space<vmem>>, vector<1x1x1x1x8x5xf32>
    %453 = vector.shape_cast %452 : vector<1x1x1x1x8x5xf32> to vector<8x5xf32>
    %c0_1131 = arith.constant 0 : index
    %c0_1132 = arith.constant 0 : index
    %c0_1133 = arith.constant 0 : index
    %c7_1134 = arith.constant 7 : index
    %c0_1135 = arith.constant 0 : index
    %c1_1136 = arith.constant 1 : index
    %454 = vector.load %arg1[%c0_1131, %c0_1132, %c0_1133, %c7_1134, %c0_1135, %c1_1136] : memref<1x2x2x11x8x8xf32, #tpu.memory_space<vmem>>, vector<1x1x1x1x8x5xf32>
    %455 = vector.shape_cast %454 : vector<1x1x1x1x8x5xf32> to vector<8x5xf32>
    %c0_1137 = arith.constant 0 : index
    %c0_1138 = arith.constant 0 : index
    %c1_1139 = arith.constant 1 : index
    %c7_1140 = arith.constant 7 : index
    %c0_1141 = arith.constant 0 : index
    %c1_1142 = arith.constant 1 : index
    %456 = vector.load %arg1[%c0_1137, %c0_1138, %c1_1139, %c7_1140, %c0_1141, %c1_1142] : memref<1x2x2x11x8x8xf32, #tpu.memory_space<vmem>>, vector<1x1x1x1x8x5xf32>
    %457 = vector.shape_cast %456 : vector<1x1x1x1x8x5xf32> to vector<8x5xf32>
    %c0_1143 = arith.constant 0 : index
    %c0_1144 = arith.constant 0 : index
    %c0_1145 = arith.constant 0 : index
    %c7_1146 = arith.constant 7 : index
    %c0_1147 = arith.constant 0 : index
    %c2_1148 = arith.constant 2 : index
    %458 = vector.load %arg1[%c0_1143, %c0_1144, %c0_1145, %c7_1146, %c0_1147, %c2_1148] : memref<1x2x2x11x8x8xf32, #tpu.memory_space<vmem>>, vector<1x1x1x1x8x5xf32>
    %459 = vector.shape_cast %458 : vector<1x1x1x1x8x5xf32> to vector<8x5xf32>
    %c0_1149 = arith.constant 0 : index
    %c0_1150 = arith.constant 0 : index
    %c1_1151 = arith.constant 1 : index
    %c7_1152 = arith.constant 7 : index
    %c0_1153 = arith.constant 0 : index
    %c2_1154 = arith.constant 2 : index
    %460 = vector.load %arg1[%c0_1149, %c0_1150, %c1_1151, %c7_1152, %c0_1153, %c2_1154] : memref<1x2x2x11x8x8xf32, #tpu.memory_space<vmem>>, vector<1x1x1x1x8x5xf32>
    %461 = vector.shape_cast %460 : vector<1x1x1x1x8x5xf32> to vector<8x5xf32>
    %c0_1155 = arith.constant 0 : index
    %c0_1156 = arith.constant 0 : index
    %c0_1157 = arith.constant 0 : index
    %c7_1158 = arith.constant 7 : index
    %c0_1159 = arith.constant 0 : index
    %c3_1160 = arith.constant 3 : index
    %462 = vector.load %arg1[%c0_1155, %c0_1156, %c0_1157, %c7_1158, %c0_1159, %c3_1160] : memref<1x2x2x11x8x8xf32, #tpu.memory_space<vmem>>, vector<1x1x1x1x8x5xf32>
    %463 = vector.shape_cast %462 : vector<1x1x1x1x8x5xf32> to vector<8x5xf32>
    %c0_1161 = arith.constant 0 : index
    %c1_1162 = arith.constant 1 : index
    %c0_1163 = arith.constant 0 : index
    %c7_1164 = arith.constant 7 : index
    %c0_1165 = arith.constant 0 : index
    %c0_1166 = arith.constant 0 : index
    %464 = vector.load %arg1[%c0_1161, %c1_1162, %c0_1163, %c7_1164, %c0_1165, %c0_1166] : memref<1x2x2x11x8x8xf32, #tpu.memory_space<vmem>>, vector<1x1x1x1x8x5xf32>
    %465 = vector.shape_cast %464 : vector<1x1x1x1x8x5xf32> to vector<8x5xf32>
    %c0_1167 = arith.constant 0 : index
    %c1_1168 = arith.constant 1 : index
    %c1_1169 = arith.constant 1 : index
    %c7_1170 = arith.constant 7 : index
    %c0_1171 = arith.constant 0 : index
    %c0_1172 = arith.constant 0 : index
    %466 = vector.load %arg1[%c0_1167, %c1_1168, %c1_1169, %c7_1170, %c0_1171, %c0_1172] : memref<1x2x2x11x8x8xf32, #tpu.memory_space<vmem>>, vector<1x1x1x1x8x5xf32>
    %467 = vector.shape_cast %466 : vector<1x1x1x1x8x5xf32> to vector<8x5xf32>
    %c0_1173 = arith.constant 0 : index
    %c1_1174 = arith.constant 1 : index
    %c0_1175 = arith.constant 0 : index
    %c7_1176 = arith.constant 7 : index
    %c0_1177 = arith.constant 0 : index
    %c1_1178 = arith.constant 1 : index
    %468 = vector.load %arg1[%c0_1173, %c1_1174, %c0_1175, %c7_1176, %c0_1177, %c1_1178] : memref<1x2x2x11x8x8xf32, #tpu.memory_space<vmem>>, vector<1x1x1x1x8x5xf32>
    %469 = vector.shape_cast %468 : vector<1x1x1x1x8x5xf32> to vector<8x5xf32>
    %c0_1179 = arith.constant 0 : index
    %c1_1180 = arith.constant 1 : index
    %c1_1181 = arith.constant 1 : index
    %c7_1182 = arith.constant 7 : index
    %c0_1183 = arith.constant 0 : index
    %c1_1184 = arith.constant 1 : index
    %470 = vector.load %arg1[%c0_1179, %c1_1180, %c1_1181, %c7_1182, %c0_1183, %c1_1184] : memref<1x2x2x11x8x8xf32, #tpu.memory_space<vmem>>, vector<1x1x1x1x8x5xf32>
    %471 = vector.shape_cast %470 : vector<1x1x1x1x8x5xf32> to vector<8x5xf32>
    %c0_1185 = arith.constant 0 : index
    %c1_1186 = arith.constant 1 : index
    %c0_1187 = arith.constant 0 : index
    %c7_1188 = arith.constant 7 : index
    %c0_1189 = arith.constant 0 : index
    %c2_1190 = arith.constant 2 : index
    %472 = vector.load %arg1[%c0_1185, %c1_1186, %c0_1187, %c7_1188, %c0_1189, %c2_1190] : memref<1x2x2x11x8x8xf32, #tpu.memory_space<vmem>>, vector<1x1x1x1x8x5xf32>
    %473 = vector.shape_cast %472 : vector<1x1x1x1x8x5xf32> to vector<8x5xf32>
    %c0_1191 = arith.constant 0 : index
    %c1_1192 = arith.constant 1 : index
    %c1_1193 = arith.constant 1 : index
    %c7_1194 = arith.constant 7 : index
    %c0_1195 = arith.constant 0 : index
    %c2_1196 = arith.constant 2 : index
    %474 = vector.load %arg1[%c0_1191, %c1_1192, %c1_1193, %c7_1194, %c0_1195, %c2_1196] : memref<1x2x2x11x8x8xf32, #tpu.memory_space<vmem>>, vector<1x1x1x1x8x5xf32>
    %475 = vector.shape_cast %474 : vector<1x1x1x1x8x5xf32> to vector<8x5xf32>
    %c0_1197 = arith.constant 0 : index
    %c1_1198 = arith.constant 1 : index
    %c0_1199 = arith.constant 0 : index
    %c7_1200 = arith.constant 7 : index
    %c0_1201 = arith.constant 0 : index
    %c3_1202 = arith.constant 3 : index
    %476 = vector.load %arg1[%c0_1197, %c1_1198, %c0_1199, %c7_1200, %c0_1201, %c3_1202] : memref<1x2x2x11x8x8xf32, #tpu.memory_space<vmem>>, vector<1x1x1x1x8x5xf32>
    %477 = vector.shape_cast %476 : vector<1x1x1x1x8x5xf32> to vector<8x5xf32>
    %478 = tpu.concatenate %423, %425, %427, %429, %431, %433, %435, %437, %439, %441, %443, %445, %447, %449, %451, %453 in 0 : vector<8x5xf32>, vector<8x5xf32>, vector<8x5xf32>, vector<8x5xf32>, vector<8x5xf32>, vector<8x5xf32>, vector<8x5xf32>, vector<8x5xf32>, vector<8x5xf32>, vector<8x5xf32>, vector<8x5xf32>, vector<8x5xf32>, vector<8x5xf32>, vector<8x5xf32>, vector<8x5xf32>, vector<8x5xf32> -> vector<128x5xf32>
    %479 = tpu.concatenate %455, %457, %459, %461, %463, %465, %467, %469, %471, %473, %475, %477 in 0 : vector<8x5xf32>, vector<8x5xf32>, vector<8x5xf32>, vector<8x5xf32>, vector<8x5xf32>, vector<8x5xf32>, vector<8x5xf32>, vector<8x5xf32>, vector<8x5xf32>, vector<8x5xf32>, vector<8x5xf32>, vector<8x5xf32> -> vector<96x5xf32>
    %480 = tpu.concatenate %478, %479 in 0 : vector<128x5xf32>, vector<96x5xf32> -> vector<224x5xf32>
    %cst_1203 = arith.constant dense<0.000000e+00> : vector<10x5xf32>
    %481 = tpu.matmul %0, %480, %cst_1203 {dimension_numbers = #tpu.dot_dimension_numbers<[1], [0], [0], [1], [0, 0, 1, 1], [], []>} : vector<10x224xf32>, vector<224x5xf32>, vector<10x5xf32> -> vector<10x5xf32>
    %482 = vector.broadcast %1 : vector<10x1xf32> to vector<10x5xf32>
    %483 = arith.addf %481, %482 : vector<10x5xf32>
    %cst_1204 = arith.constant 0.000000e+00 : f32
    %484 = vector.broadcast %cst_1204 : f32 to vector<10x5xf32>
    %485 = arith.cmpf ogt, %483, %484 : vector<10x5xf32>
    %cst_1205 = arith.constant -2.57949209 : f32
    %486 = vector.broadcast %cst_1205 : f32 to vector<10x5xf32>
    %487 = arith.mulf %483, %486 : vector<10x5xf32>
    %488 = arith.select %485, %483, %487 : vector<10x5xi1>, vector<10x5xf32>
    %c0_1206 = arith.constant 0 : index
    %c0_1207 = arith.constant 0 : index
    %c30 = arith.constant 30 : index
    %489 = vector.load %arg4[%c0_1206, %c0_1207, %c30] : memref<1x10x50xf32, #tpu.memory_space<vmem>>, vector<1x10x5xf32>
    %490 = vector.shape_cast %489 : vector<1x10x5xf32> to vector<10x5xf32>
    %491 = vector.shape_cast %488 : vector<10x5xf32> to vector<1x10x5xf32>
    tpu.vector_store %arg4[%c0_1206, %c0_1207, %c30], %491 {strides = array<i32>} : memref<1x10x50xf32, #tpu.memory_space<vmem>>, vector<1x10x5xf32>,
    %c0_1208 = arith.constant 0 : index
    %c0_1209 = arith.constant 0 : index
    %c0_1210 = arith.constant 0 : index
    %c7_1211 = arith.constant 7 : index
    %c0_1212 = arith.constant 0 : index
    %c0_1213 = arith.constant 0 : index
    %492 = vector.load %arg1[%c0_1208, %c0_1209, %c0_1210, %c7_1211, %c0_1212, %c0_1213] : memref<1x2x2x11x8x8xf32, #tpu.memory_space<vmem>>, vector<1x1x1x1x8x5xf32>
    %493 = vector.shape_cast %492 : vector<1x1x1x1x8x5xf32> to vector<8x5xf32>
    %c0_1214 = arith.constant 0 : index
    %c0_1215 = arith.constant 0 : index
    %c1_1216 = arith.constant 1 : index
    %c7_1217 = arith.constant 7 : index
    %c0_1218 = arith.constant 0 : index
    %c0_1219 = arith.constant 0 : index
    %494 = vector.load %arg1[%c0_1214, %c0_1215, %c1_1216, %c7_1217, %c0_1218, %c0_1219] : memref<1x2x2x11x8x8xf32, #tpu.memory_space<vmem>>, vector<1x1x1x1x8x5xf32>
    %495 = vector.shape_cast %494 : vector<1x1x1x1x8x5xf32> to vector<8x5xf32>
    %c0_1220 = arith.constant 0 : index
    %c0_1221 = arith.constant 0 : index
    %c0_1222 = arith.constant 0 : index
    %c7_1223 = arith.constant 7 : index
    %c0_1224 = arith.constant 0 : index
    %c1_1225 = arith.constant 1 : index
    %496 = vector.load %arg1[%c0_1220, %c0_1221, %c0_1222, %c7_1223, %c0_1224, %c1_1225] : memref<1x2x2x11x8x8xf32, #tpu.memory_space<vmem>>, vector<1x1x1x1x8x5xf32>
    %497 = vector.shape_cast %496 : vector<1x1x1x1x8x5xf32> to vector<8x5xf32>
    %c0_1226 = arith.constant 0 : index
    %c0_1227 = arith.constant 0 : index
    %c1_1228 = arith.constant 1 : index
    %c7_1229 = arith.constant 7 : index
    %c0_1230 = arith.constant 0 : index
    %c1_1231 = arith.constant 1 : index
    %498 = vector.load %arg1[%c0_1226, %c0_1227, %c1_1228, %c7_1229, %c0_1230, %c1_1231] : memref<1x2x2x11x8x8xf32, #tpu.memory_space<vmem>>, vector<1x1x1x1x8x5xf32>
    %499 = vector.shape_cast %498 : vector<1x1x1x1x8x5xf32> to vector<8x5xf32>
    %c0_1232 = arith.constant 0 : index
    %c0_1233 = arith.constant 0 : index
    %c0_1234 = arith.constant 0 : index
    %c7_1235 = arith.constant 7 : index
    %c0_1236 = arith.constant 0 : index
    %c2_1237 = arith.constant 2 : index
    %500 = vector.load %arg1[%c0_1232, %c0_1233, %c0_1234, %c7_1235, %c0_1236, %c2_1237] : memref<1x2x2x11x8x8xf32, #tpu.memory_space<vmem>>, vector<1x1x1x1x8x5xf32>
    %501 = vector.shape_cast %500 : vector<1x1x1x1x8x5xf32> to vector<8x5xf32>
    %c0_1238 = arith.constant 0 : index
    %c0_1239 = arith.constant 0 : index
    %c1_1240 = arith.constant 1 : index
    %c7_1241 = arith.constant 7 : index
    %c0_1242 = arith.constant 0 : index
    %c2_1243 = arith.constant 2 : index
    %502 = vector.load %arg1[%c0_1238, %c0_1239, %c1_1240, %c7_1241, %c0_1242, %c2_1243] : memref<1x2x2x11x8x8xf32, #tpu.memory_space<vmem>>, vector<1x1x1x1x8x5xf32>
    %503 = vector.shape_cast %502 : vector<1x1x1x1x8x5xf32> to vector<8x5xf32>
    %c0_1244 = arith.constant 0 : index
    %c0_1245 = arith.constant 0 : index
    %c0_1246 = arith.constant 0 : index
    %c7_1247 = arith.constant 7 : index
    %c0_1248 = arith.constant 0 : index
    %c3_1249 = arith.constant 3 : index
    %504 = vector.load %arg1[%c0_1244, %c0_1245, %c0_1246, %c7_1247, %c0_1248, %c3_1249] : memref<1x2x2x11x8x8xf32, #tpu.memory_space<vmem>>, vector<1x1x1x1x8x5xf32>
    %505 = vector.shape_cast %504 : vector<1x1x1x1x8x5xf32> to vector<8x5xf32>
    %c0_1250 = arith.constant 0 : index
    %c1_1251 = arith.constant 1 : index
    %c0_1252 = arith.constant 0 : index
    %c7_1253 = arith.constant 7 : index
    %c0_1254 = arith.constant 0 : index
    %c0_1255 = arith.constant 0 : index
    %506 = vector.load %arg1[%c0_1250, %c1_1251, %c0_1252, %c7_1253, %c0_1254, %c0_1255] : memref<1x2x2x11x8x8xf32, #tpu.memory_space<vmem>>, vector<1x1x1x1x8x5xf32>
    %507 = vector.shape_cast %506 : vector<1x1x1x1x8x5xf32> to vector<8x5xf32>
    %c0_1256 = arith.constant 0 : index
    %c1_1257 = arith.constant 1 : index
    %c1_1258 = arith.constant 1 : index
    %c7_1259 = arith.constant 7 : index
    %c0_1260 = arith.constant 0 : index
    %c0_1261 = arith.constant 0 : index
    %508 = vector.load %arg1[%c0_1256, %c1_1257, %c1_1258, %c7_1259, %c0_1260, %c0_1261] : memref<1x2x2x11x8x8xf32, #tpu.memory_space<vmem>>, vector<1x1x1x1x8x5xf32>
    %509 = vector.shape_cast %508 : vector<1x1x1x1x8x5xf32> to vector<8x5xf32>
    %c0_1262 = arith.constant 0 : index
    %c1_1263 = arith.constant 1 : index
    %c0_1264 = arith.constant 0 : index
    %c7_1265 = arith.constant 7 : index
    %c0_1266 = arith.constant 0 : index
    %c1_1267 = arith.constant 1 : index
    %510 = vector.load %arg1[%c0_1262, %c1_1263, %c0_1264, %c7_1265, %c0_1266, %c1_1267] : memref<1x2x2x11x8x8xf32, #tpu.memory_space<vmem>>, vector<1x1x1x1x8x5xf32>
    %511 = vector.shape_cast %510 : vector<1x1x1x1x8x5xf32> to vector<8x5xf32>
    %c0_1268 = arith.constant 0 : index
    %c1_1269 = arith.constant 1 : index
    %c1_1270 = arith.constant 1 : index
    %c7_1271 = arith.constant 7 : index
    %c0_1272 = arith.constant 0 : index
    %c1_1273 = arith.constant 1 : index
    %512 = vector.load %arg1[%c0_1268, %c1_1269, %c1_1270, %c7_1271, %c0_1272, %c1_1273] : memref<1x2x2x11x8x8xf32, #tpu.memory_space<vmem>>, vector<1x1x1x1x8x5xf32>
    %513 = vector.shape_cast %512 : vector<1x1x1x1x8x5xf32> to vector<8x5xf32>
    %c0_1274 = arith.constant 0 : index
    %c1_1275 = arith.constant 1 : index
    %c0_1276 = arith.constant 0 : index
    %c7_1277 = arith.constant 7 : index
    %c0_1278 = arith.constant 0 : index
    %c2_1279 = arith.constant 2 : index
    %514 = vector.load %arg1[%c0_1274, %c1_1275, %c0_1276, %c7_1277, %c0_1278, %c2_1279] : memref<1x2x2x11x8x8xf32, #tpu.memory_space<vmem>>, vector<1x1x1x1x8x5xf32>
    %515 = vector.shape_cast %514 : vector<1x1x1x1x8x5xf32> to vector<8x5xf32>
    %c0_1280 = arith.constant 0 : index
    %c1_1281 = arith.constant 1 : index
    %c1_1282 = arith.constant 1 : index
    %c7_1283 = arith.constant 7 : index
    %c0_1284 = arith.constant 0 : index
    %c2_1285 = arith.constant 2 : index
    %516 = vector.load %arg1[%c0_1280, %c1_1281, %c1_1282, %c7_1283, %c0_1284, %c2_1285] : memref<1x2x2x11x8x8xf32, #tpu.memory_space<vmem>>, vector<1x1x1x1x8x5xf32>
    %517 = vector.shape_cast %516 : vector<1x1x1x1x8x5xf32> to vector<8x5xf32>
    %c0_1286 = arith.constant 0 : index
    %c1_1287 = arith.constant 1 : index
    %c0_1288 = arith.constant 0 : index
    %c7_1289 = arith.constant 7 : index
    %c0_1290 = arith.constant 0 : index
    %c3_1291 = arith.constant 3 : index
    %518 = vector.load %arg1[%c0_1286, %c1_1287, %c0_1288, %c7_1289, %c0_1290, %c3_1291] : memref<1x2x2x11x8x8xf32, #tpu.memory_space<vmem>>, vector<1x1x1x1x8x5xf32>
    %519 = vector.shape_cast %518 : vector<1x1x1x1x8x5xf32> to vector<8x5xf32>
    %c0_1292 = arith.constant 0 : index
    %c0_1293 = arith.constant 0 : index
    %c0_1294 = arith.constant 0 : index
    %c8 = arith.constant 8 : index
    %c0_1295 = arith.constant 0 : index
    %c0_1296 = arith.constant 0 : index
    %520 = vector.load %arg1[%c0_1292, %c0_1293, %c0_1294, %c8, %c0_1295, %c0_1296] : memref<1x2x2x11x8x8xf32, #tpu.memory_space<vmem>>, vector<1x1x1x1x8x5xf32>
    %521 = vector.shape_cast %520 : vector<1x1x1x1x8x5xf32> to vector<8x5xf32>
    %c0_1297 = arith.constant 0 : index
    %c0_1298 = arith.constant 0 : index
    %c1_1299 = arith.constant 1 : index
    %c8_1300 = arith.constant 8 : index
    %c0_1301 = arith.constant 0 : index
    %c0_1302 = arith.constant 0 : index
    %522 = vector.load %arg1[%c0_1297, %c0_1298, %c1_1299, %c8_1300, %c0_1301, %c0_1302] : memref<1x2x2x11x8x8xf32, #tpu.memory_space<vmem>>, vector<1x1x1x1x8x5xf32>
    %523 = vector.shape_cast %522 : vector<1x1x1x1x8x5xf32> to vector<8x5xf32>
    %c0_1303 = arith.constant 0 : index
    %c0_1304 = arith.constant 0 : index
    %c0_1305 = arith.constant 0 : index
    %c8_1306 = arith.constant 8 : index
    %c0_1307 = arith.constant 0 : index
    %c1_1308 = arith.constant 1 : index
    %524 = vector.load %arg1[%c0_1303, %c0_1304, %c0_1305, %c8_1306, %c0_1307, %c1_1308] : memref<1x2x2x11x8x8xf32, #tpu.memory_space<vmem>>, vector<1x1x1x1x8x5xf32>
    %525 = vector.shape_cast %524 : vector<1x1x1x1x8x5xf32> to vector<8x5xf32>
    %c0_1309 = arith.constant 0 : index
    %c0_1310 = arith.constant 0 : index
    %c1_1311 = arith.constant 1 : index
    %c8_1312 = arith.constant 8 : index
    %c0_1313 = arith.constant 0 : index
    %c1_1314 = arith.constant 1 : index
    %526 = vector.load %arg1[%c0_1309, %c0_1310, %c1_1311, %c8_1312, %c0_1313, %c1_1314] : memref<1x2x2x11x8x8xf32, #tpu.memory_space<vmem>>, vector<1x1x1x1x8x5xf32>
    %527 = vector.shape_cast %526 : vector<1x1x1x1x8x5xf32> to vector<8x5xf32>
    %c0_1315 = arith.constant 0 : index
    %c0_1316 = arith.constant 0 : index
    %c0_1317 = arith.constant 0 : index
    %c8_1318 = arith.constant 8 : index
    %c0_1319 = arith.constant 0 : index
    %c2_1320 = arith.constant 2 : index
    %528 = vector.load %arg1[%c0_1315, %c0_1316, %c0_1317, %c8_1318, %c0_1319, %c2_1320] : memref<1x2x2x11x8x8xf32, #tpu.memory_space<vmem>>, vector<1x1x1x1x8x5xf32>
    %529 = vector.shape_cast %528 : vector<1x1x1x1x8x5xf32> to vector<8x5xf32>
    %c0_1321 = arith.constant 0 : index
    %c0_1322 = arith.constant 0 : index
    %c1_1323 = arith.constant 1 : index
    %c8_1324 = arith.constant 8 : index
    %c0_1325 = arith.constant 0 : index
    %c2_1326 = arith.constant 2 : index
    %530 = vector.load %arg1[%c0_1321, %c0_1322, %c1_1323, %c8_1324, %c0_1325, %c2_1326] : memref<1x2x2x11x8x8xf32, #tpu.memory_space<vmem>>, vector<1x1x1x1x8x5xf32>
    %531 = vector.shape_cast %530 : vector<1x1x1x1x8x5xf32> to vector<8x5xf32>
    %c0_1327 = arith.constant 0 : index
    %c0_1328 = arith.constant 0 : index
    %c0_1329 = arith.constant 0 : index
    %c8_1330 = arith.constant 8 : index
    %c0_1331 = arith.constant 0 : index
    %c3_1332 = arith.constant 3 : index
    %532 = vector.load %arg1[%c0_1327, %c0_1328, %c0_1329, %c8_1330, %c0_1331, %c3_1332] : memref<1x2x2x11x8x8xf32, #tpu.memory_space<vmem>>, vector<1x1x1x1x8x5xf32>
    %533 = vector.shape_cast %532 : vector<1x1x1x1x8x5xf32> to vector<8x5xf32>
    %c0_1333 = arith.constant 0 : index
    %c1_1334 = arith.constant 1 : index
    %c0_1335 = arith.constant 0 : index
    %c8_1336 = arith.constant 8 : index
    %c0_1337 = arith.constant 0 : index
    %c0_1338 = arith.constant 0 : index
    %534 = vector.load %arg1[%c0_1333, %c1_1334, %c0_1335, %c8_1336, %c0_1337, %c0_1338] : memref<1x2x2x11x8x8xf32, #tpu.memory_space<vmem>>, vector<1x1x1x1x8x5xf32>
    %535 = vector.shape_cast %534 : vector<1x1x1x1x8x5xf32> to vector<8x5xf32>
    %c0_1339 = arith.constant 0 : index
    %c1_1340 = arith.constant 1 : index
    %c1_1341 = arith.constant 1 : index
    %c8_1342 = arith.constant 8 : index
    %c0_1343 = arith.constant 0 : index
    %c0_1344 = arith.constant 0 : index
    %536 = vector.load %arg1[%c0_1339, %c1_1340, %c1_1341, %c8_1342, %c0_1343, %c0_1344] : memref<1x2x2x11x8x8xf32, #tpu.memory_space<vmem>>, vector<1x1x1x1x8x5xf32>
    %537 = vector.shape_cast %536 : vector<1x1x1x1x8x5xf32> to vector<8x5xf32>
    %c0_1345 = arith.constant 0 : index
    %c1_1346 = arith.constant 1 : index
    %c0_1347 = arith.constant 0 : index
    %c8_1348 = arith.constant 8 : index
    %c0_1349 = arith.constant 0 : index
    %c1_1350 = arith.constant 1 : index
    %538 = vector.load %arg1[%c0_1345, %c1_1346, %c0_1347, %c8_1348, %c0_1349, %c1_1350] : memref<1x2x2x11x8x8xf32, #tpu.memory_space<vmem>>, vector<1x1x1x1x8x5xf32>
    %539 = vector.shape_cast %538 : vector<1x1x1x1x8x5xf32> to vector<8x5xf32>
    %c0_1351 = arith.constant 0 : index
    %c1_1352 = arith.constant 1 : index
    %c1_1353 = arith.constant 1 : index
    %c8_1354 = arith.constant 8 : index
    %c0_1355 = arith.constant 0 : index
    %c1_1356 = arith.constant 1 : index
    %540 = vector.load %arg1[%c0_1351, %c1_1352, %c1_1353, %c8_1354, %c0_1355, %c1_1356] : memref<1x2x2x11x8x8xf32, #tpu.memory_space<vmem>>, vector<1x1x1x1x8x5xf32>
    %541 = vector.shape_cast %540 : vector<1x1x1x1x8x5xf32> to vector<8x5xf32>
    %c0_1357 = arith.constant 0 : index
    %c1_1358 = arith.constant 1 : index
    %c0_1359 = arith.constant 0 : index
    %c8_1360 = arith.constant 8 : index
    %c0_1361 = arith.constant 0 : index
    %c2_1362 = arith.constant 2 : index
    %542 = vector.load %arg1[%c0_1357, %c1_1358, %c0_1359, %c8_1360, %c0_1361, %c2_1362] : memref<1x2x2x11x8x8xf32, #tpu.memory_space<vmem>>, vector<1x1x1x1x8x5xf32>
    %543 = vector.shape_cast %542 : vector<1x1x1x1x8x5xf32> to vector<8x5xf32>
    %c0_1363 = arith.constant 0 : index
    %c1_1364 = arith.constant 1 : index
    %c1_1365 = arith.constant 1 : index
    %c8_1366 = arith.constant 8 : index
    %c0_1367 = arith.constant 0 : index
    %c2_1368 = arith.constant 2 : index
    %544 = vector.load %arg1[%c0_1363, %c1_1364, %c1_1365, %c8_1366, %c0_1367, %c2_1368] : memref<1x2x2x11x8x8xf32, #tpu.memory_space<vmem>>, vector<1x1x1x1x8x5xf32>
    %545 = vector.shape_cast %544 : vector<1x1x1x1x8x5xf32> to vector<8x5xf32>
    %c0_1369 = arith.constant 0 : index
    %c1_1370 = arith.constant 1 : index
    %c0_1371 = arith.constant 0 : index
    %c8_1372 = arith.constant 8 : index
    %c0_1373 = arith.constant 0 : index
    %c3_1374 = arith.constant 3 : index
    %546 = vector.load %arg1[%c0_1369, %c1_1370, %c0_1371, %c8_1372, %c0_1373, %c3_1374] : memref<1x2x2x11x8x8xf32, #tpu.memory_space<vmem>>, vector<1x1x1x1x8x5xf32>
    %547 = vector.shape_cast %546 : vector<1x1x1x1x8x5xf32> to vector<8x5xf32>
    %548 = tpu.concatenate %493, %495, %497, %499, %501, %503, %505, %507, %509, %511, %513, %515, %517, %519, %521, %523 in 0 : vector<8x5xf32>, vector<8x5xf32>, vector<8x5xf32>, vector<8x5xf32>, vector<8x5xf32>, vector<8x5xf32>, vector<8x5xf32>, vector<8x5xf32>, vector<8x5xf32>, vector<8x5xf32>, vector<8x5xf32>, vector<8x5xf32>, vector<8x5xf32>, vector<8x5xf32>, vector<8x5xf32>, vector<8x5xf32> -> vector<128x5xf32>
    %549 = tpu.concatenate %525, %527, %529, %531, %533, %535, %537, %539, %541, %543, %545, %547 in 0 : vector<8x5xf32>, vector<8x5xf32>, vector<8x5xf32>, vector<8x5xf32>, vector<8x5xf32>, vector<8x5xf32>, vector<8x5xf32>, vector<8x5xf32>, vector<8x5xf32>, vector<8x5xf32>, vector<8x5xf32>, vector<8x5xf32> -> vector<96x5xf32>
    %550 = tpu.concatenate %548, %549 in 0 : vector<128x5xf32>, vector<96x5xf32> -> vector<224x5xf32>
    %cst_1375 = arith.constant dense<0.000000e+00> : vector<10x5xf32>
    %551 = tpu.matmul %0, %550, %cst_1375 {dimension_numbers = #tpu.dot_dimension_numbers<[1], [0], [0], [1], [0, 0, 1, 1], [], []>} : vector<10x224xf32>, vector<224x5xf32>, vector<10x5xf32> -> vector<10x5xf32>
    %552 = vector.broadcast %1 : vector<10x1xf32> to vector<10x5xf32>
    %553 = arith.addf %551, %552 : vector<10x5xf32>
    %cst_1376 = arith.constant 0.000000e+00 : f32
    %554 = vector.broadcast %cst_1376 : f32 to vector<10x5xf32>
    %555 = arith.cmpf ogt, %553, %554 : vector<10x5xf32>
    %cst_1377 = arith.constant -2.57949209 : f32
    %556 = vector.broadcast %cst_1377 : f32 to vector<10x5xf32>
    %557 = arith.mulf %553, %556 : vector<10x5xf32>
    %558 = arith.select %555, %553, %557 : vector<10x5xi1>, vector<10x5xf32>
    %c0_1378 = arith.constant 0 : index
    %c0_1379 = arith.constant 0 : index
    %c35 = arith.constant 35 : index
    %559 = vector.load %arg4[%c0_1378, %c0_1379, %c35] : memref<1x10x50xf32, #tpu.memory_space<vmem>>, vector<1x10x5xf32>
    %560 = vector.shape_cast %559 : vector<1x10x5xf32> to vector<10x5xf32>
    %561 = vector.shape_cast %558 : vector<10x5xf32> to vector<1x10x5xf32>
    tpu.vector_store %arg4[%c0_1378, %c0_1379, %c35], %561 {strides = array<i32>} : memref<1x10x50xf32, #tpu.memory_space<vmem>>, vector<1x10x5xf32>,
    %c0_1380 = arith.constant 0 : index
    %c0_1381 = arith.constant 0 : index
    %c0_1382 = arith.constant 0 : index
    %c8_1383 = arith.constant 8 : index
    %c0_1384 = arith.constant 0 : index
    %c0_1385 = arith.constant 0 : index
    %562 = vector.load %arg1[%c0_1380, %c0_1381, %c0_1382, %c8_1383, %c0_1384, %c0_1385] : memref<1x2x2x11x8x8xf32, #tpu.memory_space<vmem>>, vector<1x1x1x1x8x5xf32>
    %563 = vector.shape_cast %562 : vector<1x1x1x1x8x5xf32> to vector<8x5xf32>
    %c0_1386 = arith.constant 0 : index
    %c0_1387 = arith.constant 0 : index
    %c1_1388 = arith.constant 1 : index
    %c8_1389 = arith.constant 8 : index
    %c0_1390 = arith.constant 0 : index
    %c0_1391 = arith.constant 0 : index
    %564 = vector.load %arg1[%c0_1386, %c0_1387, %c1_1388, %c8_1389, %c0_1390, %c0_1391] : memref<1x2x2x11x8x8xf32, #tpu.memory_space<vmem>>, vector<1x1x1x1x8x5xf32>
    %565 = vector.shape_cast %564 : vector<1x1x1x1x8x5xf32> to vector<8x5xf32>
    %c0_1392 = arith.constant 0 : index
    %c0_1393 = arith.constant 0 : index
    %c0_1394 = arith.constant 0 : index
    %c8_1395 = arith.constant 8 : index
    %c0_1396 = arith.constant 0 : index
    %c1_1397 = arith.constant 1 : index
    %566 = vector.load %arg1[%c0_1392, %c0_1393, %c0_1394, %c8_1395, %c0_1396, %c1_1397] : memref<1x2x2x11x8x8xf32, #tpu.memory_space<vmem>>, vector<1x1x1x1x8x5xf32>
    %567 = vector.shape_cast %566 : vector<1x1x1x1x8x5xf32> to vector<8x5xf32>
    %c0_1398 = arith.constant 0 : index
    %c0_1399 = arith.constant 0 : index
    %c1_1400 = arith.constant 1 : index
    %c8_1401 = arith.constant 8 : index
    %c0_1402 = arith.constant 0 : index
    %c1_1403 = arith.constant 1 : index
    %568 = vector.load %arg1[%c0_1398, %c0_1399, %c1_1400, %c8_1401, %c0_1402, %c1_1403] : memref<1x2x2x11x8x8xf32, #tpu.memory_space<vmem>>, vector<1x1x1x1x8x5xf32>
    %569 = vector.shape_cast %568 : vector<1x1x1x1x8x5xf32> to vector<8x5xf32>
    %c0_1404 = arith.constant 0 : index
    %c0_1405 = arith.constant 0 : index
    %c0_1406 = arith.constant 0 : index
    %c8_1407 = arith.constant 8 : index
    %c0_1408 = arith.constant 0 : index
    %c2_1409 = arith.constant 2 : index
    %570 = vector.load %arg1[%c0_1404, %c0_1405, %c0_1406, %c8_1407, %c0_1408, %c2_1409] : memref<1x2x2x11x8x8xf32, #tpu.memory_space<vmem>>, vector<1x1x1x1x8x5xf32>
    %571 = vector.shape_cast %570 : vector<1x1x1x1x8x5xf32> to vector<8x5xf32>
    %c0_1410 = arith.constant 0 : index
    %c0_1411 = arith.constant 0 : index
    %c1_1412 = arith.constant 1 : index
    %c8_1413 = arith.constant 8 : index
    %c0_1414 = arith.constant 0 : index
    %c2_1415 = arith.constant 2 : index
    %572 = vector.load %arg1[%c0_1410, %c0_1411, %c1_1412, %c8_1413, %c0_1414, %c2_1415] : memref<1x2x2x11x8x8xf32, #tpu.memory_space<vmem>>, vector<1x1x1x1x8x5xf32>
    %573 = vector.shape_cast %572 : vector<1x1x1x1x8x5xf32> to vector<8x5xf32>
    %c0_1416 = arith.constant 0 : index
    %c0_1417 = arith.constant 0 : index
    %c0_1418 = arith.constant 0 : index
    %c8_1419 = arith.constant 8 : index
    %c0_1420 = arith.constant 0 : index
    %c3_1421 = arith.constant 3 : index
    %574 = vector.load %arg1[%c0_1416, %c0_1417, %c0_1418, %c8_1419, %c0_1420, %c3_1421] : memref<1x2x2x11x8x8xf32, #tpu.memory_space<vmem>>, vector<1x1x1x1x8x5xf32>
    %575 = vector.shape_cast %574 : vector<1x1x1x1x8x5xf32> to vector<8x5xf32>
    %c0_1422 = arith.constant 0 : index
    %c1_1423 = arith.constant 1 : index
    %c0_1424 = arith.constant 0 : index
    %c8_1425 = arith.constant 8 : index
    %c0_1426 = arith.constant 0 : index
    %c0_1427 = arith.constant 0 : index
    %576 = vector.load %arg1[%c0_1422, %c1_1423, %c0_1424, %c8_1425, %c0_1426, %c0_1427] : memref<1x2x2x11x8x8xf32, #tpu.memory_space<vmem>>, vector<1x1x1x1x8x5xf32>
    %577 = vector.shape_cast %576 : vector<1x1x1x1x8x5xf32> to vector<8x5xf32>
    %c0_1428 = arith.constant 0 : index
    %c1_1429 = arith.constant 1 : index
    %c1_1430 = arith.constant 1 : index
    %c8_1431 = arith.constant 8 : index
    %c0_1432 = arith.constant 0 : index
    %c0_1433 = arith.constant 0 : index
    %578 = vector.load %arg1[%c0_1428, %c1_1429, %c1_1430, %c8_1431, %c0_1432, %c0_1433] : memref<1x2x2x11x8x8xf32, #tpu.memory_space<vmem>>, vector<1x1x1x1x8x5xf32>
    %579 = vector.shape_cast %578 : vector<1x1x1x1x8x5xf32> to vector<8x5xf32>
    %c0_1434 = arith.constant 0 : index
    %c1_1435 = arith.constant 1 : index
    %c0_1436 = arith.constant 0 : index
    %c8_1437 = arith.constant 8 : index
    %c0_1438 = arith.constant 0 : index
    %c1_1439 = arith.constant 1 : index
    %580 = vector.load %arg1[%c0_1434, %c1_1435, %c0_1436, %c8_1437, %c0_1438, %c1_1439] : memref<1x2x2x11x8x8xf32, #tpu.memory_space<vmem>>, vector<1x1x1x1x8x5xf32>
    %581 = vector.shape_cast %580 : vector<1x1x1x1x8x5xf32> to vector<8x5xf32>
    %c0_1440 = arith.constant 0 : index
    %c1_1441 = arith.constant 1 : index
    %c1_1442 = arith.constant 1 : index
    %c8_1443 = arith.constant 8 : index
    %c0_1444 = arith.constant 0 : index
    %c1_1445 = arith.constant 1 : index
    %582 = vector.load %arg1[%c0_1440, %c1_1441, %c1_1442, %c8_1443, %c0_1444, %c1_1445] : memref<1x2x2x11x8x8xf32, #tpu.memory_space<vmem>>, vector<1x1x1x1x8x5xf32>
    %583 = vector.shape_cast %582 : vector<1x1x1x1x8x5xf32> to vector<8x5xf32>
    %c0_1446 = arith.constant 0 : index
    %c1_1447 = arith.constant 1 : index
    %c0_1448 = arith.constant 0 : index
    %c8_1449 = arith.constant 8 : index
    %c0_1450 = arith.constant 0 : index
    %c2_1451 = arith.constant 2 : index
    %584 = vector.load %arg1[%c0_1446, %c1_1447, %c0_1448, %c8_1449, %c0_1450, %c2_1451] : memref<1x2x2x11x8x8xf32, #tpu.memory_space<vmem>>, vector<1x1x1x1x8x5xf32>
    %585 = vector.shape_cast %584 : vector<1x1x1x1x8x5xf32> to vector<8x5xf32>
    %c0_1452 = arith.constant 0 : index
    %c1_1453 = arith.constant 1 : index
    %c1_1454 = arith.constant 1 : index
    %c8_1455 = arith.constant 8 : index
    %c0_1456 = arith.constant 0 : index
    %c2_1457 = arith.constant 2 : index
    %586 = vector.load %arg1[%c0_1452, %c1_1453, %c1_1454, %c8_1455, %c0_1456, %c2_1457] : memref<1x2x2x11x8x8xf32, #tpu.memory_space<vmem>>, vector<1x1x1x1x8x5xf32>
    %587 = vector.shape_cast %586 : vector<1x1x1x1x8x5xf32> to vector<8x5xf32>
    %c0_1458 = arith.constant 0 : index
    %c1_1459 = arith.constant 1 : index
    %c0_1460 = arith.constant 0 : index
    %c8_1461 = arith.constant 8 : index
    %c0_1462 = arith.constant 0 : index
    %c3_1463 = arith.constant 3 : index
    %588 = vector.load %arg1[%c0_1458, %c1_1459, %c0_1460, %c8_1461, %c0_1462, %c3_1463] : memref<1x2x2x11x8x8xf32, #tpu.memory_space<vmem>>, vector<1x1x1x1x8x5xf32>
    %589 = vector.shape_cast %588 : vector<1x1x1x1x8x5xf32> to vector<8x5xf32>
    %c0_1464 = arith.constant 0 : index
    %c0_1465 = arith.constant 0 : index
    %c0_1466 = arith.constant 0 : index
    %c9 = arith.constant 9 : index
    %c0_1467 = arith.constant 0 : index
    %c0_1468 = arith.constant 0 : index
    %590 = vector.load %arg1[%c0_1464, %c0_1465, %c0_1466, %c9, %c0_1467, %c0_1468] : memref<1x2x2x11x8x8xf32, #tpu.memory_space<vmem>>, vector<1x1x1x1x8x5xf32>
    %591 = vector.shape_cast %590 : vector<1x1x1x1x8x5xf32> to vector<8x5xf32>
    %c0_1469 = arith.constant 0 : index
    %c0_1470 = arith.constant 0 : index
    %c1_1471 = arith.constant 1 : index
    %c9_1472 = arith.constant 9 : index
    %c0_1473 = arith.constant 0 : index
    %c0_1474 = arith.constant 0 : index
    %592 = vector.load %arg1[%c0_1469, %c0_1470, %c1_1471, %c9_1472, %c0_1473, %c0_1474] : memref<1x2x2x11x8x8xf32, #tpu.memory_space<vmem>>, vector<1x1x1x1x8x5xf32>
    %593 = vector.shape_cast %592 : vector<1x1x1x1x8x5xf32> to vector<8x5xf32>
    %c0_1475 = arith.constant 0 : index
    %c0_1476 = arith.constant 0 : index
    %c0_1477 = arith.constant 0 : index
    %c9_1478 = arith.constant 9 : index
    %c0_1479 = arith.constant 0 : index
    %c1_1480 = arith.constant 1 : index
    %594 = vector.load %arg1[%c0_1475, %c0_1476, %c0_1477, %c9_1478, %c0_1479, %c1_1480] : memref<1x2x2x11x8x8xf32, #tpu.memory_space<vmem>>, vector<1x1x1x1x8x5xf32>
    %595 = vector.shape_cast %594 : vector<1x1x1x1x8x5xf32> to vector<8x5xf32>
    %c0_1481 = arith.constant 0 : index
    %c0_1482 = arith.constant 0 : index
    %c1_1483 = arith.constant 1 : index
    %c9_1484 = arith.constant 9 : index
    %c0_1485 = arith.constant 0 : index
    %c1_1486 = arith.constant 1 : index
    %596 = vector.load %arg1[%c0_1481, %c0_1482, %c1_1483, %c9_1484, %c0_1485, %c1_1486] : memref<1x2x2x11x8x8xf32, #tpu.memory_space<vmem>>, vector<1x1x1x1x8x5xf32>
    %597 = vector.shape_cast %596 : vector<1x1x1x1x8x5xf32> to vector<8x5xf32>
    %c0_1487 = arith.constant 0 : index
    %c0_1488 = arith.constant 0 : index
    %c0_1489 = arith.constant 0 : index
    %c9_1490 = arith.constant 9 : index
    %c0_1491 = arith.constant 0 : index
    %c2_1492 = arith.constant 2 : index
    %598 = vector.load %arg1[%c0_1487, %c0_1488, %c0_1489, %c9_1490, %c0_1491, %c2_1492] : memref<1x2x2x11x8x8xf32, #tpu.memory_space<vmem>>, vector<1x1x1x1x8x5xf32>
    %599 = vector.shape_cast %598 : vector<1x1x1x1x8x5xf32> to vector<8x5xf32>
    %c0_1493 = arith.constant 0 : index
    %c0_1494 = arith.constant 0 : index
    %c1_1495 = arith.constant 1 : index
    %c9_1496 = arith.constant 9 : index
    %c0_1497 = arith.constant 0 : index
    %c2_1498 = arith.constant 2 : index
    %600 = vector.load %arg1[%c0_1493, %c0_1494, %c1_1495, %c9_1496, %c0_1497, %c2_1498] : memref<1x2x2x11x8x8xf32, #tpu.memory_space<vmem>>, vector<1x1x1x1x8x5xf32>
    %601 = vector.shape_cast %600 : vector<1x1x1x1x8x5xf32> to vector<8x5xf32>
    %c0_1499 = arith.constant 0 : index
    %c0_1500 = arith.constant 0 : index
    %c0_1501 = arith.constant 0 : index
    %c9_1502 = arith.constant 9 : index
    %c0_1503 = arith.constant 0 : index
    %c3_1504 = arith.constant 3 : index
    %602 = vector.load %arg1[%c0_1499, %c0_1500, %c0_1501, %c9_1502, %c0_1503, %c3_1504] : memref<1x2x2x11x8x8xf32, #tpu.memory_space<vmem>>, vector<1x1x1x1x8x5xf32>
    %603 = vector.shape_cast %602 : vector<1x1x1x1x8x5xf32> to vector<8x5xf32>
    %c0_1505 = arith.constant 0 : index
    %c1_1506 = arith.constant 1 : index
    %c0_1507 = arith.constant 0 : index
    %c9_1508 = arith.constant 9 : index
    %c0_1509 = arith.constant 0 : index
    %c0_1510 = arith.constant 0 : index
    %604 = vector.load %arg1[%c0_1505, %c1_1506, %c0_1507, %c9_1508, %c0_1509, %c0_1510] : memref<1x2x2x11x8x8xf32, #tpu.memory_space<vmem>>, vector<1x1x1x1x8x5xf32>
    %605 = vector.shape_cast %604 : vector<1x1x1x1x8x5xf32> to vector<8x5xf32>
    %c0_1511 = arith.constant 0 : index
    %c1_1512 = arith.constant 1 : index
    %c1_1513 = arith.constant 1 : index
    %c9_1514 = arith.constant 9 : index
    %c0_1515 = arith.constant 0 : index
    %c0_1516 = arith.constant 0 : index
    %606 = vector.load %arg1[%c0_1511, %c1_1512, %c1_1513, %c9_1514, %c0_1515, %c0_1516] : memref<1x2x2x11x8x8xf32, #tpu.memory_space<vmem>>, vector<1x1x1x1x8x5xf32>
    %607 = vector.shape_cast %606 : vector<1x1x1x1x8x5xf32> to vector<8x5xf32>
    %c0_1517 = arith.constant 0 : index
    %c1_1518 = arith.constant 1 : index
    %c0_1519 = arith.constant 0 : index
    %c9_1520 = arith.constant 9 : index
    %c0_1521 = arith.constant 0 : index
    %c1_1522 = arith.constant 1 : index
    %608 = vector.load %arg1[%c0_1517, %c1_1518, %c0_1519, %c9_1520, %c0_1521, %c1_1522] : memref<1x2x2x11x8x8xf32, #tpu.memory_space<vmem>>, vector<1x1x1x1x8x5xf32>
    %609 = vector.shape_cast %608 : vector<1x1x1x1x8x5xf32> to vector<8x5xf32>
    %c0_1523 = arith.constant 0 : index
    %c1_1524 = arith.constant 1 : index
    %c1_1525 = arith.constant 1 : index
    %c9_1526 = arith.constant 9 : index
    %c0_1527 = arith.constant 0 : index
    %c1_1528 = arith.constant 1 : index
    %610 = vector.load %arg1[%c0_1523, %c1_1524, %c1_1525, %c9_1526, %c0_1527, %c1_1528] : memref<1x2x2x11x8x8xf32, #tpu.memory_space<vmem>>, vector<1x1x1x1x8x5xf32>
    %611 = vector.shape_cast %610 : vector<1x1x1x1x8x5xf32> to vector<8x5xf32>
    %c0_1529 = arith.constant 0 : index
    %c1_1530 = arith.constant 1 : index
    %c0_1531 = arith.constant 0 : index
    %c9_1532 = arith.constant 9 : index
    %c0_1533 = arith.constant 0 : index
    %c2_1534 = arith.constant 2 : index
    %612 = vector.load %arg1[%c0_1529, %c1_1530, %c0_1531, %c9_1532, %c0_1533, %c2_1534] : memref<1x2x2x11x8x8xf32, #tpu.memory_space<vmem>>, vector<1x1x1x1x8x5xf32>
    %613 = vector.shape_cast %612 : vector<1x1x1x1x8x5xf32> to vector<8x5xf32>
    %c0_1535 = arith.constant 0 : index
    %c1_1536 = arith.constant 1 : index
    %c1_1537 = arith.constant 1 : index
    %c9_1538 = arith.constant 9 : index
    %c0_1539 = arith.constant 0 : index
    %c2_1540 = arith.constant 2 : index
    %614 = vector.load %arg1[%c0_1535, %c1_1536, %c1_1537, %c9_1538, %c0_1539, %c2_1540] : memref<1x2x2x11x8x8xf32, #tpu.memory_space<vmem>>, vector<1x1x1x1x8x5xf32>
    %615 = vector.shape_cast %614 : vector<1x1x1x1x8x5xf32> to vector<8x5xf32>
    %c0_1541 = arith.constant 0 : index
    %c1_1542 = arith.constant 1 : index
    %c0_1543 = arith.constant 0 : index
    %c9_1544 = arith.constant 9 : index
    %c0_1545 = arith.constant 0 : index
    %c3_1546 = arith.constant 3 : index
    %616 = vector.load %arg1[%c0_1541, %c1_1542, %c0_1543, %c9_1544, %c0_1545, %c3_1546] : memref<1x2x2x11x8x8xf32, #tpu.memory_space<vmem>>, vector<1x1x1x1x8x5xf32>
    %617 = vector.shape_cast %616 : vector<1x1x1x1x8x5xf32> to vector<8x5xf32>
    %618 = tpu.concatenate %563, %565, %567, %569, %571, %573, %575, %577, %579, %581, %583, %585, %587, %589, %591, %593 in 0 : vector<8x5xf32>, vector<8x5xf32>, vector<8x5xf32>, vector<8x5xf32>, vector<8x5xf32>, vector<8x5xf32>, vector<8x5xf32>, vector<8x5xf32>, vector<8x5xf32>, vector<8x5xf32>, vector<8x5xf32>, vector<8x5xf32>, vector<8x5xf32>, vector<8x5xf32>, vector<8x5xf32>, vector<8x5xf32> -> vector<128x5xf32>
    %619 = tpu.concatenate %595, %597, %599, %601, %603, %605, %607, %609, %611, %613, %615, %617 in 0 : vector<8x5xf32>, vector<8x5xf32>, vector<8x5xf32>, vector<8x5xf32>, vector<8x5xf32>, vector<8x5xf32>, vector<8x5xf32>, vector<8x5xf32>, vector<8x5xf32>, vector<8x5xf32>, vector<8x5xf32>, vector<8x5xf32> -> vector<96x5xf32>
    %620 = tpu.concatenate %618, %619 in 0 : vector<128x5xf32>, vector<96x5xf32> -> vector<224x5xf32>
    %cst_1547 = arith.constant dense<0.000000e+00> : vector<10x5xf32>
    %621 = tpu.matmul %0, %620, %cst_1547 {dimension_numbers = #tpu.dot_dimension_numbers<[1], [0], [0], [1], [0, 0, 1, 1], [], []>} : vector<10x224xf32>, vector<224x5xf32>, vector<10x5xf32> -> vector<10x5xf32>
    %622 = vector.broadcast %1 : vector<10x1xf32> to vector<10x5xf32>
    %623 = arith.addf %621, %622 : vector<10x5xf32>
    %cst_1548 = arith.constant 0.000000e+00 : f32
    %624 = vector.broadcast %cst_1548 : f32 to vector<10x5xf32>
    %625 = arith.cmpf ogt, %623, %624 : vector<10x5xf32>
    %cst_1549 = arith.constant -2.57949209 : f32
    %626 = vector.broadcast %cst_1549 : f32 to vector<10x5xf32>
    %627 = arith.mulf %623, %626 : vector<10x5xf32>
    %628 = arith.select %625, %623, %627 : vector<10x5xi1>, vector<10x5xf32>
    %c0_1550 = arith.constant 0 : index
    %c0_1551 = arith.constant 0 : index
    %c40 = arith.constant 40 : index
    %629 = vector.load %arg4[%c0_1550, %c0_1551, %c40] : memref<1x10x50xf32, #tpu.memory_space<vmem>>, vector<1x10x5xf32>
    %630 = vector.shape_cast %629 : vector<1x10x5xf32> to vector<10x5xf32>
    %631 = vector.shape_cast %628 : vector<10x5xf32> to vector<1x10x5xf32>
    tpu.vector_store %arg4[%c0_1550, %c0_1551, %c40], %631 {strides = array<i32>} : memref<1x10x50xf32, #tpu.memory_space<vmem>>, vector<1x10x5xf32>,
    %c0_1552 = arith.constant 0 : index
    %c0_1553 = arith.constant 0 : index
    %c0_1554 = arith.constant 0 : index
    %c9_1555 = arith.constant 9 : index
    %c0_1556 = arith.constant 0 : index
    %c0_1557 = arith.constant 0 : index
    %632 = vector.load %arg1[%c0_1552, %c0_1553, %c0_1554, %c9_1555, %c0_1556, %c0_1557] : memref<1x2x2x11x8x8xf32, #tpu.memory_space<vmem>>, vector<1x1x1x1x8x5xf32>
    %633 = vector.shape_cast %632 : vector<1x1x1x1x8x5xf32> to vector<8x5xf32>
    %c0_1558 = arith.constant 0 : index
    %c0_1559 = arith.constant 0 : index
    %c1_1560 = arith.constant 1 : index
    %c9_1561 = arith.constant 9 : index
    %c0_1562 = arith.constant 0 : index
    %c0_1563 = arith.constant 0 : index
    %634 = vector.load %arg1[%c0_1558, %c0_1559, %c1_1560, %c9_1561, %c0_1562, %c0_1563] : memref<1x2x2x11x8x8xf32, #tpu.memory_space<vmem>>, vector<1x1x1x1x8x5xf32>
    %635 = vector.shape_cast %634 : vector<1x1x1x1x8x5xf32> to vector<8x5xf32>
    %c0_1564 = arith.constant 0 : index
    %c0_1565 = arith.constant 0 : index
    %c0_1566 = arith.constant 0 : index
    %c9_1567 = arith.constant 9 : index
    %c0_1568 = arith.constant 0 : index
    %c1_1569 = arith.constant 1 : index
    %636 = vector.load %arg1[%c0_1564, %c0_1565, %c0_1566, %c9_1567, %c0_1568, %c1_1569] : memref<1x2x2x11x8x8xf32, #tpu.memory_space<vmem>>, vector<1x1x1x1x8x5xf32>
    %637 = vector.shape_cast %636 : vector<1x1x1x1x8x5xf32> to vector<8x5xf32>
    %c0_1570 = arith.constant 0 : index
    %c0_1571 = arith.constant 0 : index
    %c1_1572 = arith.constant 1 : index
    %c9_1573 = arith.constant 9 : index
    %c0_1574 = arith.constant 0 : index
    %c1_1575 = arith.constant 1 : index
    %638 = vector.load %arg1[%c0_1570, %c0_1571, %c1_1572, %c9_1573, %c0_1574, %c1_1575] : memref<1x2x2x11x8x8xf32, #tpu.memory_space<vmem>>, vector<1x1x1x1x8x5xf32>
    %639 = vector.shape_cast %638 : vector<1x1x1x1x8x5xf32> to vector<8x5xf32>
    %c0_1576 = arith.constant 0 : index
    %c0_1577 = arith.constant 0 : index
    %c0_1578 = arith.constant 0 : index
    %c9_1579 = arith.constant 9 : index
    %c0_1580 = arith.constant 0 : index
    %c2_1581 = arith.constant 2 : index
    %640 = vector.load %arg1[%c0_1576, %c0_1577, %c0_1578, %c9_1579, %c0_1580, %c2_1581] : memref<1x2x2x11x8x8xf32, #tpu.memory_space<vmem>>, vector<1x1x1x1x8x5xf32>
    %641 = vector.shape_cast %640 : vector<1x1x1x1x8x5xf32> to vector<8x5xf32>
    %c0_1582 = arith.constant 0 : index
    %c0_1583 = arith.constant 0 : index
    %c1_1584 = arith.constant 1 : index
    %c9_1585 = arith.constant 9 : index
    %c0_1586 = arith.constant 0 : index
    %c2_1587 = arith.constant 2 : index
    %642 = vector.load %arg1[%c0_1582, %c0_1583, %c1_1584, %c9_1585, %c0_1586, %c2_1587] : memref<1x2x2x11x8x8xf32, #tpu.memory_space<vmem>>, vector<1x1x1x1x8x5xf32>
    %643 = vector.shape_cast %642 : vector<1x1x1x1x8x5xf32> to vector<8x5xf32>
    %c0_1588 = arith.constant 0 : index
    %c0_1589 = arith.constant 0 : index
    %c0_1590 = arith.constant 0 : index
    %c9_1591 = arith.constant 9 : index
    %c0_1592 = arith.constant 0 : index
    %c3_1593 = arith.constant 3 : index
    %644 = vector.load %arg1[%c0_1588, %c0_1589, %c0_1590, %c9_1591, %c0_1592, %c3_1593] : memref<1x2x2x11x8x8xf32, #tpu.memory_space<vmem>>, vector<1x1x1x1x8x5xf32>
    %645 = vector.shape_cast %644 : vector<1x1x1x1x8x5xf32> to vector<8x5xf32>
    %c0_1594 = arith.constant 0 : index
    %c1_1595 = arith.constant 1 : index
    %c0_1596 = arith.constant 0 : index
    %c9_1597 = arith.constant 9 : index
    %c0_1598 = arith.constant 0 : index
    %c0_1599 = arith.constant 0 : index
    %646 = vector.load %arg1[%c0_1594, %c1_1595, %c0_1596, %c9_1597, %c0_1598, %c0_1599] : memref<1x2x2x11x8x8xf32, #tpu.memory_space<vmem>>, vector<1x1x1x1x8x5xf32>
    %647 = vector.shape_cast %646 : vector<1x1x1x1x8x5xf32> to vector<8x5xf32>
    %c0_1600 = arith.constant 0 : index
    %c1_1601 = arith.constant 1 : index
    %c1_1602 = arith.constant 1 : index
    %c9_1603 = arith.constant 9 : index
    %c0_1604 = arith.constant 0 : index
    %c0_1605 = arith.constant 0 : index
    %648 = vector.load %arg1[%c0_1600, %c1_1601, %c1_1602, %c9_1603, %c0_1604, %c0_1605] : memref<1x2x2x11x8x8xf32, #tpu.memory_space<vmem>>, vector<1x1x1x1x8x5xf32>
    %649 = vector.shape_cast %648 : vector<1x1x1x1x8x5xf32> to vector<8x5xf32>
    %c0_1606 = arith.constant 0 : index
    %c1_1607 = arith.constant 1 : index
    %c0_1608 = arith.constant 0 : index
    %c9_1609 = arith.constant 9 : index
    %c0_1610 = arith.constant 0 : index
    %c1_1611 = arith.constant 1 : index
    %650 = vector.load %arg1[%c0_1606, %c1_1607, %c0_1608, %c9_1609, %c0_1610, %c1_1611] : memref<1x2x2x11x8x8xf32, #tpu.memory_space<vmem>>, vector<1x1x1x1x8x5xf32>
    %651 = vector.shape_cast %650 : vector<1x1x1x1x8x5xf32> to vector<8x5xf32>
    %c0_1612 = arith.constant 0 : index
    %c1_1613 = arith.constant 1 : index
    %c1_1614 = arith.constant 1 : index
    %c9_1615 = arith.constant 9 : index
    %c0_1616 = arith.constant 0 : index
    %c1_1617 = arith.constant 1 : index
    %652 = vector.load %arg1[%c0_1612, %c1_1613, %c1_1614, %c9_1615, %c0_1616, %c1_1617] : memref<1x2x2x11x8x8xf32, #tpu.memory_space<vmem>>, vector<1x1x1x1x8x5xf32>
    %653 = vector.shape_cast %652 : vector<1x1x1x1x8x5xf32> to vector<8x5xf32>
    %c0_1618 = arith.constant 0 : index
    %c1_1619 = arith.constant 1 : index
    %c0_1620 = arith.constant 0 : index
    %c9_1621 = arith.constant 9 : index
    %c0_1622 = arith.constant 0 : index
    %c2_1623 = arith.constant 2 : index
    %654 = vector.load %arg1[%c0_1618, %c1_1619, %c0_1620, %c9_1621, %c0_1622, %c2_1623] : memref<1x2x2x11x8x8xf32, #tpu.memory_space<vmem>>, vector<1x1x1x1x8x5xf32>
    %655 = vector.shape_cast %654 : vector<1x1x1x1x8x5xf32> to vector<8x5xf32>
    %c0_1624 = arith.constant 0 : index
    %c1_1625 = arith.constant 1 : index
    %c1_1626 = arith.constant 1 : index
    %c9_1627 = arith.constant 9 : index
    %c0_1628 = arith.constant 0 : index
    %c2_1629 = arith.constant 2 : index
    %656 = vector.load %arg1[%c0_1624, %c1_1625, %c1_1626, %c9_1627, %c0_1628, %c2_1629] : memref<1x2x2x11x8x8xf32, #tpu.memory_space<vmem>>, vector<1x1x1x1x8x5xf32>
    %657 = vector.shape_cast %656 : vector<1x1x1x1x8x5xf32> to vector<8x5xf32>
    %c0_1630 = arith.constant 0 : index
    %c1_1631 = arith.constant 1 : index
    %c0_1632 = arith.constant 0 : index
    %c9_1633 = arith.constant 9 : index
    %c0_1634 = arith.constant 0 : index
    %c3_1635 = arith.constant 3 : index
    %658 = vector.load %arg1[%c0_1630, %c1_1631, %c0_1632, %c9_1633, %c0_1634, %c3_1635] : memref<1x2x2x11x8x8xf32, #tpu.memory_space<vmem>>, vector<1x1x1x1x8x5xf32>
    %659 = vector.shape_cast %658 : vector<1x1x1x1x8x5xf32> to vector<8x5xf32>
    %c0_1636 = arith.constant 0 : index
    %c0_1637 = arith.constant 0 : index
    %c0_1638 = arith.constant 0 : index
    %c10_1639 = arith.constant 10 : index
    %c0_1640 = arith.constant 0 : index
    %c0_1641 = arith.constant 0 : index
    %660 = vector.load %arg1[%c0_1636, %c0_1637, %c0_1638, %c10_1639, %c0_1640, %c0_1641] : memref<1x2x2x11x8x8xf32, #tpu.memory_space<vmem>>, vector<1x1x1x1x8x5xf32>
    %661 = vector.shape_cast %660 : vector<1x1x1x1x8x5xf32> to vector<8x5xf32>
    %c0_1642 = arith.constant 0 : index
    %c0_1643 = arith.constant 0 : index
    %c1_1644 = arith.constant 1 : index
    %c10_1645 = arith.constant 10 : index
    %c0_1646 = arith.constant 0 : index
    %c0_1647 = arith.constant 0 : index
    %662 = vector.load %arg1[%c0_1642, %c0_1643, %c1_1644, %c10_1645, %c0_1646, %c0_1647] : memref<1x2x2x11x8x8xf32, #tpu.memory_space<vmem>>, vector<1x1x1x1x8x5xf32>
    %663 = vector.shape_cast %662 : vector<1x1x1x1x8x5xf32> to vector<8x5xf32>
    %c0_1648 = arith.constant 0 : index
    %c0_1649 = arith.constant 0 : index
    %c0_1650 = arith.constant 0 : index
    %c10_1651 = arith.constant 10 : index
    %c0_1652 = arith.constant 0 : index
    %c1_1653 = arith.constant 1 : index
    %664 = vector.load %arg1[%c0_1648, %c0_1649, %c0_1650, %c10_1651, %c0_1652, %c1_1653] : memref<1x2x2x11x8x8xf32, #tpu.memory_space<vmem>>, vector<1x1x1x1x8x5xf32>
    %665 = vector.shape_cast %664 : vector<1x1x1x1x8x5xf32> to vector<8x5xf32>
    %c0_1654 = arith.constant 0 : index
    %c0_1655 = arith.constant 0 : index
    %c1_1656 = arith.constant 1 : index
    %c10_1657 = arith.constant 10 : index
    %c0_1658 = arith.constant 0 : index
    %c1_1659 = arith.constant 1 : index
    %666 = vector.load %arg1[%c0_1654, %c0_1655, %c1_1656, %c10_1657, %c0_1658, %c1_1659] : memref<1x2x2x11x8x8xf32, #tpu.memory_space<vmem>>, vector<1x1x1x1x8x5xf32>
    %667 = vector.shape_cast %666 : vector<1x1x1x1x8x5xf32> to vector<8x5xf32>
    %c0_1660 = arith.constant 0 : index
    %c0_1661 = arith.constant 0 : index
    %c0_1662 = arith.constant 0 : index
    %c10_1663 = arith.constant 10 : index
    %c0_1664 = arith.constant 0 : index
    %c2_1665 = arith.constant 2 : index
    %668 = vector.load %arg1[%c0_1660, %c0_1661, %c0_1662, %c10_1663, %c0_1664, %c2_1665] : memref<1x2x2x11x8x8xf32, #tpu.memory_space<vmem>>, vector<1x1x1x1x8x5xf32>
    %669 = vector.shape_cast %668 : vector<1x1x1x1x8x5xf32> to vector<8x5xf32>
    %c0_1666 = arith.constant 0 : index
    %c0_1667 = arith.constant 0 : index
    %c1_1668 = arith.constant 1 : index
    %c10_1669 = arith.constant 10 : index
    %c0_1670 = arith.constant 0 : index
    %c2_1671 = arith.constant 2 : index
    %670 = vector.load %arg1[%c0_1666, %c0_1667, %c1_1668, %c10_1669, %c0_1670, %c2_1671] : memref<1x2x2x11x8x8xf32, #tpu.memory_space<vmem>>, vector<1x1x1x1x8x5xf32>
    %671 = vector.shape_cast %670 : vector<1x1x1x1x8x5xf32> to vector<8x5xf32>
    %c0_1672 = arith.constant 0 : index
    %c0_1673 = arith.constant 0 : index
    %c0_1674 = arith.constant 0 : index
    %c10_1675 = arith.constant 10 : index
    %c0_1676 = arith.constant 0 : index
    %c3_1677 = arith.constant 3 : index
    %672 = vector.load %arg1[%c0_1672, %c0_1673, %c0_1674, %c10_1675, %c0_1676, %c3_1677] : memref<1x2x2x11x8x8xf32, #tpu.memory_space<vmem>>, vector<1x1x1x1x8x5xf32>
    %673 = vector.shape_cast %672 : vector<1x1x1x1x8x5xf32> to vector<8x5xf32>
    %c0_1678 = arith.constant 0 : index
    %c1_1679 = arith.constant 1 : index
    %c0_1680 = arith.constant 0 : index
    %c10_1681 = arith.constant 10 : index
    %c0_1682 = arith.constant 0 : index
    %c0_1683 = arith.constant 0 : index
    %674 = vector.load %arg1[%c0_1678, %c1_1679, %c0_1680, %c10_1681, %c0_1682, %c0_1683] : memref<1x2x2x11x8x8xf32, #tpu.memory_space<vmem>>, vector<1x1x1x1x8x5xf32>
    %675 = vector.shape_cast %674 : vector<1x1x1x1x8x5xf32> to vector<8x5xf32>
    %c0_1684 = arith.constant 0 : index
    %c1_1685 = arith.constant 1 : index
    %c1_1686 = arith.constant 1 : index
    %c10_1687 = arith.constant 10 : index
    %c0_1688 = arith.constant 0 : index
    %c0_1689 = arith.constant 0 : index
    %676 = vector.load %arg1[%c0_1684, %c1_1685, %c1_1686, %c10_1687, %c0_1688, %c0_1689] : memref<1x2x2x11x8x8xf32, #tpu.memory_space<vmem>>, vector<1x1x1x1x8x5xf32>
    %677 = vector.shape_cast %676 : vector<1x1x1x1x8x5xf32> to vector<8x5xf32>
    %c0_1690 = arith.constant 0 : index
    %c1_1691 = arith.constant 1 : index
    %c0_1692 = arith.constant 0 : index
    %c10_1693 = arith.constant 10 : index
    %c0_1694 = arith.constant 0 : index
    %c1_1695 = arith.constant 1 : index
    %678 = vector.load %arg1[%c0_1690, %c1_1691, %c0_1692, %c10_1693, %c0_1694, %c1_1695] : memref<1x2x2x11x8x8xf32, #tpu.memory_space<vmem>>, vector<1x1x1x1x8x5xf32>
    %679 = vector.shape_cast %678 : vector<1x1x1x1x8x5xf32> to vector<8x5xf32>
    %c0_1696 = arith.constant 0 : index
    %c1_1697 = arith.constant 1 : index
    %c1_1698 = arith.constant 1 : index
    %c10_1699 = arith.constant 10 : index
    %c0_1700 = arith.constant 0 : index
    %c1_1701 = arith.constant 1 : index
    %680 = vector.load %arg1[%c0_1696, %c1_1697, %c1_1698, %c10_1699, %c0_1700, %c1_1701] : memref<1x2x2x11x8x8xf32, #tpu.memory_space<vmem>>, vector<1x1x1x1x8x5xf32>
    %681 = vector.shape_cast %680 : vector<1x1x1x1x8x5xf32> to vector<8x5xf32>
    %c0_1702 = arith.constant 0 : index
    %c1_1703 = arith.constant 1 : index
    %c0_1704 = arith.constant 0 : index
    %c10_1705 = arith.constant 10 : index
    %c0_1706 = arith.constant 0 : index
    %c2_1707 = arith.constant 2 : index
    %682 = vector.load %arg1[%c0_1702, %c1_1703, %c0_1704, %c10_1705, %c0_1706, %c2_1707] : memref<1x2x2x11x8x8xf32, #tpu.memory_space<vmem>>, vector<1x1x1x1x8x5xf32>
    %683 = vector.shape_cast %682 : vector<1x1x1x1x8x5xf32> to vector<8x5xf32>
    %c0_1708 = arith.constant 0 : index
    %c1_1709 = arith.constant 1 : index
    %c1_1710 = arith.constant 1 : index
    %c10_1711 = arith.constant 10 : index
    %c0_1712 = arith.constant 0 : index
    %c2_1713 = arith.constant 2 : index
    %684 = vector.load %arg1[%c0_1708, %c1_1709, %c1_1710, %c10_1711, %c0_1712, %c2_1713] : memref<1x2x2x11x8x8xf32, #tpu.memory_space<vmem>>, vector<1x1x1x1x8x5xf32>
    %685 = vector.shape_cast %684 : vector<1x1x1x1x8x5xf32> to vector<8x5xf32>
    %c0_1714 = arith.constant 0 : index
    %c1_1715 = arith.constant 1 : index
    %c0_1716 = arith.constant 0 : index
    %c10_1717 = arith.constant 10 : index
    %c0_1718 = arith.constant 0 : index
    %c3_1719 = arith.constant 3 : index
    %686 = vector.load %arg1[%c0_1714, %c1_1715, %c0_1716, %c10_1717, %c0_1718, %c3_1719] : memref<1x2x2x11x8x8xf32, #tpu.memory_space<vmem>>, vector<1x1x1x1x8x5xf32>
    %687 = vector.shape_cast %686 : vector<1x1x1x1x8x5xf32> to vector<8x5xf32>
    %688 = tpu.concatenate %633, %635, %637, %639, %641, %643, %645, %647, %649, %651, %653, %655, %657, %659, %661, %663 in 0 : vector<8x5xf32>, vector<8x5xf32>, vector<8x5xf32>, vector<8x5xf32>, vector<8x5xf32>, vector<8x5xf32>, vector<8x5xf32>, vector<8x5xf32>, vector<8x5xf32>, vector<8x5xf32>, vector<8x5xf32>, vector<8x5xf32>, vector<8x5xf32>, vector<8x5xf32>, vector<8x5xf32>, vector<8x5xf32> -> vector<128x5xf32>
    %689 = tpu.concatenate %665, %667, %669, %671, %673, %675, %677, %679, %681, %683, %685, %687 in 0 : vector<8x5xf32>, vector<8x5xf32>, vector<8x5xf32>, vector<8x5xf32>, vector<8x5xf32>, vector<8x5xf32>, vector<8x5xf32>, vector<8x5xf32>, vector<8x5xf32>, vector<8x5xf32>, vector<8x5xf32>, vector<8x5xf32> -> vector<96x5xf32>
    %690 = tpu.concatenate %688, %689 in 0 : vector<128x5xf32>, vector<96x5xf32> -> vector<224x5xf32>
    %cst_1720 = arith.constant dense<0.000000e+00> : vector<10x5xf32>
    %691 = tpu.matmul %0, %690, %cst_1720 {dimension_numbers = #tpu.dot_dimension_numbers<[1], [0], [0], [1], [0, 0, 1, 1], [], []>} : vector<10x224xf32>, vector<224x5xf32>, vector<10x5xf32> -> vector<10x5xf32>
    %692 = vector.broadcast %1 : vector<10x1xf32> to vector<10x5xf32>
    %693 = arith.addf %691, %692 : vector<10x5xf32>
    %cst_1721 = arith.constant 0.000000e+00 : f32
    %694 = vector.broadcast %cst_1721 : f32 to vector<10x5xf32>
    %695 = arith.cmpf ogt, %693, %694 : vector<10x5xf32>
    %cst_1722 = arith.constant -2.57949209 : f32
    %696 = vector.broadcast %cst_1722 : f32 to vector<10x5xf32>
    %697 = arith.mulf %693, %696 : vector<10x5xf32>
    %698 = arith.select %695, %693, %697 : vector<10x5xi1>, vector<10x5xf32>
    %c0_1723 = arith.constant 0 : index
    %c0_1724 = arith.constant 0 : index
    %c45 = arith.constant 45 : index
    %699 = vector.load %arg4[%c0_1723, %c0_1724, %c45] : memref<1x10x50xf32, #tpu.memory_space<vmem>>, vector<1x10x5xf32>
    %700 = vector.shape_cast %699 : vector<1x10x5xf32> to vector<10x5xf32>
    %701 = vector.shape_cast %698 : vector<10x5xf32> to vector<1x10x5xf32>
    tpu.vector_store %arg4[%c0_1723, %c0_1724, %c45], %701 {strides = array<i32>} : memref<1x10x50xf32, #tpu.memory_space<vmem>>, vector<1x10x5xf32>,
    return
  }
  func.func @transform_0(%arg0: i32) -> (i32, i32, i32, i32, i32, i32) {
    %c0_i32 = arith.constant 0 : i32
    %c0_i32_0 = arith.constant 0 : i32
    %c0_i32_1 = arith.constant 0 : i32
    %c0_i32_2 = arith.constant 0 : i32
    %c0_i32_3 = arith.constant 0 : i32
    %c0_i32_4 = arith.constant 0 : i32
    return %arg0, %c0_i32, %c0_i32_0, %c0_i32_1, %c0_i32_2, %c0_i32_3 : i32, i32, i32, i32, i32, i32
  }
  func.func @transform_1(%arg0: i32) -> (i32, i32) {
    %c0_i32 = arith.constant 0 : i32
    %c0_i32_0 = arith.constant 0 : i32
    %c0_i32_1 = arith.constant 0 : i32
    return %c0_i32, %c0_i32_0 : i32, i32
  }
  func.func @transform_2(%arg0: i32) -> (i32, i32) {
    %c0_i32 = arith.constant 0 : i32
    %c0_i32_0 = arith.constant 0 : i32
    %c0_i32_1 = arith.constant 0 : i32
    return %c0_i32, %c0_i32_0 : i32, i32
  }
  func.func @transform_3(%arg0: i32) -> (i32, i32, i32) {
    %c0_i32 = arith.constant 0 : i32
    %c0_i32_0 = arith.constant 0 : i32
    %c0_i32_1 = arith.constant 0 : i32
    return %arg0, %c0_i32, %c0_i32_0 : i32, i32, i32
  }
}

</mosaic_0001>

<bundles_post_ra>
// kernel: conv_leaky_pallas.1
= control target key start
LH: loop header
LB: loop body
LE: loop exit
PB: predicated region body
PF: predicated region fallthrough
CT: control target
= control target key end

     0   :  { %s2309_s12 = smov 0   ;;  %s3648_s0 = inlined_call_operand.vmem [shape: f32[2,2,2,11,8,8], index: 0, kind: input, shape index: {}]   ;;  %s3649_s1 = inlined_call_operand.vmem [shape: f32[10,224], index: 1, kind: input, shape index: {}]   ;;  %s3650_s2 = inlined_call_operand.vmem [shape: f32[10,1], index: 2, kind: input, shape index: {}]   ;;  %s3651_s3 = inlined_call_operand.vmem [shape: f32[2,10,50], index: 3, kind: output, shape index: {}]  }
   0x1 LB: > { %s2114_s13 = sadd.s32 4294967295, %s2272_s12   ;;  %p2118_p0 = scmp.ge.s32.totalorder %s2272_s12, 1  ;;  %s2272_s12 = sphi %s2309_s12, %s13_s12  }
   0x2   : > { %p137_p1 = scmp.lt.s32.totalorder %s2272_s12, 3 }
   0x4   : > { %p138_p2 = pnand %p2118_p0, %p137_p1 }
   0x5   : > { %p161_p3 = scmp.lt.s32.totalorder (!%p138_p2), %s2114_s13, 1  ;;  %s2274_s18 = smov (!%p138_p2), 127  }
   0x6   : > { %141 = sbr.rel (%p138_p2) target bundleno = 1047 (0x417), region = 32  ;;  %s2275_s19 = smov (!%p138_p2), 126  }
   0x7   : > { %s2276_s20 = smov (!%p138_p2), 1   ;;  %s2278_s21 = smov (!%p138_p2), 125  }
   0x8   : > { %s2282_s22 = smov (!%p138_p2), 15   ;;  %s2283_s23 = smov (!%p138_p2), 20  }
   0x9   : > { %s2284_s24 = smov (!%p138_p2), 25   ;;  %s2285_s25 = smov (!%p138_p2), 30  }
   0xa   : > { %s2286_s26 = smov (!%p138_p2), 35   ;;  %s2287_s27 = smov (!%p138_p2), 40  }
   0xb   : > { %s3653_s13 = smov (!%p161_p3, %s2114_s13), 1  ;;  %v2277_v9 = vmov 0.0   ;;  %v2548_v43 = vld [vmem:[%s3649_s1 + $0x8] sm:$0xff]  ;;  %vm284_vm0 = vcmask 785408   ;;  %vm374_vm1 = vcmask 33792   ;;  %vm372_vm8 = vcmask 39936  }
   0xc   : > { %s2224_s14 = smul.u32 352, %s3653_s13  ;;  %470 = vmatprep.subr.mxu1 %v2277_v9  ;;  %291 = vmatprep.subr.mxu0 %v2277_v9  ;;  %s2288_s28 = smov 45  }
   0xd   : > { %2139 = vmatprep.mubr.msk.f32.mxu1 %vm284_vm0, %v2548_v43  ;;  %2129 = vmatprep.mubr.msk.f32.mxu0 %vm284_vm0, %v2548_v43 }
   0xe   : > { %s2323_s17 = scalar_lea.vmem %s3648_s0, %s2224_s14 }
   0xf   : > { %v2326_v0 = vld [vmem:[%s2323_s17 + $0x110] sm:$0xff]  ;;  %v2329_v1 = vld [vmem:[%s2323_s17 + $0xb8] sm:$0xff]  ;;  %v2339_v3 = vld [vmem:[%s2323_s17 + $0xc0] sm:$0xff] }
  0x10   : > { %242 = vrot.lane.b32.xlu1 %v2326_v0, %s2274_s18  ;;  %244 = vrot.lane.b32.xlu0 %v2329_v1, %s2275_s19  ;;  %v2336_v2 = vld [vmem:[%s2323_s17 + $0x118] sm:$0xff]  ;;  %v2358_v4 = vld [vmem:[%s2323_s17 + $0x10] sm:$0xff] }
  0x11   : > { %v2361_v5 = vld [vmem:[%s2323_s17 + $0x8] sm:$0xff]  ;;  %v2371_v7 = vld [vmem:[%s2323_s17 + $0x60] sm:$0xff]  ;;  %v2382_v8 = vld [vmem:[%s2323_s17 + $0xb0] sm:$0xff] }
  0x12   : > { %v2368_v6 = vld [vmem:[%s2323_s17 + $0x68] sm:$0xff]  ;;  %292 = vmatpush1.msra.mxu0 %v2371_v7  ;;  %v2418_v11 = vld [vmem:[%s2323_s17] sm:$0xff]  ;;  %v2425_v12 = vld [vmem:[%s2323_s17 + $0x58] sm:$0xff] }
  0x13   : > { %471 = vmatpush1.msra.mxu1 %v2368_v6  ;;  %293 = vmatprep.subr.mxu0 %v2277_v9  ;;  %v2395_v10 = vld [vmem:[%s2323_s17 + $0x108] sm:$0xff]  ;;  %v2444_v13 = vld [vmem:[%s2323_s17 + $0xd0] sm:$0xff]  ;;  %v2454_v15 = vld [vmem:[%s2323_s17 + $0x120] sm:$0xff] }
  0x14   : > { %438 = vrot.lane.b32.xlu1 %v2336_v2, %s2274_s18  ;;  %440 = vrot.lane.b32.xlu0 %v2339_v3, %s2275_s19  ;;  %v2447_v14 = vld [vmem:[%s2323_s17 + $0xc8] sm:$0xff]  ;;  %v2476_v17 = vld [vmem:[%s2323_s17 + $0x18] sm:$0xff] }
  0x15   : > { %472 = vmatprep.subr.mxu1 %v2277_v9  ;;  %294 = vmatpush1.msra.mxu0 %v2361_v5  ;;  %v2461_v16 = vld [vmem:[%s2323_s17 + $0x128] sm:$0xff]  ;;  %v2481_v18 = vld [vmem:[%s2323_s17 + $0x20] sm:$0xff]  ;;  %v2486_v19 = vld [vmem:[%s2323_s17 + $0x70] sm:$0xff] }
  0x16   : > { %473 = vmatpush1.msra.mxu1 %v2358_v4  ;;  %295 = vmatprep.subr.mxu0 %v2277_v9  ;;  %v2491_v20 = vld [vmem:[%s2323_s17 + $0x78] sm:$0xff]  ;;  %v2603_v58 = vld [vmem:[%s2323_s17 + $0xe0] sm:$0xff]  ;;  %v2614_v60 = vld [vmem:[%s2323_s17 + $0x130] sm:$0xff] }
  0x17   : > { %474 = vmatprep.subr.mxu1 %v2277_v9  ;;  %v2629_v62 = vld [vmem:[%s2323_s17 + $0x138] sm:$0xff] }
  0x18   : > { %436 = vrot.lane.b32.xlu1 %v2339_v3, %s2274_s18  ;;  %240 = vrot.lane.b32.xlu0 %v2329_v1, %s2274_s18 }
  0x1c   : > { %434 = vrot.lane.b32.xlu1 %v2336_v2, %s2276_s20  ;;  %238 = vrot.lane.b32.xlu0 %v2326_v0, %s2276_s20 }
  0x20   : > { %431 = vrot.lane.b32.xlu1 %v2339_v3, %s2276_s20  ;;  %235 = vrot.lane.b32.xlu0 %v2329_v1, %s2276_s20 }
  0x24   : > { %428 = vrot.lane.b32.xlu1 %v2358_v4, %s2275_s19  ;;  %232 = vrot.lane.b32.xlu0 %v2361_v5, %s2275_s19 }
  0x28   : > { %426 = vrot.lane.b32.xlu1 %v2368_v6, %s2274_s18  ;;  %230 = vrot.lane.b32.xlu0 %v2371_v7, %s2274_s18 }
  0x2c   : > { %423 = vrot.lane.b32.xlu1 %v2358_v4, %s2274_s18  ;;  %227 = vrot.lane.b32.xlu0 %v2361_v5, %s2274_s18 }
  0x30   : > { %419 = vrot.lane.b32.xlu1 %v2329_v1, %s2278_s21  ;;  %223 = vrot.lane.b32.xlu0 %v2382_v8, %s2278_s21 }
  0x34   : > { %416 = vrot.lane.b32.xlu1 %v2326_v0, %s2275_s19  ;;  %220 = vrot.lane.b32.xlu0 %v2395_v10, %s2275_s19 }
  0x38   : > { %413 = vrot.lane.b32.xlu1 %v2329_v1, %s2275_s19  ;;  %217 = vrot.lane.b32.xlu0 %v2382_v8, %s2275_s19 }
  0x3c   : > { %410 = vrot.lane.b32.xlu1 %v2326_v0, %s2274_s18  ;;  %214 = vrot.lane.b32.xlu0 %v2395_v10, %s2274_s18 }
  0x40   : > { %406 = vrot.lane.b32.xlu1 %v2329_v1, %s2274_s18  ;;  %210 = vrot.lane.b32.xlu0 %v2382_v8, %s2274_s18 }
  0x44   : > { %402 = vrot.lane.b32.xlu1 %v2361_v5, %s2278_s21  ;;  %206 = vrot.lane.b32.xlu0 %v2418_v11, %s2278_s21 }
  0x48   : > { %399 = vrot.lane.b32.xlu1 %v2371_v7, %s2275_s19  ;;  %203 = vrot.lane.b32.xlu0 %v2425_v12, %s2275_s19 }
  0x4c   : > { %396 = vrot.lane.b32.xlu1 %v2361_v5, %s2275_s19  ;;  %200 = vrot.lane.b32.xlu0 %v2418_v11, %s2275_s19 }
  0x50   : > { %393 = vrot.lane.b32.xlu1 %v2371_v7, %s2274_s18  ;;  %197 = vrot.lane.b32.xlu0 %v2425_v12, %s2274_s18 }
  0x54   : > { %389 = vrot.lane.b32.xlu1 %v2361_v5, %s2274_s18  ;;  %193 = vrot.lane.b32.xlu0 %v2418_v11, %s2274_s18 }
  0x58   : > { %814 = vrot.lane.b32.xlu1 %v2444_v13, %s2275_s19  ;;  %627 = vrot.lane.b32.xlu0 %v2447_v14, %s2275_s19 }
  0x5c   : > { %625 = vrot.lane.b32.xlu1 %v2454_v15, %s2274_s18  ;;  %621 = vrot.lane.b32.xlu0 %v2454_v15, %s2276_s20 }
  0x60   : > { %812 = vrot.lane.b32.xlu1 %v2461_v16, %s2274_s18 }
  0x64   : > { %623 = vrot.lane.b32.xlu1 %v2447_v14, %s2274_s18 }
  0x68   : > { %810 = vrot.lane.b32.xlu1 %v2444_v13, %s2274_s18 }
  0x6c   : > { %808 = vrot.lane.b32.xlu1 %v2461_v16, %s2276_s20 }
  0x70   : > { %618 = vrot.lane.b32.xlu1 %v2447_v14, %s2276_s20 }
  0x74   : > { %805 = vrot.lane.b32.xlu1 %v2444_v13, %s2276_s20 }
  0x78   : > { %615 = vrot.lane.b32.xlu1 %v2476_v17, %s2275_s19 }
  0x7c   : > { %802 = vrot.lane.b32.xlu1 %v2481_v18, %s2275_s19 }
  0x80   : > { %613 = vrot.lane.b32.xlu1 %v2486_v19, %s2274_s18 }
  0x82   : > { %v2493_v21 = vpop.permute.xlu1 %242  ;;  %v245_v22 = vpop.permute.xlu0 %244 }
  0x83   : > { %260 = vrot.lane.b32.xlu0 %v245_v22, %s2274_s18  ;;  %v2667_v22 = vld [vmem:[%s2323_s17 + $0x28] sm:$0xff] }
  0x84   : > { %800 = vrot.lane.b32.xlu1 %v2491_v20, %s2274_s18 }
  0x86   : > { %v2498_v23 = vpop.permute.xlu1 %438  ;;  %v441_v24 = vpop.permute.xlu0 %440 }
  0x87   : > { %456 = vrot.lane.b32.xlu0 %v441_v24, %s2274_s18 }
  0x8a   : > { %v2501_v25 = vpop.permute.xlu1 %436  ;;  %v2503_v26 = vpop.permute.xlu0 %240 }
  0x8b   : > { %258 = vrot.lane.b32.xlu0 %v2493_v21, %s2274_s18  ;;  %452 = vrot.lane.b32.xlu1 %v2501_v25, %s2274_s18 }
  0x8e   : > { %v435_v27 = vpop.permute.xlu1 %434  ;;  %v239_v28 = vpop.permute.xlu0 %238 }
  0x8f   : > { %454 = vrot.lane.b32.xlu0 %v2498_v23, %s2274_s18  ;;  %610 = vrot.lane.b32.xlu1 %v2476_v17, %s2274_s18 }
  0x92   : > { %v432_v29 = vpop.permute.xlu1 %431  ;;  %v236_v30 = vpop.permute.xlu0 %235 }
  0x93   : > { %256 = vrot.lane.b32.xlu0 %v2503_v26, %s2274_s18  ;;  %797 = vrot.lane.b32.xlu1 %v2481_v18, %s2274_s18 }
  0x96   : > { %v429_v31 = vpop.permute.xlu1 %428  ;;  %v233_v32 = vpop.permute.xlu0 %232 }
  0x97   : > { %254 = vrot.lane.b32.xlu0 %v239_v28, %s2274_s18  ;;  %v2676_v28 = vld [vmem:[%s2323_s17 + $0x30] sm:$0xff] }
  0x9a   : > { %v2518_v33 = vpop.permute.xlu1 %426  ;;  %v2520_v34 = vpop.permute.xlu0 %230 }
  0x9b   : > { %450 = vrot.lane.b32.xlu0 %v435_v27, %s2274_s18 }
  0x9e   : > { %v2523_v35 = vpop.permute.xlu1 %423  ;;  %v2525_v36 = vpop.permute.xlu0 %227 }
  0x9f   : > { %442 = vrot.lane.b32.xlu1 %v2523_v35, %s2274_s18  ;;  %252 = vrot.lane.b32.xlu0 %v236_v30, %s2274_s18  ;;  %v2685_v30 = vld [vmem:[%s2323_s17 + $0x80] sm:$0xff] }
  0xa2   : > { %v420_v37 = vpop.permute.xlu1 %419  ;;  %v224_v38 = vpop.permute.xlu0 %223 }
  0xa3   : > { %793 = vrot.lane.b32.xlu1 %v2447_v14, %s2278_s21  ;;  %448 = vrot.lane.b32.xlu0 %v432_v29, %s2274_s18 }
  0xa4   : > { %475 = vmatpush1.msra.mxu1 %v420_v37  ;;  %296 = vmatpush1.msra.mxu0 %v224_v38  ;;  %v2694_v37 = vld [vmem:[%s2323_s17 + $0x88] sm:$0xff] }
  0xa5   : > { %476 = vmatprep.subr.mxu1 %v2277_v9  ;;  %297 = vmatprep.subr.mxu0 %v2277_v9 }
  0xa6   : > { %v417_v39 = vpop.permute.xlu1 %416  ;;  %v221_v40 = vpop.permute.xlu0 %220 }
  0xa7   : > { %790 = vrot.lane.b32.xlu1 %v2454_v15, %s2275_s19  ;;  %250 = vrot.lane.b32.xlu0 %v233_v32, %s2274_s18 }
  0xa8   : > { %477 = vmatpush1.msra.mxu1 %v417_v39  ;;  %298 = vmatpush1.msra.mxu0 %v221_v40 }
  0xa9   : > { %478 = vmatprep.subr.mxu1 %v2277_v9  ;;  %299 = vmatprep.subr.mxu0 %v2277_v9 }
  0xaa   : > { %v414_v41 = vpop.permute.xlu1 %413  ;;  %v218_v42 = vpop.permute.xlu0 %217 }
  0xab   : > { %787 = vrot.lane.b32.xlu1 %v2447_v14, %s2275_s19  ;;  %446 = vrot.lane.b32.xlu0 %v429_v31, %s2274_s18 }
  0xac   : > { %479 = vmatpush1.msra.mxu1 %v414_v41  ;;  %300 = vmatpush1.msra.mxu0 %v218_v42 }
  0xad   : > { %480 = vmatprep.subr.mxu1 %v2277_v9  ;;  %301 = vmatprep.subr.mxu0 %v2277_v9 }
  0xae   : > { %v411_v44 = vpop.permute.xlu1 %410  ;;  %v215_v45 = vpop.permute.xlu0 %214 }
  0xaf   : > { %784 = vrot.lane.b32.xlu1 %v2454_v15, %s2274_s18  ;;  %248 = vrot.lane.b32.xlu0 %v2520_v34, %s2274_s18 }
  0xb0   : > { %481 = vmatpush1.msra.mxu1 %v411_v44  ;;  %302 = vmatpush1.msra.mxu0 %v215_v45 }
  0xb1   : > { %482 = vmatprep.subr.mxu1 %v2277_v9  ;;  %303 = vmatprep.subr.mxu0 %v2277_v9 }
  0xb2   : > { %v407_v46 = vpop.permute.xlu1 %406  ;;  %v211_v47 = vpop.permute.xlu0 %210 }
  0xb3   : > { %780 = vrot.lane.b32.xlu1 %v2447_v14, %s2274_s18  ;;  %444 = vrot.lane.b32.xlu0 %v2518_v33, %s2274_s18 }
  0xb4   : > { %483 = vmatpush1.msra.mxu1 %v407_v46  ;;  %304 = vmatpush1.msra.mxu0 %v211_v47 }
  0xb5   : > { %484 = vmatprep.subr.mxu1 %v2277_v9  ;;  %305 = vmatprep.subr.mxu0 %v2277_v9 }
  0xb6   : > { %v403_v48 = vpop.permute.xlu1 %402  ;;  %485 = vmatpush1.msra.mxu1 %v2326_v0  ;;  %306 = vmatpush1.msra.mxu0 %v2395_v10  ;;  %v207_v49 = vpop.permute.xlu0 %206  ;;  %v2638_v0 = vld [vmem:[%s2323_s17 + $0xd8] sm:$0xff] }
  0xb7   : > { %776 = vrot.lane.b32.xlu1 %v2476_v17, %s2278_s21  ;;  %246 = vrot.lane.b32.xlu0 %v2525_v36, %s2274_s18 }
  0xb8   : > { %486 = vmatprep.subr.mxu1 %v2277_v9  ;;  %307 = vmatprep.subr.mxu0 %v2277_v9 }
  0xb9   : > { %487 = vmatpush1.msra.mxu1 %v2329_v1  ;;  %308 = vmatpush1.msra.mxu0 %v2382_v8 }
  0xba   : > { %v400_v50 = vpop.permute.xlu1 %399  ;;  %488 = vmatprep.subr.mxu1 %v2277_v9  ;;  %309 = vmatprep.subr.mxu0 %v2277_v9  ;;  %v204_v51 = vpop.permute.xlu0 %203 }
  0xbb   : > { %773 = vrot.lane.b32.xlu1 %v2486_v19, %s2275_s19  ;;  %606 = vrot.lane.b32.xlu0 %v2339_v3, %s2278_s21 }
  0xbc   : > { %489 = vmatpush1.msra.mxu1 %v403_v48  ;;  %310 = vmatpush1.msra.mxu0 %v207_v49 }
  0xbd   : > { %490 = vmatprep.subr.mxu1 %v2277_v9  ;;  %311 = vmatprep.subr.mxu0 %v2277_v9 }
  0xbe   : > { %v397_v52 = vpop.permute.xlu1 %396  ;;  %491 = vmatpush1.msra.mxu1 %v400_v50  ;;  %312 = vmatpush1.msra.mxu0 %v204_v51  ;;  %v201_v53 = vpop.permute.xlu0 %200 }
  0xbf   : > { %770 = vrot.lane.b32.xlu1 %v2476_v17, %s2275_s19  ;;  %603 = vrot.lane.b32.xlu0 %v2336_v2, %s2275_s19 }
  0xc0   : > { %492 = vmatprep.subr.mxu1 %v2277_v9  ;;  %313 = vmatprep.subr.mxu0 %v2277_v9 }
  0xc1   : > { %493 = vmatpush1.msra.mxu1 %v397_v52  ;;  %314 = vmatpush1.msra.mxu0 %v201_v53 }
  0xc2   : > { %v394_v54 = vpop.permute.xlu1 %393  ;;  %494 = vmatprep.subr.mxu1 %v2277_v9  ;;  %315 = vmatprep.subr.mxu0 %v2277_v9  ;;  %v198_v55 = vpop.permute.xlu0 %197 }
  0xc3   : > { %767 = vrot.lane.b32.xlu1 %v2486_v19, %s2274_s18  ;;  %600 = vrot.lane.b32.xlu0 %v2339_v3, %s2275_s19 }
  0xc4   : > { %495 = vmatpush1.msra.mxu1 %v394_v54  ;;  %316 = vmatpush1.msra.mxu0 %v198_v55 }
  0xc5   : > { %496 = vmatprep.subr.mxu1 %v2277_v9  ;;  %317 = vmatprep.subr.mxu0 %v2277_v9 }
  0xc6   : > { %v390_v56 = vpop.permute.xlu1 %389  ;;  %v194_v57 = vpop.permute.xlu0 %193 }
  0xc7   : > { %763 = vrot.lane.b32.xlu1 %v2476_v17, %s2274_s18  ;;  %597 = vrot.lane.b32.xlu0 %v2336_v2, %s2274_s18 }
  0xc8   : > { %497 = vmatpush1.msra.mxu1 %v390_v56  ;;  %318 = vmatpush1.msra.mxu0 %v194_v57 }
  0xc9   : > { %319 = vmatprep.subr.mxu0 %v2277_v9  ;;  %498 = vmatprep.subr.mxu1 %v2277_v9 }
  0xca   : > { %v815_v59 = vpop.permute.xlu1 %814  ;;  %320 = vmatpush1.msra.mxu0 %v2425_v12  ;;  %499 = vmatpush1.msra.mxu1 %v2371_v7  ;;  %v628_v10 = vpop.permute.xlu0 %627 }
  0xcb   : > { %1188 = vrot.lane.b32.xlu1 %v2603_v58, %s2275_s19  ;;  %593 = vrot.lane.b32.xlu0 %v2339_v3, %s2274_s18 }
  0xcc   : > { %321 = vmatprep.subr.mxu0 %v2277_v9  ;;  %500 = vmatprep.subr.mxu1 %v2277_v9 }
  0xcd   : > { %322 = vmatpush1.msra.mxu0 %v2418_v11  ;;  %501 = vmatpush1.msra.mxu1 %v2361_v5 }
  0xce   : > { %v2620_v61 = vpop.permute.xlu1 %625  ;;  %331 = vmatprep.subr.mxu0 %v2277_v9  ;;  %510 = vmatprep.subr.mxu1 %v2277_v9  ;;  %v622_v27 = vpop.permute.xlu0 %621 }
  0xcf   : > { %999 = vrot.lane.b32.xlu1 %v2614_v60, %s2274_s18  ;;  %589 = vrot.lane.b32.xlu0 %v2358_v4, %s2278_s21 }
  0xd2   : > { %v2631_v63 = vpop.permute.xlu1 %812 }
  0xd3   : > { %1186 = vrot.lane.b32.xlu1 %v2629_v62, %s2274_s18  ;;  %586 = vrot.lane.b32.xlu0 %v2368_v6, %s2275_s19 }
  0xd6   : > { %v2640_v1 = vpop.permute.xlu1 %623 }
  0xd7   : > { %997 = vrot.lane.b32.xlu1 %v2638_v0, %s2274_s18  ;;  %583 = vrot.lane.b32.xlu0 %v2358_v4, %s2275_s19 }
  0xda   : > { %v2646_v5 = vpop.permute.xlu1 %810 }
  0xdb   : > { %1184 = vrot.lane.b32.xlu1 %v2603_v58, %s2274_s18  ;;  %580 = vrot.lane.b32.xlu0 %v2368_v6, %s2274_s18 }
  0xde   : > { %v809_v7 = vpop.permute.xlu1 %808 }
  0xdf   : > { %826 = vrot.lane.b32.xlu1 %v2646_v5, %s2274_s18  ;;  %576 = vrot.lane.b32.xlu0 %v2358_v4, %s2274_s18 }
  0xe2   : > { %v619_v8 = vpop.permute.xlu1 %618 }
  0xe3   : > { %1182 = vrot.lane.b32.xlu1 %v2629_v62, %s2276_s20  ;;  %1001 = vrot.lane.b32.xlu0 %v2638_v0, %s2275_s19 }
  0xe6   : > { %v806_v11 = vpop.permute.xlu1 %805 }
  0xe7   : > { %992 = vrot.lane.b32.xlu1 %v2638_v0, %s2276_s20  ;;  %643 = vrot.lane.b32.xlu0 %v628_v10, %s2274_s18  ;;  %v2822_v10 = vld [vmem:[%s2323_s17 + $0x140] sm:$0xff] }
  0xea   : > { %v616_v12 = vpop.permute.xlu1 %615 }
  0xeb   : > { %1179 = vrot.lane.b32.xlu1 %v2603_v58, %s2276_s20  ;;  %830 = vrot.lane.b32.xlu0 %v815_v59, %s2274_s18  ;;  %v2786_v59 = vld [vmem:[%s3649_s1] sm:$0xff] }
  0xee   : > { %v2669_v24 = vpop.permute.xlu1 %802 }
  0xef   : > { %989 = vrot.lane.b32.xlu1 %v2667_v22, %s2275_s19  ;;  %641 = vrot.lane.b32.xlu0 %v2620_v61, %s2274_s18 }
  0xf2   : > { %v2678_v29 = vpop.permute.xlu1 %613 }
  0xf3   : > { %1176 = vrot.lane.b32.xlu1 %v2676_v28, %s2275_s19  ;;  %828 = vrot.lane.b32.xlu0 %v2631_v63, %s2274_s18 }
  0xf5   : > { %v261_v31 = vpop.permute.xlu0 %260 }
  0xf6   : > { %332 = vmatpush2.msra.mxu0 %v261_v31  ;;  %v2691_v32 = vpop.permute.xlu1 %800  ;;  %v2849_v31 = vld [vmem:[%s2323_s17 + $0xe8] sm:$0xff] }
  0xf7   : > { %987 = vrot.lane.b32.xlu1 %v2685_v30, %s2274_s18  ;;  %639 = vrot.lane.b32.xlu0 %v2640_v1, %s2274_s18 }
  0xf8   : > { %333 = vmatprep.subr.mxu0 %v2277_v9 }
  0xf9   : > { %v457_v38 = vpop.permute.xlu0 %456 }
  0xfa   : > { %511 = vmatpush2.msra.mxu1 %v457_v38 }
  0xfb   : > { %1174 = vrot.lane.b32.xlu1 %v2694_v37, %s2274_s18  ;;  %995 = vrot.lane.b32.xlu0 %v2614_v60, %s2276_s20 }
  0xfc   : > { %512 = vmatprep.subr.mxu1 %v2277_v9 }
  0xfd   : > { %v259_v39 = vpop.permute.xlu0 %258  ;;  %v453_v40 = vpop.permute.xlu1 %452 }
  0xfe   : > { %334 = vmatpush2.msra.mxu0 %v259_v39 }
  0xff   : > { %984 = vrot.lane.b32.xlu1 %v2667_v22, %s2274_s18  ;;  %637 = vrot.lane.b32.xlu0 %v622_v27, %s2274_s18 }
 0x100   : > { %335 = vmatprep.subr.mxu0 %v2277_v9 }
 0x101   : > { %v455_v41 = vpop.permute.xlu0 %454  ;;  %v2706_v42 = vpop.permute.xlu1 %610 }
 0x102   : > { %513 = vmatpush2.msra.mxu1 %v455_v41 }
 0x103   : > { %1171 = vrot.lane.b32.xlu1 %v2676_v28, %s2274_s18  ;;  %824 = vrot.lane.b32.xlu0 %v809_v7, %s2274_s18 }
 0x104   : > { %514 = vmatprep.subr.mxu1 %v2277_v9 }
 0x105   : > { %515 = vmatpush2.msra.mxu1 %v453_v40  ;;  %v257_v44 = vpop.permute.xlu0 %256  ;;  %v2712_v45 = vpop.permute.xlu1 %797 }
 0x106   : > { %516 = vmatprep.subr.mxu1 %v2277_v9  ;;  %336 = vmatpush2.msra.mxu0 %v257_v44 }
 0x107   : > { %517 = vmatpush2.msra.mxu1 %v2498_v23  ;;  %816 = vrot.lane.b32.xlu1 %v2712_v45, %s2274_s18 }
 0x108   : > { %635 = vrot.lane.b32.xlu0 %v619_v8, %s2274_s18  ;;  %337 = vmatprep.subr.mxu0 %v2277_v9 }
 0x109   : > { %518 = vmatprep.subr.mxu1 %v2277_v9  ;;  %338 = vmatpush2.msra.mxu0 %v2493_v21  ;;  %v255_v46 = vpop.permute.xlu0 %254 }
 0x10a   : > { %519 = vmatpush2.msra.mxu1 %v2501_v25  ;;  %339 = vmatprep.subr.mxu0 %v2277_v9 }
 0x10b   : > { %340 = vmatpush2.msra.mxu0 %v2503_v26  ;;  %1167 = vrot.lane.b32.xlu1 %v2638_v0, %s2278_s21 }
 0x10c   : > { %822 = vrot.lane.b32.xlu0 %v806_v11, %s2274_s18  ;;  %341 = vmatprep.subr.mxu0 %v2277_v9 }
 0x10d   : > { %342 = vmatpush2.msra.mxu0 %v255_v46  ;;  %520 = vmatprep.subr.mxu1 %v2277_v9  ;;  %v451_v23 = vpop.permute.xlu0 %450 }
 0x10e   : > { %521 = vmatpush2.msra.mxu1 %v451_v23  ;;  %343 = vmatprep.subr.mxu0 %v2277_v9 }
 0x10f   : > { %1164 = vrot.lane.b32.xlu1 %v2614_v60, %s2275_s19  ;;  %522 = vmatprep.subr.mxu1 %v2277_v9 }
 0x110   : > { %633 = vrot.lane.b32.xlu0 %v616_v12, %s2274_s18 }
 0x111   : > { %v443_v21 = vpop.permute.xlu1 %442  ;;  %v253_v25 = vpop.permute.xlu0 %252 }
 0x112   : > { %344 = vmatpush2.msra.mxu0 %v253_v25  ;;  %v2931_v25 = vld [vmem:[%s2323_s17 + $0x38] sm:$0xff] }
 0x113   : > { %1161 = vrot.lane.b32.xlu1 %v2638_v0, %s2275_s19  ;;  %345 = vmatprep.subr.mxu0 %v2277_v9 }
 0x114   : > { %820 = vrot.lane.b32.xlu0 %v2669_v24, %s2274_s18 }
 0x115   : > { %v794_v26 = vpop.permute.xlu1 %793  ;;  %v449_v47 = vpop.permute.xlu0 %448 }
 0x116   : > { %523 = vmatpush2.msra.mxu1 %v449_v47 }
 0x117   : > { %1158 = vrot.lane.b32.xlu1 %v2614_v60, %s2274_s18  ;;  %524 = vmatprep.subr.mxu1 %v2277_v9 }
 0x118   : > { %631 = vrot.lane.b32.xlu0 %v2678_v29, %s2274_s18 }
 0x119   : > { %v2745_v48 = vpop.permute.xlu1 %790  ;;  %v251_v49 = vpop.permute.xlu0 %250 }
 0x11a   : > { %346 = vmatpush2.msra.mxu0 %v251_v49 }
 0x11b   : > { %1154 = vrot.lane.b32.xlu1 %v2638_v0, %s2274_s18  ;;  %347 = vmatprep.subr.mxu0 %v2277_v9 }
 0x11c   : > { %818 = vrot.lane.b32.xlu0 %v2691_v32, %s2274_s18 }
 0x11d   : > { %v2752_v50 = vpop.permute.xlu1 %787  ;;  %v447_v51 = vpop.permute.xlu0 %446 }
 0x11e   : > { %525 = vmatpush2.msra.mxu1 %v447_v51  ;;  %v2954_v51 = vld [vmem:[%s2323_s17 + $0x90] sm:$0xff] }
 0x11f   : > { %1150 = vrot.lane.b32.xlu1 %v2667_v22, %s2278_s21  ;;  %526 = vmatprep.subr.mxu1 %v2277_v9 }
 0x120   : > { %629 = vrot.lane.b32.xlu0 %v2706_v42, %s2274_s18 }
 0x121   : > { %v2759_v52 = vpop.permute.xlu1 %784  ;;  %v249_v53 = vpop.permute.xlu0 %248 }
 0x122   : > { %348 = vmatpush2.msra.mxu0 %v249_v53  ;;  %v2965_v53 = vld [vmem:[%s2323_s17 + $0x98] sm:$0xff] }
 0x123   : > { %1147 = vrot.lane.b32.xlu1 %v2685_v30, %s2275_s19  ;;  %349 = vmatprep.subr.mxu0 %v2277_v9 }
 0x124   : > { %980 = vrot.lane.b32.xlu0 %v2444_v13, %s2278_s21 }
 0x125   : > { %v2766_v54 = vpop.permute.xlu1 %780  ;;  %v445_v55 = vpop.permute.xlu0 %444 }
 0x126   : > { %527 = vmatpush2.msra.mxu1 %v445_v55 }
 0x127   : > { %1144 = vrot.lane.b32.xlu1 %v2667_v22, %s2275_s19  ;;  %528 = vmatprep.subr.mxu1 %v2277_v9 }
 0x128   : > { %977 = vrot.lane.b32.xlu0 %v2461_v16, %s2275_s19  ;;  %529 = vmatpush2.msra.mxu1 %v443_v21 }
 0x129   : > { %v2773_v56 = vpop.permute.xlu1 %776  ;;  %530 = vmatprep.subr.mxu1 %v2277_v9  ;;  %v247_v57 = vpop.permute.xlu0 %246 }
 0x12a   : > { %350 = vmatpush2.msra.mxu0 %v247_v57  ;;  %531 = vmatpush2.msra.mxu1 %v2518_v33 }
 0x12b   : > { %1141 = vrot.lane.b32.xlu1 %v2685_v30, %s2274_s18  ;;  %351 = vmatprep.subr.mxu0 %v2277_v9 }
 0x12c   : > { %974 = vrot.lane.b32.xlu0 %v2444_v13, %s2275_s19  ;;  %532 = vmatprep.subr.mxu1 %v2277_v9 }
 0x12d   : > { %352 = vmatpush2.msra.mxu0 %v2520_v34  ;;  %533 = vmatpush2.msra.mxu1 %v2523_v35  ;;  %v2790_v33 = vpop.permute.xlu1 %773  ;;  %v607_v7 = vpop.permute.xlu0 %606 }
 0x12e   : > { %353 = vmatprep.subr.mxu0 %v2277_v9  ;;  %844 = vmatprep.subr.mxu1 %v2277_v9 }
 0x12f   : > { %354 = vmatpush2.msra.mxu0 %v2525_v36  ;;  %535 = vmatmul.mubr.f32.vlgmr.msra.gmra.mxu1 %v2786_v59  ;;  %v2809_v36 = vld [vmem:[%s2323_s17 + $0xf0] sm:$0xff] }
 0x130   : > { %845 = vmatpush1.msra.mxu1 %v2491_v20  ;;  %1137 = vrot.lane.b32.xlu1 %v2667_v22, %s2274_s18 }
 0x131   : > { %971 = vrot.lane.b32.xlu0 %v2461_v16, %s2274_s18  ;;  %657 = vmatprep.subr.mxu0 %v2277_v9  ;;  %v2802_v34 = vpop.permute.xlu1 %770  ;;  %v604_v35 = vpop.permute.xlu0 %603 }
 0x132   : > { %846 = vmatprep.subr.mxu1 %v2277_v9  ;;  %356 = vmatmul.mubr.f32.vlgmr.msra.gmra.mxu0 %v2786_v59 }
 0x133   : > { %658 = vmatpush1.msra.mxu0 %v2486_v19  ;;  %847 = vmatpush1.msra.mxu1 %v2481_v18 }
 0x134   : > { %659 = vmatprep.subr.mxu0 %v2277_v9  ;;  %848 = vmatprep.subr.mxu1 %v2277_v9 }
 0x135   : > { %660 = vmatpush1.msra.mxu0 %v2476_v17  ;;  %849 = vmatpush1.msra.mxu1 %v794_v26  ;;  %v768_v16 = vpop.permute.xlu1 %767  ;;  %v601_v8 = vpop.permute.xlu0 %600 }
 0x136   : > { %1562 = vrot.lane.b32.xlu1 %v2809_v36, %s2275_s19  ;;  %967 = vrot.lane.b32.xlu0 %v2444_v13, %s2274_s18  ;;  %v2835_v13 = vld [vmem:[%s2323_s17 + $0x148] sm:$0xff] }
 0x137   : > { %661 = vmatprep.subr.mxu0 %v2277_v9  ;;  %850 = vmatprep.subr.mxu1 %v2277_v9 }
 0x138   : > { %662 = vmatpush1.msra.mxu0 %v607_v7  ;;  %851 = vmatpush1.msra.mxu1 %v2745_v48  ;;  %v2946_v48 = vld [vmem:[%s2323_s17 + $0x40] sm:$0xff] }
 0x139   : > { %663 = vmatprep.subr.mxu0 %v2277_v9  ;;  %852 = vmatprep.subr.mxu1 %v2277_v9  ;;  %v764_v11 = vpop.permute.xlu1 %763  ;;  %v598_v12 = vpop.permute.xlu0 %597 }
 0x13a   : > { %664 = vmatpush1.msra.mxu0 %v604_v35  ;;  %853 = vmatpush1.msra.mxu1 %v2752_v50 }
 0x13b   : > { %1373 = vrot.lane.b32.xlu1 %v2822_v10, %s2274_s18  ;;  %963 = vrot.lane.b32.xlu0 %v2481_v18, %s2278_s21 }
 0x13c   : > { %665 = vmatprep.subr.mxu0 %v2277_v9  ;;  %854 = vmatprep.subr.mxu1 %v2277_v9 }
 0x13d   : > { %666 = vmatpush1.msra.mxu0 %v601_v8  ;;  %855 = vmatpush1.msra.mxu1 %v2759_v52  ;;  %v2837_v24 = vpop.permute.xlu1 %1188  ;;  %v594_v27 = vpop.permute.xlu0 %593 }
 0x13e   : > { %667 = vmatprep.subr.mxu0 %v2277_v9  ;;  %856 = vmatprep.subr.mxu1 %v2277_v9 }
 0x13f   : > { %668 = vmatpush1.msra.mxu0 %v598_v12  ;;  %857 = vmatpush1.msra.mxu1 %v2766_v54 }
 0x140   : > { %1560 = vrot.lane.b32.xlu1 %v2835_v13, %s2274_s18  ;;  %960 = vrot.lane.b32.xlu0 %v2491_v20, %s2275_s19 }
 0x141   : > { %858 = vmatprep.subr.mxu1 %v2277_v9  ;;  %669 = vmatprep.subr.mxu0 %v2277_v9  ;;  %v2851_v38 = vpop.permute.xlu1 %999  ;;  %v590_v39 = vpop.permute.xlu0 %589 }
 0x142   : > { %859 = vmatpush1.msra.mxu1 %v2454_v15  ;;  %670 = vmatpush1.msra.mxu0 %v594_v27 }
 0x143   : > { %860 = vmatprep.subr.mxu1 %v2277_v9  ;;  %671 = vmatprep.subr.mxu0 %v2277_v9 }
 0x144   : > { %861 = vmatpush1.msra.mxu1 %v2447_v14  ;;  %1371 = vrot.lane.b32.xlu1 %v2849_v31, %s2274_s18 }
 0x145   : > { %957 = vrot.lane.b32.xlu0 %v2481_v18, %s2275_s19  ;;  %862 = vmatprep.subr.mxu1 %v2277_v9  ;;  %v2862_v40 = vpop.permute.xlu1 %1186  ;;  %v587_v41 = vpop.permute.xlu0 %586 }
 0x146   : > { %672 = vmatpush1.msra.mxu0 %v2336_v2  ;;  %863 = vmatpush1.msra.mxu1 %v2773_v56 }
 0x147   : > { %673 = vmatprep.subr.mxu0 %v2277_v9  ;;  %864 = vmatprep.subr.mxu1 %v2277_v9 }
 0x148   : > { %674 = vmatpush1.msra.mxu0 %v2339_v3  ;;  %865 = vmatpush1.msra.mxu1 %v2790_v33 }
 0x149   : > { %1558 = vrot.lane.b32.xlu1 %v2809_v36, %s2274_s18  ;;  %954 = vrot.lane.b32.xlu0 %v2491_v20, %s2274_s18  ;;  %v2874_v14 = vpop.permute.xlu1 %997  ;;  %v584_v15 = vpop.permute.xlu0 %583 }
 0x14a   : > { %675 = vmatprep.subr.mxu0 %v2277_v9  ;;  %866 = vmatprep.subr.mxu1 %v2277_v9 }
 0x14b   : > { %676 = vmatpush1.msra.mxu0 %v590_v39  ;;  %867 = vmatpush1.msra.mxu1 %v2802_v34 }
 0x14c   : > { %677 = vmatprep.subr.mxu0 %v2277_v9  ;;  %868 = vmatprep.subr.mxu1 %v2277_v9 }
 0x14d   : > { %678 = vmatpush1.msra.mxu0 %v587_v41  ;;  %869 = vmatpush1.msra.mxu1 %v768_v16  ;;  %v2881_v2 = vpop.permute.xlu1 %1184  ;;  %v581_v3 = vpop.permute.xlu0 %580 }
 0x14e   : > { %950 = vrot.lane.b32.xlu0 %v2481_v18, %s2274_s18  ;;  %870 = vmatprep.subr.mxu1 %v2277_v9 }
 0x14f   : > { %871 = vmatpush1.msra.mxu1 %v764_v11  ;;  %679 = vmatprep.subr.mxu0 %v2277_v9 }
 0x150   : > { %680 = vmatpush1.msra.mxu0 %v584_v15  ;;  %1200 = vrot.lane.b32.xlu1 %v2881_v2, %s2274_s18 }
 0x151   : > { %681 = vmatprep.subr.mxu0 %v2277_v9  ;;  %v827_v20 = vpop.permute.xlu1 %826  ;;  %v577_v44 = vpop.permute.xlu0 %576  ;;  %872 = vmatprep.subr.mxu1 %v2277_v9 }
 0x152   : > { %1375 = vrot.lane.b32.xlu0 %v2849_v31, %s2275_s19  ;;  %682 = vmatpush1.msra.mxu0 %v581_v3 }
 0x153   : > { %683 = vmatprep.subr.mxu0 %v2277_v9  ;;  %873 = vmatpush1.msra.mxu1 %v2486_v19  ;;  %v2911_v19 = vld [vmem:[%s3649_s1 + $0x18] sm:$0x3] }
 0x154   : > { %1556 = vrot.lane.b32.xlu1 %v2835_v13, %s2276_s20  ;;  %684 = vmatpush1.msra.mxu0 %v577_v44 }
 0x155   : > { %v2897_v18 = vpop.permute.xlu1 %1182  ;;  %685 = vmatprep.subr.mxu0 %v2277_v9  ;;  %v1002_v46 = vpop.permute.xlu0 %1001  ;;  %874 = vmatprep.subr.mxu1 %v2277_v9 }
 0x156   : > { %686 = vmatpush1.msra.mxu0 %v2368_v6  ;;  %1017 = vrot.lane.b32.xlu0 %v1002_v46, %s2274_s18 }
 0x157   : > { %687 = vmatprep.subr.mxu0 %v2277_v9  ;;  %875 = vmatpush1.msra.mxu1 %v2476_v17  ;;  %v2920_v17 = vld [vmem:[%s3649_s1 + $0x10] sm:$0x3] }
 0x158   : > { %1366 = vrot.lane.b32.xlu1 %v2849_v31, %s2276_s20  ;;  %688 = vmatpush1.msra.mxu0 %v2358_v4 }
 0x159   : > { %v2913_v23 = vpop.permute.xlu1 %992  ;;  %697 = vmatprep.subr.mxu0 %v2277_v9  ;;  %v644_v6 = vpop.permute.xlu0 %643  ;;  %884 = vmatprep.subr.mxu1 %v2277_v9 }
 0x15a   : > { %1204 = vrot.lane.b32.xlu0 %v2837_v24, %s2274_s18  ;;  %698 = vmatpush2.msra.mxu0 %v644_v6 }
 0x15b   : > { %699 = vmatprep.subr.mxu0 %v2277_v9  ;;  %2140 = vmatprep.mubr.msk.f32.mxu1 %vm284_vm0, %v2911_v19 }
 0x15c   : > { %1553 = vrot.lane.b32.xlu1 %v2809_v36, %s2276_s20  ;;  %540 = vmatmul.mubr.f32.gmra.mxu1 %v2920_v17 }
 0x15d   : > { %v1180_v4 = vpop.permute.xlu1 %1179  ;;  %v831_v21 = vpop.permute.xlu0 %830  ;;  %2130 = vmatprep.mubr.msk.f32.mxu0 %vm284_vm0, %v2911_v19  ;;  %2159 = vmatprep.mubr.msk.f32.mxu1 %vm284_vm0, %v2548_v43 }
 0x15e   : > { %1015 = vrot.lane.b32.xlu0 %v2851_v38, %s2274_s18  ;;  %885 = vmatpush2.msra.mxu1 %v831_v21 }
 0x15f   : > { %886 = vmatprep.subr.mxu1 %v2277_v9  ;;  %361 = vmatmul.mubr.f32.gmra.mxu0 %v2920_v17 }
 0x160   : > { %1363 = vrot.lane.b32.xlu1 %v2931_v25, %s2275_s19  ;;  %2149 = vmatprep.mubr.msk.f32.mxu0 %vm284_vm0, %v2548_v43 }
 0x161   : > { %v990_v26 = vpop.permute.xlu1 %989  ;;  %v642_v47 = vpop.permute.xlu0 %641 }
 0x162   : > { %1202 = vrot.lane.b32.xlu0 %v2862_v40, %s2274_s18  ;;  %700 = vmatpush2.msra.mxu0 %v642_v47  ;;  %v3128_v47 = vld [vmem:[%s2323_s17 + $0xf8] sm:$0xff] }
 0x163   : > { %701 = vmatprep.subr.mxu0 %v2277_v9 }
 0x164   : > { %1550 = vrot.lane.b32.xlu1 %v2946_v48, %s2275_s19 }
 0x165   : > { %v1177_v49 = vpop.permute.xlu1 %1176  ;;  %v829_v50 = vpop.permute.xlu0 %828 }
 0x166   : > { %1013 = vrot.lane.b32.xlu0 %v2874_v14, %s2274_s18  ;;  %887 = vmatpush2.msra.mxu1 %v829_v50 }
 0x167   : > { %888 = vmatprep.subr.mxu1 %v2277_v9 }
 0x168   : > { %1361 = vrot.lane.b32.xlu1 %v2954_v51, %s2274_s18  ;;  %889 = vmatpush2.msra.mxu1 %v827_v20 }
 0x169   : > { %v2961_v43 = vpop.permute.xlu1 %987  ;;  %890 = vmatprep.subr.mxu1 %v2277_v9  ;;  %v640_v52 = vpop.permute.xlu0 %639 }
 0x16a   : > { %1369 = vrot.lane.b32.xlu0 %v2822_v10, %s2276_s20  ;;  %702 = vmatpush2.msra.mxu0 %v640_v52 }
 0x16b   : > { %891 = vmatpush2.msra.mxu1 %v2631_v63  ;;  %703 = vmatprep.subr.mxu0 %v2277_v9 }
 0x16c   : > { %1548 = vrot.lane.b32.xlu1 %v2965_v53, %s2274_s18  ;;  %892 = vmatprep.subr.mxu1 %v2277_v9 }
 0x16d   : > { %704 = vmatpush2.msra.mxu0 %v2620_v61  ;;  %893 = vmatpush2.msra.mxu1 %v2646_v5  ;;  %v2976_v54 = vpop.permute.xlu1 %1174  ;;  %v996_v55 = vpop.permute.xlu0 %995 }
 0x16e   : > { %705 = vmatprep.subr.mxu0 %v2277_v9  ;;  %1011 = vrot.lane.b32.xlu0 %v996_v55, %s2274_s18 }
 0x16f   : > { %706 = vmatpush2.msra.mxu0 %v2640_v1  ;;  %894 = vmatprep.subr.mxu1 %v2277_v9 }
 0x170   : > { %1358 = vrot.lane.b32.xlu1 %v2931_v25, %s2274_s18  ;;  %707 = vmatprep.subr.mxu0 %v2277_v9 }
 0x171   : > { %v2985_v63 = vpop.permute.xlu1 %984  ;;  %v638_v61 = vpop.permute.xlu0 %637 }
 0x172   : > { %1198 = vrot.lane.b32.xlu0 %v2897_v18, %s2274_s18  ;;  %708 = vmatpush2.msra.mxu0 %v638_v61  ;;  %v3085_v18 = vld [vmem:[%s2323_s17 + $0x100] sm:$0xff] }
 0x173   : > { %709 = vmatprep.subr.mxu0 %v2277_v9 }
 0x174   : > { %1545 = vrot.lane.b32.xlu1 %v2946_v48, %s2274_s18 }
 0x175   : > { %v2992_v1 = vpop.permute.xlu1 %1171  ;;  %v825_v5 = vpop.permute.xlu0 %824 }
 0x176   : > { %1009 = vrot.lane.b32.xlu0 %v2913_v23, %s2274_s18  ;;  %895 = vmatpush2.msra.mxu1 %v825_v5  ;;  %v3098_v23 = vld [vmem:[%s2323_s17 + $0x150] sm:$0xff]  ;;  %v2254_v5 = vld [vmem:[%s2323_s17 + $0x20] sm:$0xff] }
 0x177   : > { %896 = vmatprep.subr.mxu1 %v2277_v9 }
 0x178   : > { %1190 = vrot.lane.b32.xlu1 %v2992_v1, %s2274_s18 }
 0x179   : > { %v817_v56 = vpop.permute.xlu1 %816 }
 0x17a   : > { %v636_v57 = vpop.permute.xlu0 %635  ;;  %1196 = vrot.lane.b32.xlu0 %v1180_v4, %s2274_s18  ;;  %v2218_v4 = vld [vmem:[%s2323_s17 + $0x158] sm:$0xff] }
 0x17b   : > { %710 = vmatpush2.msra.mxu0 %v636_v57 }
 0x17c   : > { %1541 = vrot.lane.b32.xlu1 %v2849_v31, %s2278_s21  ;;  %711 = vmatprep.subr.mxu0 %v2277_v9 }
 0x17d   : > { %v3003_v33 = vpop.permute.xlu1 %1167 }
 0x17e   : > { %v823_v7 = vpop.permute.xlu0 %822  ;;  %1007 = vrot.lane.b32.xlu0 %v990_v26, %s2274_s18 }
 0x17f   : > { %897 = vmatpush2.msra.mxu1 %v823_v7 }
 0x180   : > { %1538 = vrot.lane.b32.xlu1 %v2822_v10, %s2275_s19  ;;  %898 = vmatprep.subr.mxu1 %v2277_v9 }
 0x181   : > { %v1165_v34 = vpop.permute.xlu1 %1164 }
 0x182   : > { %v634_v35 = vpop.permute.xlu0 %633  ;;  %1194 = vrot.lane.b32.xlu0 %v1177_v49, %s2274_s18 }
 0x183   : > { %712 = vmatpush2.msra.mxu0 %v634_v35  ;;  %v3199_v35 = vld [vmem:[%s2323_s17 + $0x50] sm:$0xff] }
 0x184   : > { %1535 = vrot.lane.b32.xlu1 %v2849_v31, %s2275_s19  ;;  %713 = vmatprep.subr.mxu0 %v2277_v9 }
 0x185   : > { %v3013_v16 = vpop.permute.xlu1 %1161 }
 0x186   : > { %v821_v8 = vpop.permute.xlu0 %820  ;;  %1005 = vrot.lane.b32.xlu0 %v2961_v43, %s2274_s18 }
 0x187   : > { %899 = vmatpush2.msra.mxu1 %v821_v8 }
 0x188   : > { %1532 = vrot.lane.b32.xlu1 %v2822_v10, %s2274_s18  ;;  %900 = vmatprep.subr.mxu1 %v2277_v9 }
 0x189   : > { %v3020_v11 = vpop.permute.xlu1 %1158 }
 0x18a   : > { %v632_v12 = vpop.permute.xlu0 %631  ;;  %1192 = vrot.lane.b32.xlu0 %v2976_v54, %s2274_s18 }
 0x18b   : > { %714 = vmatpush2.msra.mxu0 %v632_v12 }
 0x18c   : > { %1528 = vrot.lane.b32.xlu1 %v2849_v31, %s2274_s18  ;;  %715 = vmatprep.subr.mxu0 %v2277_v9 }
 0x18d   : > { %v3027_v24 = vpop.permute.xlu1 %1154 }
 0x18e   : > { %v819_v27 = vpop.permute.xlu0 %818  ;;  %1003 = vrot.lane.b32.xlu0 %v2985_v63, %s2274_s18 }
 0x18f   : > { %901 = vmatpush2.msra.mxu1 %v819_v27  ;;  %v3215_v27 = vld [vmem:[%s2323_s17 + $0xa8] sm:$0xff] }
 0x190   : > { %1524 = vrot.lane.b32.xlu1 %v2931_v25, %s2278_s21  ;;  %902 = vmatprep.subr.mxu1 %v2277_v9 }
 0x191   : > { %903 = vmatpush2.msra.mxu1 %v817_v56  ;;  %v3034_v39 = vpop.permute.xlu1 %1150 }
 0x192   : > { %904 = vmatprep.subr.mxu1 %v2277_v9  ;;  %v630_v41 = vpop.permute.xlu0 %629  ;;  %1354 = vrot.lane.b32.xlu0 %v2603_v58, %s2278_s21 }
 0x193   : > { %716 = vmatpush2.msra.mxu0 %v630_v41  ;;  %905 = vmatpush2.msra.mxu1 %v2691_v32 }
 0x194   : > { %1521 = vrot.lane.b32.xlu1 %v2954_v51, %s2275_s19  ;;  %717 = vmatprep.subr.mxu0 %v2277_v9 }
 0x195   : > { %906 = vmatprep.subr.mxu1 %v2277_v9  ;;  %718 = vmatpush2.msra.mxu0 %v2678_v29  ;;  %v3045_v15 = vpop.permute.xlu1 %1147 }
 0x196   : > { %907 = vmatpush2.msra.mxu1 %v2712_v45  ;;  %719 = vmatprep.subr.mxu0 %v2277_v9  ;;  %v981_v3 = vpop.permute.xlu0 %980 }
 0x197   : > { %1218 = vmatprep.subr.mxu1 %v2277_v9  ;;  %1351 = vrot.lane.b32.xlu0 %v2629_v62, %s2275_s19 }
 0x198   : > { %1518 = vrot.lane.b32.xlu1 %v2931_v25, %s2275_s19  ;;  %720 = vmatpush2.msra.mxu0 %v2706_v42 }
 0x199   : > { %909 = vmatmul.mubr.f32.vlgmr.msra.gmra.mxu1 %v2786_v59  ;;  %1031 = vmatprep.subr.mxu0 %v2277_v9  ;;  %v3057_v29 = vpop.permute.xlu1 %1144 }
 0x19a   : > { %1219 = vmatpush1.msra.mxu1 %v2694_v37  ;;  %722 = vmatmul.mubr.f32.vlgmr.msra.gmra.mxu0 %v2786_v59  ;;  %v978_v32 = vpop.permute.xlu0 %977 }
 0x19b   : > { %1220 = vmatprep.subr.mxu1 %v2277_v9  ;;  %1032 = vmatpush1.msra.mxu0 %v2685_v30 }
 0x19c   : > { %1221 = vmatpush1.msra.mxu1 %v2676_v28  ;;  %1033 = vmatprep.subr.mxu0 %v2277_v9 }
 0x19d   : > { %1222 = vmatprep.subr.mxu1 %v2277_v9  ;;  %1515 = vrot.lane.b32.xlu1 %v2954_v51, %s2274_s18  ;;  %v3068_v42 = vpop.permute.xlu1 %1141 }
 0x19e   : > { %1348 = vrot.lane.b32.xlu0 %v2603_v58, %s2275_s19  ;;  %1034 = vmatpush1.msra.mxu0 %v2667_v22  ;;  %v975_v45 = vpop.permute.xlu0 %974 }
 0x19f   : > { %1223 = vmatpush1.msra.mxu1 %v3003_v33  ;;  %1035 = vmatprep.subr.mxu0 %v2277_v9  ;;  %v3191_v33 = vld [vmem:[%s2323_s17 + $0x48] sm:$0xff] }
 0x1a0   : > { %1224 = vmatprep.subr.mxu1 %v2277_v9  ;;  %1036 = vmatpush1.msra.mxu0 %v981_v3 }
 0x1a1   : > { %1225 = vmatpush1.msra.mxu1 %v1165_v34  ;;  %1037 = vmatprep.subr.mxu0 %v2277_v9 }
 0x1a2   : > { %1226 = vmatprep.subr.mxu1 %v2277_v9  ;;  %1511 = vrot.lane.b32.xlu1 %v2931_v25, %s2274_s18  ;;  %v1138_v20 = vpop.permute.xlu1 %1137 }
 0x1a3   : > { %1345 = vrot.lane.b32.xlu0 %v2629_v62, %s2274_s18  ;;  %1038 = vmatpush1.msra.mxu0 %v978_v32  ;;  %v972_v44 = vpop.permute.xlu0 %971 }
 0x1a4   : > { %1227 = vmatpush1.msra.mxu1 %v3013_v16  ;;  %1039 = vmatprep.subr.mxu0 %v2277_v9 }
 0x1a5   : > { %1228 = vmatprep.subr.mxu1 %v2277_v9  ;;  %1040 = vmatpush1.msra.mxu0 %v975_v45 }
 0x1a6   : > { %1229 = vmatpush1.msra.mxu1 %v3020_v11  ;;  %1041 = vmatprep.subr.mxu0 %v2277_v9  ;;  %v3207_v11 = vld [vmem:[%s2323_s17 + $0xa0] sm:$0xff] }
 0x1a7   : > { %1230 = vmatprep.subr.mxu1 %v2277_v9  ;;  %1936 = vrot.lane.b32.xlu1 %v3085_v18, %s2275_s19 }
 0x1a8   : > { %1341 = vrot.lane.b32.xlu0 %v2603_v58, %s2274_s18  ;;  %1042 = vmatpush1.msra.mxu0 %v972_v44  ;;  %v3095_v62 = vpop.permute.xlu1 %1562  ;;  %v968_v46 = vpop.permute.xlu0 %967 }
 0x1a9   : > { %1231 = vmatpush1.msra.mxu1 %v3027_v24  ;;  %1043 = vmatprep.subr.mxu0 %v2277_v9 }
 0x1aa   : > { %1232 = vmatprep.subr.mxu1 %v2277_v9  ;;  %1044 = vmatpush1.msra.mxu0 %v968_v46 }
 0x1ab   : > { %1233 = vmatpush1.msra.mxu1 %v2614_v60  ;;  %1747 = vrot.lane.b32.xlu1 %v3098_v23, %s2274_s18  ;;  %v2250_v60 = vld [vmem:[%s2323_s17 + $0x128] sm:$0xff] }
 0x1ac   : > { %1234 = vmatprep.subr.mxu1 %v2277_v9  ;;  %1337 = vrot.lane.b32.xlu0 %v2676_v28, %s2278_s21 }
 0x1ad   : > { %1235 = vmatpush1.msra.mxu1 %v2638_v0  ;;  %1045 = vmatprep.subr.mxu0 %v2277_v9  ;;  %v3111_v58 = vpop.permute.xlu1 %1373  ;;  %v964_v6 = vpop.permute.xlu0 %963  ;;  %v2251_v0 = vld [vmem:[%s2323_s17 + $0xd0] sm:$0xff] }
 0x1ae   : > { %1236 = vmatprep.subr.mxu1 %v2277_v9  ;;  %1046 = vmatpush1.msra.mxu0 %v2250_v60 }
 0x1af   : > { %1237 = vmatpush1.msra.mxu1 %v3034_v39  ;;  %1047 = vmatprep.subr.mxu0 %v2277_v9 }
 0x1b0   : > { %1238 = vmatprep.subr.mxu1 %v2277_v9  ;;  %1934 = vrot.lane.b32.xlu1 %v2218_v4, %s2274_s18 }
 0x1b1   : > { %1334 = vrot.lane.b32.xlu0 %v2694_v37, %s2275_s19  ;;  %1048 = vmatpush1.msra.mxu0 %v2251_v0 }
 0x1b2   : > { %1239 = vmatpush1.msra.mxu1 %v3045_v15  ;;  %1049 = vmatprep.subr.mxu0 %v2277_v9  ;;  %v3125_v21 = vpop.permute.xlu1 %1560  ;;  %v961_v26 = vpop.permute.xlu0 %960 }
 0x1b3   : > { %1240 = vmatprep.subr.mxu1 %v2277_v9  ;;  %1050 = vmatpush1.msra.mxu0 %v964_v6 }
 0x1b4   : > { %1241 = vmatpush1.msra.mxu1 %v3057_v29  ;;  %1051 = vmatprep.subr.mxu0 %v2277_v9 }
 0x1b5   : > { %1242 = vmatprep.subr.mxu1 %v2277_v9  ;;  %1745 = vrot.lane.b32.xlu1 %v3128_v47, %s2274_s18 }
 0x1b6   : > { %1331 = vrot.lane.b32.xlu0 %v2676_v28, %s2275_s19  ;;  %1052 = vmatpush1.msra.mxu0 %v961_v26  ;;  %v3138_v49 = vpop.permute.xlu1 %1371 }
 0x1b7   : > { %1243 = vmatpush1.msra.mxu1 %v3068_v42  ;;  %1053 = vmatprep.subr.mxu0 %v2277_v9  ;;  %v958_v50 = vpop.permute.xlu0 %957 }
 0x1b8   : > { %1244 = vmatprep.subr.mxu1 %v2277_v9  ;;  %1054 = vmatpush1.msra.mxu0 %v958_v50 }
 0x1b9   : > { %1245 = vmatpush1.msra.mxu1 %v1138_v20  ;;  %1932 = vrot.lane.b32.xlu1 %v3085_v18, %s2274_s18 }
 0x1ba   : > { %1328 = vrot.lane.b32.xlu0 %v2694_v37, %s2274_s18  ;;  %1055 = vmatprep.subr.mxu0 %v2277_v9 }
 0x1bb   : > { %v3148_v52 = vpop.permute.xlu1 %1558  ;;  %v955_v55 = vpop.permute.xlu0 %954  ;;  %1246 = vmatprep.subr.mxu1 %v2277_v9  ;;  %2160 = vmatprep.mubr.msk.f32.mxu1 %vm284_vm0, %v2911_v19 }
 0x1bc   : > { %1056 = vmatpush1.msra.mxu0 %v955_v55  ;;  %1247 = vmatpush1.msra.mxu1 %v2685_v30  ;;  %v2252_v30 = vld [vmem:[%s2323_s17 + $0x78] sm:$0xff] }
 0x1bd   : > { %1574 = vrot.lane.b32.xlu1 %v3148_v52, %s2274_s18  ;;  %1057 = vmatprep.subr.mxu0 %v2277_v9 }
 0x1be   : > { %1324 = vrot.lane.b32.xlu0 %v2676_v28, %s2274_s18  ;;  %1248 = vmatprep.subr.mxu1 %v2277_v9 }
 0x1bf   : > { %1249 = vmatpush1.msra.mxu1 %v2667_v22  ;;  %2150 = vmatprep.mubr.msk.f32.mxu0 %vm284_vm0, %v2911_v19  ;;  %v3173_v22 = vld [vmem:[%s3649_s1 + $0x8] sm:$0xff] }
 0x1c0   : > { %v951_v37 = vpop.permute.xlu0 %950  ;;  %1258 = vmatprep.subr.mxu1 %v2277_v9  ;;  %914 = vmatmul.mubr.f32.gmra.mxu1 %v2920_v17 }
 0x1c1   : > { %1930 = vrot.lane.b32.xlu1 %v2218_v4, %s2276_s20  ;;  %1058 = vmatpush1.msra.mxu0 %v951_v37 }
 0x1c2   : > { %1749 = vrot.lane.b32.xlu0 %v3128_v47, %s2275_s19  ;;  %v1201_v28 = vpop.permute.xlu1 %1200  ;;  %1059 = vmatprep.subr.mxu0 %v2277_v9 }
 0x1c3   : > { %1060 = vmatpush1.msra.mxu0 %v2252_v30  ;;  %2179 = vmatprep.mubr.msk.f32.mxu1 %vm284_vm0, %v3173_v22 }
 0x1c4   : > { %v1376_v61 = vpop.permute.xlu0 %1375  ;;  %1061 = vmatprep.subr.mxu0 %v2277_v9  ;;  %727 = vmatmul.mubr.f32.gmra.mxu0 %v2920_v17 }
 0x1c5   : > { %1740 = vrot.lane.b32.xlu1 %v3128_v47, %s2276_s20  ;;  %1062 = vmatpush1.msra.mxu0 %v2254_v5  ;;  %v2256_v5 = vld [vmem:[%s2323_s17 + $0xe0] sm:$0xff] }
 0x1c6   : > { %1391 = vrot.lane.b32.xlu0 %v1376_v61, %s2274_s18  ;;  %v1557_v56 = vpop.permute.xlu1 %1556  ;;  %1071 = vmatprep.subr.mxu0 %v2277_v9 }
 0x1c7   : > { %2169 = vmatprep.mubr.msk.f32.mxu0 %vm284_vm0, %v3173_v22 }
 0x1c8   : > { %v1018_v57 = vpop.permute.xlu0 %1017 }
 0x1c9   : > { %1927 = vrot.lane.b32.xlu1 %v3085_v18, %s2276_s20  ;;  %1072 = vmatpush2.msra.mxu0 %v1018_v57 }
 0x1ca   : > { %1578 = vrot.lane.b32.xlu0 %v3095_v62, %s2274_s18  ;;  %v1367_v7 = vpop.permute.xlu1 %1366  ;;  %1073 = vmatprep.subr.mxu0 %v2277_v9 }
 0x1cc   : > { %v1205_v34 = vpop.permute.xlu0 %1204 }
 0x1cd   : > { %1737 = vrot.lane.b32.xlu1 %v3191_v33, %s2275_s19  ;;  %1259 = vmatpush2.msra.mxu1 %v1205_v34 }
 0x1ce   : > { %1389 = vrot.lane.b32.xlu0 %v3111_v58, %s2274_s18  ;;  %v1554_v16 = vpop.permute.xlu1 %1553  ;;  %1260 = vmatprep.subr.mxu1 %v2277_v9 }
 0x1d0   : > { %v1016_v8 = vpop.permute.xlu0 %1015 }
 0x1d1   : > { %1924 = vrot.lane.b32.xlu1 %v3199_v35, %s2275_s19  ;;  %1074 = vmatpush2.msra.mxu0 %v1016_v8  ;;  %v2257_v8 = vld [vmem:[%s2323_s17 + $0x88] sm:$0xff] }
 0x1d2   : > { %1576 = vrot.lane.b32.xlu0 %v3125_v21, %s2274_s18  ;;  %v1364_v12 = vpop.permute.xlu1 %1363  ;;  %1075 = vmatprep.subr.mxu0 %v2277_v9 }
 0x1d4   : > { %v1203_v24 = vpop.permute.xlu0 %1202 }
 0x1d5   : > { %1735 = vrot.lane.b32.xlu1 %v3207_v11, %s2274_s18  ;;  %1261 = vmatpush2.msra.mxu1 %v1203_v24 }
 0x1d6   : > { %1387 = vrot.lane.b32.xlu0 %v3138_v49, %s2274_s18  ;;  %v1551_v39 = vpop.permute.xlu1 %1550  ;;  %1262 = vmatprep.subr.mxu1 %v2277_v9 }
 0x1d7   : > { %1263 = vmatpush2.msra.mxu1 %v1201_v28 }
 0x1d8   : > { %1264 = vmatprep.subr.mxu1 %v2277_v9  ;;  %v1014_v41 = vpop.permute.xlu0 %1013 }
 0x1d9   : > { %1922 = vrot.lane.b32.xlu1 %v3215_v27, %s2274_s18  ;;  %1076 = vmatpush2.msra.mxu0 %v1014_v41 }
 0x1da   : > { %1743 = vrot.lane.b32.xlu0 %v3098_v23, %s2276_s20  ;;  %v3223_v15 = vpop.permute.xlu1 %1361  ;;  %1265 = vmatpush2.msra.mxu1 %v2862_v40 }
 0x1db   : > { %1077 = vmatprep.subr.mxu0 %v2277_v9  ;;  %1266 = vmatprep.subr.mxu1 %v2277_v9 }
 0x1dc   : > { %1078 = vmatpush2.msra.mxu0 %v2851_v38  ;;  %1267 = vmatpush2.msra.mxu1 %v2881_v2  ;;  %v1370_v3 = vpop.permute.xlu0 %1369  ;;  %v2279_v38 = vmov 0  }
 0x1dd   : > { %1732 = vrot.lane.b32.xlu1 %v3191_v33, %s2274_s18  ;;  %1079 = vmatprep.subr.mxu0 %v2277_v9 }
 0x1de   : > { %v3233_v29 = vpop.permute.xlu1 %1548  ;;  %1080 = vmatpush2.msra.mxu0 %v2874_v14  ;;  %1385 = vrot.lane.b32.xlu0 %v1370_v3, %s2274_s18 }
 0x1df   : > { %1081 = vmatprep.subr.mxu0 %v2277_v9  ;;  %1268 = vmatprep.subr.mxu1 %v2277_v9 }
 0x1e0   : > { %v1012_v40 = vpop.permute.xlu0 %1011  ;;  %2248 = vset.pattern.permute.xlu0 %v2279_v38  ;;  %2249 = vset.pattern.permute.xlu1 %v2279_v38 }
 0x1e1   : > { %1919 = vrot.lane.b32.xlu1 %v3199_v35, %s2274_s18  ;;  %1082 = vmatpush2.msra.mxu0 %v1012_v40 }
 0x1e2   : > { %v3241_v2 = vpop.permute.xlu1 %1358  ;;  %1572 = vrot.lane.b32.xlu0 %v1557_v56, %s2274_s18  ;;  %1083 = vmatprep.subr.mxu0 %v2277_v9 }
 0x1e4   : > { %v1199_v14 = vpop.permute.xlu0 %1198 }
 0x1e5   : > { %1269 = vmatpush2.msra.mxu1 %v1199_v14 }
 0x1e6   : > { %v3245_v32 = vpop.permute.xlu1 %1545  ;;  %1383 = vrot.lane.b32.xlu0 %v1367_v7, %s2274_s18  ;;  %1270 = vmatprep.subr.mxu1 %v2277_v9 }
 0x1e7   : > { %1564 = vrot.lane.b32.xlu1 %v3245_v32, %s2274_s18 }
 0x1e8   : > { %v1010_v42 = vpop.permute.xlu0 %1009 }
 0x1e9   : > { %1084 = vmatpush2.msra.mxu0 %v1010_v42 }
 0x1ea   : > { %v1191_v45 = vpop.permute.xlu1 %1190  ;;  %1570 = vrot.lane.b32.xlu0 %v1554_v16, %s2274_s18  ;;  %1085 = vmatprep.subr.mxu0 %v2277_v9 }
 0x1eb   : > { %1915 = vrot.lane.b32.xlu1 %v3128_v47, %s2278_s21 }
 0x1ec   : > { %v1197_v20 = vpop.permute.xlu0 %1196 }
 0x1ed   : > { %1271 = vmatpush2.msra.mxu1 %v1197_v20 }
 0x1ee   : > { %v1542_v44 = vpop.permute.xlu1 %1541  ;;  %1381 = vrot.lane.b32.xlu0 %v1364_v12, %s2274_s18  ;;  %1272 = vmatprep.subr.mxu1 %v2277_v9 }
 0x1ef   : > { %1912 = vrot.lane.b32.xlu1 %v3098_v23, %s2275_s19 }
 0x1f0   : > { %v1008_v18 = vpop.permute.xlu0 %1007 }
 0x1f1   : > { %1086 = vmatpush2.msra.mxu0 %v1008_v18 }
 0x1f2   : > { %v1539_v62 = vpop.permute.xlu1 %1538  ;;  %1568 = vrot.lane.b32.xlu0 %v1551_v39, %s2274_s18  ;;  %1087 = vmatprep.subr.mxu0 %v2277_v9  ;;  %v3388_v12 = vpop.f32.mrf.mxu0 }
 0x1f3   : > { %1909 = vrot.lane.b32.xlu1 %v3128_v47, %s2275_s19 }
 0x1f4   : > { %v1195_v46 = vpop.permute.xlu0 %1194  ;;  %v359_v39 = vpop.f32.mrf.mxu0 }
 0x1f5   : > { %1273 = vmatpush2.msra.mxu1 %v1195_v46 }
 0x1f6   : > { %v1536_v6 = vpop.permute.xlu1 %1535  ;;  %1379 = vrot.lane.b32.xlu0 %v3223_v15, %s2274_s18  ;;  %1274 = vmatprep.subr.mxu1 %v2277_v9 }
 0x1f7   : > { %1906 = vrot.lane.b32.xlu1 %v3098_v23, %s2274_s18 }
 0x1f8   : > { %v1006_v4 = vpop.permute.xlu0 %1005 }
 0x1f9   : > { %1088 = vmatpush2.msra.mxu0 %v1006_v4  ;;  %v176_v4 = vld [vmem:[%s3650_s2 + $0x8] sm:$0x3] }
 0x1fa   : > { %v1533_v60 = vpop.permute.xlu1 %1532  ;;  %1566 = vrot.lane.b32.xlu0 %v3233_v29, %s2274_s18  ;;  %1089 = vmatprep.subr.mxu0 %v2277_v9 }
 0x1fb   : > { %1902 = vrot.lane.b32.xlu1 %v3128_v47, %s2274_s18 }
 0x1fc   : > { %v1193_v0 = vpop.permute.xlu0 %1192 }
 0x1fd   : > { %1275 = vmatpush2.msra.mxu1 %v1193_v0 }
 0x1fe   : > { %v1529_v26 = vpop.permute.xlu1 %1528  ;;  %1377 = vrot.lane.b32.xlu0 %v3241_v2, %s2274_s18  ;;  %1276 = vmatprep.subr.mxu1 %v2277_v9 }
 0x1ff   : > { %1277 = vmatpush2.msra.mxu1 %v1191_v45  ;;  %1898 = vrot.lane.b32.xlu1 %v3191_v33, %s2278_s21 }
 0x200   : > { %1278 = vmatprep.subr.mxu1 %v2277_v9  ;;  %v1004_v50 = vpop.permute.xlu0 %1003 }
 0x201   : > { %1090 = vmatpush2.msra.mxu0 %v1004_v50  ;;  %1279 = vmatpush2.msra.mxu1 %v2976_v54 }
 0x202   : > { %v3280_v55 = vpop.permute.xlu1 %1524  ;;  %1091 = vmatprep.subr.mxu0 %v2277_v9  ;;  %1280 = vmatprep.subr.mxu1 %v2277_v9 }
 0x203   : > { %1728 = vrot.lane.b32.xlu0 %v2809_v36, %s2278_s21  ;;  %1092 = vmatpush2.msra.mxu0 %v2961_v43 }
 0x204   : > { %1281 = vmatpush2.msra.mxu1 %v2992_v1  ;;  %1093 = vmatprep.subr.mxu0 %v2277_v9  ;;  %v1355_v37 = vpop.permute.xlu0 %1354 }
 0x205   : > { %1592 = vmatprep.subr.mxu1 %v2277_v9  ;;  %1094 = vmatpush2.msra.mxu0 %v2985_v63 }
 0x206   : > { %v3291_v54 = vpop.permute.xlu1 %1521  ;;  %1283 = vmatmul.mubr.f32.vlgmr.msra.gmra.mxu1 %v2786_v59  ;;  %1405 = vmatprep.subr.mxu0 %v2277_v9 }
 0x207   : > { %1593 = vmatpush1.msra.mxu1 %v2965_v53  ;;  %1725 = vrot.lane.b32.xlu0 %v2835_v13, %s2275_s19 }
 0x208   : > { %1594 = vmatprep.subr.mxu1 %v2277_v9  ;;  %1096 = vmatmul.mubr.f32.vlgmr.msra.gmra.mxu0 %v2786_v59 }
 0x209   : > { %1406 = vmatpush1.msra.mxu0 %v2954_v51  ;;  %1595 = vmatpush1.msra.mxu1 %v2946_v48  ;;  %v1352_v63 = vpop.permute.xlu0 %1351 }
 0x20a   : > { %v1519_v43 = vpop.permute.xlu1 %1518  ;;  %1407 = vmatprep.subr.mxu0 %v2277_v9  ;;  %1596 = vmatprep.subr.mxu1 %v2277_v9 }
 0x20b   : > { %1408 = vmatpush1.msra.mxu0 %v2931_v25  ;;  %1597 = vmatpush1.msra.mxu1 %v1542_v44 }
 0x20c   : > { %1409 = vmatprep.subr.mxu0 %v2277_v9  ;;  %1598 = vmatprep.subr.mxu1 %v2277_v9 }
 0x20d   : > { %1722 = vrot.lane.b32.xlu0 %v2809_v36, %s2275_s19  ;;  %1410 = vmatpush1.msra.mxu0 %v1355_v37 }
 0x20e   : > { %1599 = vmatpush1.msra.mxu1 %v1539_v62  ;;  %1411 = vmatprep.subr.mxu0 %v2277_v9 }
 0x20f   : > { %v1516_v59 = vpop.permute.xlu1 %1515  ;;  %1600 = vmatprep.subr.mxu1 %v2277_v9  ;;  %1895 = vrot.lane.b32.xlu1 %v3207_v11, %s2275_s19 }
 0x210   : > { %v1349_v1 = vpop.permute.xlu0 %1348  ;;  %1412 = vmatpush1.msra.mxu0 %v1352_v63  ;;  %1601 = vmatpush1.msra.mxu1 %v1536_v6 }
 0x211   : > { %1413 = vmatprep.subr.mxu0 %v2277_v9  ;;  %1602 = vmatprep.subr.mxu1 %v2277_v9 }
 0x212   : > { %1719 = vrot.lane.b32.xlu0 %v2835_v13, %s2274_s18  ;;  %1414 = vmatpush1.msra.mxu0 %v1349_v1 }
 0x213   : > { %1603 = vmatpush1.msra.mxu1 %v1533_v60  ;;  %1415 = vmatprep.subr.mxu0 %v2277_v9 }
 0x214   : > { %v1512_v28 = vpop.permute.xlu1 %1511  ;;  %1604 = vmatprep.subr.mxu1 %v2277_v9  ;;  %1892 = vrot.lane.b32.xlu1 %v3191_v33, %s2275_s19 }
 0x215   : > { %v1346_v30 = vpop.permute.xlu0 %1345  ;;  %1605 = vmatpush1.msra.mxu1 %v1529_v26  ;;  %2180 = vmatprep.mubr.msk.f32.mxu1 %vm284_vm0, %v2911_v19 }
 0x216   : > { %1416 = vmatpush1.msra.mxu0 %v1346_v30  ;;  %1606 = vmatprep.subr.mxu1 %v2277_v9 }
 0x217   : > { %1715 = vrot.lane.b32.xlu0 %v2809_v36, %s2274_s18  ;;  %1607 = vmatpush1.msra.mxu1 %v2822_v10  ;;  %v2255_v36 = vld [vmem:[%s2323_s17 + $0x138] sm:$0xff] }
 0x218   : > { %1417 = vmatprep.subr.mxu0 %v2277_v9  ;;  %1608 = vmatprep.subr.mxu1 %v2277_v9 }
 0x219   : > { %v1937_v13 = vpop.permute.xlu1 %1936  ;;  %1889 = vrot.lane.b32.xlu1 %v3207_v11, %s2274_s18  ;;  %1609 = vmatpush1.msra.mxu1 %v2849_v31 }
 0x21a   : > { %v1342_v61 = vpop.permute.xlu0 %1341  ;;  %1610 = vmatprep.subr.mxu1 %v2277_v9  ;;  %1288 = vmatmul.mubr.f32.gmra.mxu1 %v2920_v17 }
 0x21b   : > { %1418 = vmatpush1.msra.mxu0 %v1342_v61  ;;  %1711 = vrot.lane.b32.xlu0 %v2946_v48, %s2278_s21  ;;  %s2281_s21 = smov 10  }
 0x21c   : > { %1419 = vmatprep.subr.mxu0 %v2277_v9  ;;  %1611 = vmatpush1.msra.mxu1 %v3280_v55  ;;  %v175_v55 = vld [vmem:[%s3650_s2] sm:$0xff] }
 0x21d   : > { %1420 = vmatpush1.msra.mxu0 %v2255_v36  ;;  %v3339_v10 = vpop.permute.xlu1 %1747  ;;  %1612 = vmatprep.subr.mxu1 %v2277_v9 }
 0x21e   : > { %1421 = vmatprep.subr.mxu0 %v2277_v9  ;;  %v1338_v31 = vpop.permute.xlu0 %1337  ;;  %1885 = vrot.lane.b32.xlu1 %v3191_v33, %s2274_s18 }
 0x21f   : > { %1422 = vmatpush1.msra.mxu0 %v2256_v5  ;;  %1613 = vmatpush1.msra.mxu1 %v3291_v54  ;;  %v3447_v54 = vpop.f32.mrf.mxu0 }
 0x220   : > { %1423 = vmatprep.subr.mxu0 %v2277_v9  ;;  %1614 = vmatprep.subr.mxu1 %v2277_v9 }
 0x221   : > { %1708 = vrot.lane.b32.xlu0 %v2965_v53, %s2275_s19  ;;  %1424 = vmatpush1.msra.mxu0 %v1338_v31  ;;  %v364_v1 = vpop.f32.mrf.mxu0 }
 0x222   : > { %1615 = vmatpush1.msra.mxu1 %v1519_v43  ;;  %v3351_v56 = vpop.permute.xlu1 %1934  ;;  %1425 = vmatprep.subr.mxu0 %v2277_v9 }
 0x223   : > { %1616 = vmatprep.subr.mxu1 %v2277_v9  ;;  %v1335_v57 = vpop.permute.xlu0 %1334  ;;  %1952 = vrot.lane.b32.xlu1 %v1937_v13, %s2274_s18 }
 0x224   : > { %1426 = vmatpush1.msra.mxu0 %v1335_v57  ;;  %1617 = vmatpush1.msra.mxu1 %v1516_v59 }
 0x225   : > { %1618 = vmatprep.subr.mxu1 %v2277_v9  ;;  %1705 = vrot.lane.b32.xlu0 %v2946_v48, %s2275_s19 }
 0x226   : > { %1619 = vmatpush1.msra.mxu1 %v1512_v28  ;;  %1427 = vmatprep.subr.mxu0 %v2277_v9 }
 0x227   : > { %v3360_v7 = vpop.permute.xlu1 %1745  ;;  %1950 = vrot.lane.b32.xlu1 %v3351_v56, %s2274_s18  ;;  %1620 = vmatprep.subr.mxu1 %v2277_v9 }
 0x228   : > { %v1332_v34 = vpop.permute.xlu0 %1331  ;;  %1621 = vmatpush1.msra.mxu1 %v2954_v51  ;;  %2199 = vmatprep.mubr.msk.f32.mxu1 %vm284_vm0, %v3173_v22 }
 0x229   : > { %1428 = vmatpush1.msra.mxu0 %v1332_v34  ;;  %1702 = vrot.lane.b32.xlu0 %v2965_v53, %s2274_s18 }
 0x22a   : > { %1429 = vmatprep.subr.mxu0 %v2277_v9  ;;  %1622 = vmatprep.subr.mxu1 %v2277_v9 }
 0x22b   : > { %v3372_v16 = vpop.permute.xlu1 %1932  ;;  %1623 = vmatpush1.msra.mxu1 %v2931_v25  ;;  %2170 = vmatprep.mubr.msk.f32.mxu0 %vm284_vm0, %v2911_v19 }
 0x22c   : > { %v1329_v51 = vpop.permute.xlu0 %1328  ;;  %1948 = vrot.lane.b32.xlu1 %v3372_v16, %s2274_s18  ;;  %1632 = vmatprep.subr.mxu1 %v2277_v9 }
 0x22d   : > { %1430 = vmatpush1.msra.mxu0 %v1329_v51  ;;  %1698 = vrot.lane.b32.xlu0 %v2946_v48, %s2274_s18  ;;  %v3392_v48 = vpop.f32.mrf.mxu1 }
 0x22e   : > { %1431 = vmatprep.subr.mxu0 %v2277_v9  ;;  %1101 = vmatmul.mubr.f32.gmra.mxu0 %v2920_v17  ;;  %v2258_v17 = vld [vmem:[%s2323_s17 + $0x30] sm:$0xff] }
 0x22f   : > { %v1575_v53 = vpop.permute.xlu1 %1574  ;;  %2189 = vmatprep.mubr.msk.f32.mxu0 %vm284_vm0, %v3173_v22  ;;  %v538_v41 = vpop.f32.mrf.mxu1 }
 0x230   : > { %v1325_v19 = vpop.permute.xlu0 %1324 }
 0x231   : > { %1432 = vmatpush1.msra.mxu0 %v1325_v19  ;;  %v3449_v43 = vpop.f32.mrf.mxu1 }
 0x232   : > { %1433 = vmatprep.subr.mxu0 %v2277_v9 }
 0x233   : > { %v1931_v25 = vpop.permute.xlu1 %1930  ;;  %1434 = vmatpush1.msra.mxu0 %v2257_v8  ;;  %v543_v28 = vpop.f32.mrf.mxu1 }
 0x234   : > { %v1750_v24 = vpop.permute.xlu0 %1749  ;;  %1435 = vmatprep.subr.mxu0 %v2277_v9  ;;  %1946 = vrot.lane.b32.xlu1 %v1931_v25, %s2274_s18  ;;  %v3495_v25 = vld [vmem:[%s3649_s1 + $0x18] sm:$0x3] }
 0x235   : > { %1765 = vrot.lane.b32.xlu0 %v1750_v24, %s2274_s18  ;;  %1436 = vmatpush1.msra.mxu0 %v2258_v17  ;;  %v3503_v24 = vld [vmem:[%s3649_s1 + $0x10] sm:$0x3] }
 0x236   : > { %1445 = vmatprep.subr.mxu0 %v2277_v9 }
 0x237   : > { %v1741_v3 = vpop.permute.xlu1 %1740 }
 0x238   : > { %v1392_v40 = vpop.permute.xlu0 %1391 }
 0x239   : > { %1763 = vrot.lane.b32.xlu0 %v3339_v10, %s2274_s18  ;;  %1446 = vmatpush2.msra.mxu0 %v1392_v40  ;;  %v2262_v40 = vld [vmem:[%s2323_s17 + $0x148] sm:$0xff] }
 0x23a   : > { %1447 = vmatprep.subr.mxu0 %v2277_v9 }
 0x23b   : > { %v1928_v38 = vpop.permute.xlu1 %1927 }
 0x23c   : > { %v1579_v14 = vpop.permute.xlu0 %1578  ;;  %1944 = vrot.lane.b32.xlu1 %v1928_v38, %s2274_s18 }
 0x23d   : > { %1761 = vrot.lane.b32.xlu0 %v3360_v7, %s2274_s18  ;;  %1633 = vmatpush2.msra.mxu1 %v1579_v14  ;;  %v2263_v14 = vld [vmem:[%s2323_s17 + $0xf0] sm:$0xff] }
 0x23e   : > { %1634 = vmatprep.subr.mxu1 %v2277_v9 }
 0x23f   : > { %v1738_v42 = vpop.permute.xlu1 %1737 }
 0x240   : > { %v1390_v45 = vpop.permute.xlu0 %1389 }
 0x241   : > { %1448 = vmatpush2.msra.mxu0 %v1390_v45 }
 0x242   : > { %1449 = vmatprep.subr.mxu0 %v2277_v9 }
 0x243   : > { %v1925_v20 = vpop.permute.xlu1 %1924 }
 0x244   : > { %v1577_v44 = vpop.permute.xlu0 %1576  ;;  %1942 = vrot.lane.b32.xlu1 %v1925_v20, %s2274_s18 }
 0x245   : > { %1635 = vmatpush2.msra.mxu1 %v1577_v44 }
 0x246   : > { %1636 = vmatprep.subr.mxu1 %v2277_v9 }
 0x247   : > { %1637 = vmatpush2.msra.mxu1 %v1575_v53  ;;  %v3407_v18 = vpop.permute.xlu1 %1735  ;;  %v3470_v53 = vld [vmem:[%s3649_s1] sm:$0xff] }
 0x248   : > { %1638 = vmatprep.subr.mxu1 %v2277_v9  ;;  %v1388_v62 = vpop.permute.xlu0 %1387 }
 0x249   : > { %1450 = vmatpush2.msra.mxu0 %v1388_v62  ;;  %1639 = vmatpush2.msra.mxu1 %v3125_v21 }
 0x24a   : > { %1451 = vmatprep.subr.mxu0 %v2277_v9  ;;  %1640 = vmatprep.subr.mxu1 %v2277_v9 }
 0x24b   : > { %1452 = vmatpush2.msra.mxu0 %v3111_v58  ;;  %1641 = vmatpush2.msra.mxu1 %v3148_v52  ;;  %v3415_v46 = vpop.permute.xlu1 %1922 }
 0x24c   : > { %1453 = vmatprep.subr.mxu0 %v2277_v9  ;;  %v1744_v6 = vpop.permute.xlu0 %1743  ;;  %1940 = vrot.lane.b32.xlu1 %v3415_v46, %s2274_s18 }
 0x24d   : > { %1454 = vmatpush2.msra.mxu0 %v3138_v49  ;;  %1759 = vrot.lane.b32.xlu0 %v1744_v6, %s2274_s18  ;;  %v2264_v6 = vld [vmem:[%s2323_s17 + $0x98] sm:$0xff] }
 0x24e   : > { %1455 = vmatprep.subr.mxu0 %v2277_v9  ;;  %1642 = vmatprep.subr.mxu1 %v2277_v9 }
 0x24f   : > { %v3424_v21 = vpop.permute.xlu1 %1732 }
 0x250   : > { %v1386_v58 = vpop.permute.xlu0 %1385 }
 0x251   : > { %1757 = vrot.lane.b32.xlu0 %v1741_v3, %s2274_s18  ;;  %1456 = vmatpush2.msra.mxu0 %v1386_v58  ;;  %v2265_v58 = vld [vmem:[%s2323_s17 + $0x40] sm:$0xff]  ;;  %s2223_s17 = sshll.u32 %s3653_s13, 4  ;;  %s2280_s13 = smov 5  }
 0x252   : > { %1457 = vmatprep.subr.mxu0 %v2277_v9  ;;  %s3598_s20 = scalar_lea.vmem %s3651_s3, %s2223_s17 }
 0x253   : > { %v3428_v52 = vpop.permute.xlu1 %1919 }
 0x254   : > { %1938 = vrot.lane.b32.xlu1 %v3428_v52, %s2274_s18  ;;  %v1573_v49 = vpop.permute.xlu0 %1572 }
 0x255   : > { %1755 = vrot.lane.b32.xlu0 %v1738_v42, %s2274_s18  ;;  %1643 = vmatpush2.msra.mxu1 %v1573_v49 }
 0x256   : > { %1644 = vmatprep.subr.mxu1 %v2277_v9 }
 0x258   : > { %v1384_v60 = vpop.permute.xlu0 %1383  ;;  %281 = vperm.xlu1 %2249, %v176_v4  }
 0x259   : > { %1753 = vrot.lane.b32.xlu0 %v3407_v18, %s2274_s18  ;;  %1458 = vmatpush2.msra.mxu0 %v1384_v60  ;;  %v1565_v0 = vpop.permute.xlu1 %1564  ;;  %v3454_v13 = vpop.f32.mrf.mxu1 }
 0x25a   : > { %1459 = vmatprep.subr.mxu0 %v2277_v9  ;;  %v3452_v30 = vpop.f32.mrf.mxu0 }
 0x25b   : > { %v912_v5 = vpop.f32.mrf.mxu1 }
 0x25c   : > { %v1571_v26 = vpop.permute.xlu0 %1570  ;;  %v725_v36 = vpop.f32.mrf.mxu0 }
 0x25d   : > { %1751 = vrot.lane.b32.xlu0 %v3424_v21, %s2274_s18  ;;  %1645 = vmatpush2.msra.mxu1 %v1571_v26  ;;  %v1916_v50 = vpop.permute.xlu1 %1915 }
 0x25e   : > { %1646 = vmatprep.subr.mxu1 %v2277_v9 }
 0x260   : > { %v1382_v37 = vpop.permute.xlu0 %1381 }
 0x261   : > { %276 = vperm.xlu0 %2248, %v175_v55   ;;  %1460 = vmatpush2.msra.mxu0 %v1382_v37  ;;  %v1913_v63 = vpop.permute.xlu1 %1912 }
 0x262   : > { %1461 = vmatprep.subr.mxu0 %v2277_v9 }
 0x264   : > { %v1569_v59 = vpop.permute.xlu0 %1568 }
 0x265   : > { %1647 = vmatpush2.msra.mxu1 %v1569_v59  ;;  %v1910_v31 = vpop.permute.xlu1 %1909 }
 0x266   : > { %1648 = vmatprep.subr.mxu1 %v2277_v9 }
 0x268   : > { %v1380_v61 = vpop.permute.xlu0 %1379 }
 0x269   : > { %1462 = vmatpush2.msra.mxu0 %v1380_v61  ;;  %v1907_v34 = vpop.permute.xlu1 %1906 }
 0x26a   : > { %1463 = vmatprep.subr.mxu0 %v2277_v9 }
 0x26c   : > { %v1567_v57 = vpop.permute.xlu0 %1566 }
 0x26d   : > { %1649 = vmatpush2.msra.mxu1 %v1567_v57  ;;  %v1903_v19 = vpop.permute.xlu1 %1902 }
 0x26e   : > { %1650 = vmatprep.subr.mxu1 %v2277_v9 }
 0x26f   : > { %1651 = vmatpush2.msra.mxu1 %v1565_v0 }
 0x270   : > { %1652 = vmatprep.subr.mxu1 %v2277_v9  ;;  %v1378_v51 = vpop.permute.xlu0 %1377 }
 0x271   : > { %1464 = vmatpush2.msra.mxu0 %v1378_v51  ;;  %1653 = vmatpush2.msra.mxu1 %v3233_v29 }
 0x272   : > { %1465 = vmatprep.subr.mxu0 %v2277_v9  ;;  %1654 = vmatprep.subr.mxu1 %v2277_v9 }
 0x273   : > { %1466 = vmatpush2.msra.mxu0 %v3223_v15  ;;  %1655 = vmatpush2.msra.mxu1 %v3245_v32 }
 0x274   : > { %1467 = vmatprep.subr.mxu0 %v2277_v9  ;;  %1966 = vmatprep.subr.mxu1 %v2277_v9 }
 0x275   : > { %1468 = vmatpush2.msra.mxu0 %v3241_v2  ;;  %1657 = vmatmul.mubr.f32.vlgmr.msra.gmra.mxu1 %v3470_v53  ;;  %v1729_v29 = vpop.permute.xlu0 %1728 }
 0x276   : > { %1967 = vmatpush1.msra.mxu1 %v3215_v27  ;;  %1779 = vmatprep.subr.mxu0 %v2277_v9  ;;  %v1899_v27 = vpop.permute.xlu1 %1898 }
 0x277   : > { %1968 = vmatprep.subr.mxu1 %v2277_v9  ;;  %1470 = vmatmul.mubr.f32.vlgmr.msra.gmra.mxu0 %v3470_v53 }
 0x278   : > { %1969 = vmatpush1.msra.mxu1 %v3199_v35  ;;  %1780 = vmatpush1.msra.mxu0 %v3207_v11 }
 0x279   : > { %1970 = vmatprep.subr.mxu1 %v2277_v9  ;;  %v1726_v15 = vpop.permute.xlu0 %1725  ;;  %1781 = vmatprep.subr.mxu0 %v2277_v9 }
 0x27a   : > { %1971 = vmatpush1.msra.mxu1 %v1916_v50  ;;  %1782 = vmatpush1.msra.mxu0 %v3191_v33 }
 0x27b   : > { %1972 = vmatprep.subr.mxu1 %v2277_v9  ;;  %1783 = vmatprep.subr.mxu0 %v2277_v9 }
 0x27c   : > { %1973 = vmatpush1.msra.mxu1 %v1913_v63  ;;  %1784 = vmatpush1.msra.mxu0 %v1729_v29 }
 0x27d   : > { %1974 = vmatprep.subr.mxu1 %v2277_v9  ;;  %1785 = vmatprep.subr.mxu0 %v2277_v9 }
 0x27e   : > { %1975 = vmatpush1.msra.mxu1 %v1910_v31  ;;  %1786 = vmatpush1.msra.mxu0 %v1726_v15 }
 0x27f   : > { %1976 = vmatprep.subr.mxu1 %v2277_v9  ;;  %v1723_v35 = vpop.permute.xlu0 %1722  ;;  %1787 = vmatprep.subr.mxu0 %v2277_v9 }
 0x280   : > { %1977 = vmatpush1.msra.mxu1 %v1907_v34  ;;  %1788 = vmatpush1.msra.mxu0 %v1723_v35  ;;  %v3488_v2 = vpop.f32.mrf.mxu1 }
 0x281   : > { %v1896_v32 = vpop.permute.xlu1 %1895  ;;  %1978 = vmatprep.subr.mxu1 %v2277_v9  ;;  %1789 = vmatprep.subr.mxu0 %v2277_v9 }
 0x282   : > { %1979 = vmatpush1.msra.mxu1 %v1903_v19  ;;  %2190 = vmatprep.mubr.msk.f32.mxu0 %vm284_vm0, %v3495_v25  ;;  %v917_v8 = vpop.f32.mrf.mxu1 }
 0x283   : > { %1980 = vmatprep.subr.mxu1 %v2277_v9  ;;  %1475 = vmatmul.mubr.f32.gmra.mxu0 %v3503_v24 }
 0x284   : > { %v1720_v17 = vpop.permute.xlu0 %1719  ;;  %1981 = vmatpush1.msra.mxu1 %v3098_v23  ;;  %2200 = vmatprep.mubr.msk.f32.mxu1 %vm284_vm0, %v3495_v25  ;;  %v3509_v39 = vpop.f32.mrf.mxu0 }
 0x285   : > { %1982 = vmatprep.subr.mxu1 %v2277_v9  ;;  %1790 = vmatpush1.msra.mxu0 %v1720_v17 }
 0x286   : > { %v1893_v41 = vpop.permute.xlu1 %1892  ;;  %1983 = vmatpush1.msra.mxu1 %v3128_v47  ;;  %1791 = vmatprep.subr.mxu0 %v2277_v9  ;;  %v730_v3 = vpop.f32.mrf.mxu0 }
 0x287   : > { %1984 = vmatprep.subr.mxu1 %v2277_v9  ;;  %1662 = vmatmul.mubr.f32.gmra.mxu1 %v3503_v24 }
 0x288   : > { %1985 = vmatpush1.msra.mxu1 %v1899_v27  ;;  %2219 = vmatprep.mubr.msk.f32.mxu1 %vm284_vm0, %v3173_v22 }
 0x289   : > { %v1716_v23 = vpop.permute.xlu0 %1715  ;;  %1986 = vmatprep.subr.mxu1 %v2277_v9  ;;  %2209 = vmatprep.mubr.msk.f32.mxu0 %vm284_vm0, %v3173_v22 }
 0x28a   : > { %1987 = vmatpush1.msra.mxu1 %v1896_v32  ;;  %1792 = vmatpush1.msra.mxu0 %v1716_v23 }
 0x28b   : > { %v1890_v47 = vpop.permute.xlu1 %1889  ;;  %1988 = vmatprep.subr.mxu1 %v2277_v9  ;;  %1793 = vmatprep.subr.mxu0 %v2277_v9 }
 0x28c   : > { %1989 = vmatpush1.msra.mxu1 %v1893_v41  ;;  %1794 = vmatpush1.msra.mxu0 %v2262_v40 }
 0x28d   : > { %v1712_v38 = vpop.permute.xlu0 %1711  ;;  %1990 = vmatprep.subr.mxu1 %v2277_v9  ;;  %1795 = vmatprep.subr.mxu0 %v2277_v9 }
 0x28e   : > { %1991 = vmatpush1.msra.mxu1 %v1890_v47  ;;  %1796 = vmatpush1.msra.mxu0 %v2263_v14 }
 0x28f   : > { %1992 = vmatprep.subr.mxu1 %v2277_v9  ;;  %1797 = vmatprep.subr.mxu0 %v2277_v9 }
 0x290   : > { %v1886_v22 = vpop.permute.xlu1 %1885  ;;  %1798 = vmatpush1.msra.mxu0 %v1712_v38 }
 0x291   : > { %1993 = vmatpush1.msra.mxu1 %v1886_v22  ;;  %1799 = vmatprep.subr.mxu0 %v2277_v9 }
 0x292   : > { %1994 = vmatprep.subr.mxu1 %v2277_v9 }
 0x293   : > { %v1709_v42 = vpop.permute.xlu0 %1708  ;;  %1995 = vmatpush1.msra.mxu1 %v3207_v11 }
 0x294   : > { %1996 = vmatprep.subr.mxu1 %v2277_v9  ;;  %1800 = vmatpush1.msra.mxu0 %v1709_v42 }
 0x295   : > { %v1953_v45 = vpop.permute.xlu1 %1952  ;;  %1997 = vmatpush1.msra.mxu1 %v3191_v33  ;;  %1801 = vmatprep.subr.mxu0 %v2277_v9 }
 0x296   : > { %2006 = vmatprep.subr.mxu1 %v2277_v9 }
 0x297   : > { %v1706_v20 = vpop.permute.xlu0 %1705  ;;  %2007 = vmatpush2.msra.mxu1 %v1953_v45 }
 0x298   : > { %2008 = vmatprep.subr.mxu1 %v2277_v9  ;;  %1802 = vmatpush1.msra.mxu0 %v1706_v20 }
 0x299   : > { %v1951_v44 = vpop.permute.xlu1 %1950  ;;  %1803 = vmatprep.subr.mxu0 %v2277_v9 }
 0x29a   : > { %2009 = vmatpush2.msra.mxu1 %v1951_v44 }
 0x29b   : > { %v1703_v11 = vpop.permute.xlu0 %1702  ;;  %2010 = vmatprep.subr.mxu1 %v2277_v9 }
 0x29c   : > { %1804 = vmatpush1.msra.mxu0 %v1703_v11 }
 0x29d   : > { %1805 = vmatprep.subr.mxu0 %v2277_v9 }
 0x29e   : > { %v1949_v33 = vpop.permute.xlu1 %1948 }
 0x29f   : > { %2011 = vmatpush2.msra.mxu1 %v1949_v33  ;;  %v1699_v62 = vpop.permute.xlu0 %1698 }
 0x2a0   : > { %2012 = vmatprep.subr.mxu1 %v2277_v9  ;;  %1806 = vmatpush1.msra.mxu0 %v1699_v62 }
 0x2a1   : > { %2013 = vmatpush2.msra.mxu1 %v3351_v56  ;;  %1807 = vmatprep.subr.mxu0 %v2277_v9 }
 0x2a2   : > { %2014 = vmatprep.subr.mxu1 %v2277_v9  ;;  %1808 = vmatpush1.msra.mxu0 %v2264_v6 }
 0x2a3   : > { %2015 = vmatpush2.msra.mxu1 %v3372_v16  ;;  %1809 = vmatprep.subr.mxu0 %v2277_v9 }
 0x2a4   : > { %1810 = vmatpush1.msra.mxu0 %v2265_v58  ;;  %2016 = vmatprep.subr.mxu1 %v2277_v9 }
 0x2a5   : > { %1819 = vmatprep.subr.mxu0 %v2277_v9 }
 0x2a6   : > { %v1947_v49 = vpop.permute.xlu1 %1946 }
 0x2a7   : > { %v1766_v4 = vpop.permute.xlu0 %1765  ;;  %2017 = vmatpush2.msra.mxu1 %v1947_v49 }
 0x2a8   : > { %1820 = vmatpush2.msra.mxu0 %v1766_v4  ;;  %2018 = vmatprep.subr.mxu1 %v2277_v9 }
 0x2a9   : > { %1821 = vmatprep.subr.mxu0 %v2277_v9 }
 0x2ab   : > { %v1764_v56 = vpop.permute.xlu0 %1763 }
 0x2ac   : > { %1822 = vmatpush2.msra.mxu0 %v1764_v56 }
 0x2ad   : > { %1823 = vmatprep.subr.mxu0 %v2277_v9 }
 0x2ae   : > { %v1945_v16 = vpop.permute.xlu1 %1944 }
 0x2af   : > { %v1762_v60 = vpop.permute.xlu0 %1761  ;;  %2019 = vmatpush2.msra.mxu1 %v1945_v16 }
 0x2b0   : > { %1824 = vmatpush2.msra.mxu0 %v1762_v60  ;;  %2020 = vmatprep.subr.mxu1 %v2277_v9 }
 0x2b1   : > { %1825 = vmatprep.subr.mxu0 %v2277_v9 }
 0x2b2   : > { %1826 = vmatpush2.msra.mxu0 %v3339_v10 }
 0x2b3   : > { %1827 = vmatprep.subr.mxu0 %v2277_v9 }
 0x2b4   : > { %1828 = vmatpush2.msra.mxu0 %v3360_v7 }
 0x2b5   : > { %1829 = vmatprep.subr.mxu0 %v2277_v9 }
 0x2b6   : > { %v1943_v0 = vpop.permute.xlu1 %1942 }
 0x2b7   : > { %2021 = vmatpush2.msra.mxu1 %v1943_v0 }
 0x2b8   : > { %2022 = vmatprep.subr.mxu1 %v2277_v9 }
 0x2be   : > { %v1941_v26 = vpop.permute.xlu1 %1940 }
 0x2bf   : > { %v1760_v50 = vpop.permute.xlu0 %1759  ;;  %2023 = vmatpush2.msra.mxu1 %v1941_v26 }
 0x2c0   : > { %1830 = vmatpush2.msra.mxu0 %v1760_v50  ;;  %2024 = vmatprep.subr.mxu1 %v2277_v9 }
 0x2c1   : > { %1831 = vmatprep.subr.mxu0 %v2277_v9 }
 0x2c3   : > { %v1758_v55 = vpop.permute.xlu0 %1757 }
 0x2c4   : > { %1832 = vmatpush2.msra.mxu0 %v1758_v55 }
 0x2c5   : > { %1833 = vmatprep.subr.mxu0 %v2277_v9 }
 0x2c6   : > { %v1939_v10 = vpop.permute.xlu1 %1938  ;;  %v3563_v7 = vpop.f32.mrf.mxu1 }
 0x2c7   : > { %v1756_v37 = vpop.permute.xlu0 %1755  ;;  %2025 = vmatpush2.msra.mxu1 %v1939_v10 }
 0x2c8   : > { %1834 = vmatpush2.msra.mxu0 %v1756_v37  ;;  %2026 = vmatprep.subr.mxu1 %v2277_v9  ;;  %v3566_v63 = vpop.f32.mrf.mxu0  ;;  %v1286_v59 = vpop.f32.mrf.mxu1 }
 0x2c9   : > { %2027 = vmatpush2.msra.mxu1 %v3415_v46  ;;  %1835 = vmatprep.subr.mxu0 %v2277_v9 }
 0x2ca   : > { %2028 = vmatprep.subr.mxu1 %v2277_v9  ;;  %v1099_v1 = vpop.f32.mrf.mxu0 }
 0x2cb   : > { %v1754_v28 = vpop.permute.xlu0 %1753  ;;  %2029 = vmatpush2.msra.mxu1 %v3428_v52 }
 0x2cc   : > { %1836 = vmatpush2.msra.mxu0 %v1754_v28  ;;  %2031 = vmatmul.mubr.f32.vlgmr.msra.gmra.mxu1 %v3470_v53 }
 0x2cd   : > { %1837 = vmatprep.subr.mxu0 %v2277_v9  ;;  %2220 = vmatprep.mubr.msk.f32.mxu1 %vm284_vm0, %v3495_v25 }
 0x2cf   : > { %v1752_v61 = vpop.permute.xlu0 %1751 }
 0x2d0   : > { %1838 = vmatpush2.msra.mxu0 %v1752_v61  ;;  %2036 = vmatmul.mubr.f32.gmra.mxu1 %v3503_v24 }
 0x2d1   : > { %1839 = vmatprep.subr.mxu0 %v2277_v9 }
 0x2d2   : > { %1840 = vmatpush2.msra.mxu0 %v3407_v18 }
 0x2d3   : > { %1841 = vmatprep.subr.mxu0 %v2277_v9  ;;  %v3580_v46 = vpop.permute.xlu1 %281 }
 0x2d4   : > { %1842 = vmatpush2.msra.mxu0 %v3424_v21  ;;  %v363_v52 = vadd.f32 %v3447_v54, %v3580_v46  ;;  %v542_v36 = vadd.f32 %v3449_v43, %v3580_v46  ;;  %v729_v31 = vadd.f32 %v3509_v39, %v3580_v46  ;;  %v916_v9 = vadd.f32 %v3488_v2, %v3580_v46 }
 0x2d5   : > { %1844 = vmatmul.mubr.f32.vlgmr.msra.gmra.mxu0 %v3470_v53 }
 0x2d6   : > { %2210 = vmatprep.mubr.msk.f32.mxu0 %vm284_vm0, %v3495_v25  ;;  %vm367_vm2 = vcmp.gt.f32.partialorder %v363_v52, 0.0  ;;  %v369_v18 = vmul.f32 -2.579492, %v363_v52  ;;  %vm546_vm3 = vcmp.gt.f32.partialorder %v542_v36, 0.0  ;;  %v548_v21 = vmul.f32 -2.579492, %v542_v36 }
 0x2d7   : > { %vm733_vm4 = vcmp.gt.f32.partialorder %v729_v31, 0.0  ;;  %v735_v54 = vmul.f32 -2.579492, %v729_v31  ;;  %v922_v57 = vmul.f32 -2.579492, %v916_v9  ;;  %vm920_vm5 = vcmp.gt.f32.partialorder %v916_v9, 0.0 }
 0x2d8   : > { %v371_v43 = vsel %vm367_vm2, %v363_v52, %v369_v18  ;;  %v550_v5 = vsel %vm546_vm3, %v542_v36, %v548_v21  ;;  %vm561_vm2 = vcmask 74792  }
 0x2d9   : > { %1849 = vmatmul.mubr.f32.gmra.mxu0 %v3503_v24  ;;  %375 = vst.msk [vmem:[%s3598_s20 + $0x8] sm:$0x3] %vm374_vm1, %v371_v43  ;;  %555 = vrot.lane.b32.xlu0 %v550_v5, %s2280_s13  ;;  %v737_v34 = vsel %vm733_vm4, %v729_v31, %v735_v54  ;;  %v924_v27 = vsel %vm920_vm5, %v916_v9, %v922_v57  ;;  %vm748_vm4 = vcmask 115792   ;;  %vm935_vm5 = vcmask 156792  }
 0x2da   : > { %v1289_v51 = vpop.f32.mrf.mxu1 }
 0x2db   : > { %v1290_v47 = vadd.f32 %v1289_v51, %v3580_v46 }
 0x2dc   : > { %v3602_v53 = vpop.permute.xlu0 %276  ;;  %v1291_v29 = vpop.f32.mrf.mxu1 }
 0x2dd   : > { %v537_v19 = vadd.f32 %v3392_v48, %v3602_v53  ;;  %v724_v15 = vadd.f32 %v3452_v30, %v3602_v53  ;;  %742 = vrot.lane.b32.xlu0 %v737_v34, %s2281_s21  ;;  %v358_v35 = vadd.f32 %v3388_v12, %v3602_v53  ;;  %v911_v25 = vadd.f32 %v3454_v13, %v3602_v53 }
 0x2de   : > { %v1098_v12 = vadd.f32 %v3566_v63, %v3602_v53  ;;  %v1285_v13 = vadd.f32 %v3563_v7, %v3602_v53  ;;  %v1296_v45 = vmul.f32 -2.579492, %v1290_v47  ;;  %vm1294_vm14 = vcmp.gt.f32.partialorder %v1290_v47, 0.0 }
 0x2df   : > { %vm545_vm6 = vcmp.gt.f32.partialorder %v537_v19, 0.0  ;;  %v547_v2 = vmul.f32 -2.579492, %v537_v19  ;;  %v734_v32 = vmul.f32 -2.579492, %v724_v15  ;;  %vm732_vm7 = vcmp.gt.f32.partialorder %v724_v15, 0.0 }
 0x2e0   : > { %vm366_vm9 = vcmp.gt.f32.partialorder %v358_v35, 0.0  ;;  %v368_v48 = vmul.f32 -2.579492, %v358_v35  ;;  %v921_v30 = vmul.f32 -2.579492, %v911_v25  ;;  %vm919_vm10 = vcmp.gt.f32.partialorder %v911_v25, 0.0 }
 0x2e1   : > { %v549_v8 = vsel %vm545_vm6, %v537_v19, %v547_v2  ;;  %929 = vrot.lane.b32.xlu0 %v924_v27, %s2282_s22  ;;  %v736_v24 = vsel %vm732_vm7, %v724_v15, %v734_v32  ;;  %v1108_v41 = vmul.f32 -2.579492, %v1098_v12  ;;  %vm1106_vm11 = vcmp.gt.f32.partialorder %v1098_v12, 0.0 }
 0x2e2   : > { %553 = vrot.lane.b32.xlu1 %v549_v8, %s2280_s13  ;;  %v370_v17 = vsel %vm366_vm9, %v358_v35, %v368_v48  ;;  %v923_v39 = vsel %vm919_vm10, %v911_v25, %v921_v30  ;;  %v1295_v3 = vmul.f32 -2.579492, %v1285_v13  ;;  %vm1293_vm12 = vcmp.gt.f32.partialorder %v1285_v13, 0.0 }
 0x2e3   : > { %373 = vst.msk [vmem:[%s3598_s20] sm:$0xff] %vm372_vm8, %v370_v17  ;;  %v1110_v23 = vsel %vm1106_vm11, %v1098_v12, %v1108_v41  ;;  %v1298_v44 = vsel %vm1294_vm14, %v1290_v47, %v1296_v45  ;;  %vm559_vm6 = vcmask 80936   ;;  %vm746_vm7 = vcmask 121936  }
 0x2e4   : > { %v1297_v38 = vsel %vm1293_vm12, %v1285_v13, %v1295_v3  ;;  %vm933_vm8 = vcmask 162936   ;;  %vm1120_vm9 = vcmask 203936   ;;  %vm1307_vm10 = vcmask 244936  }
 0x2e5   : > { %vm1122_vm11 = vcmask 197792   ;;  %vm1309_vm12 = vcmask 238792  }
 0x2e6   : > { %740 = vrot.lane.b32.xlu1 %v736_v24, %s2281_s21 }
 0x2ea   : > { %927 = vrot.lane.b32.xlu1 %v923_v39, %s2282_s22 }
 0x2ee   : > { %1114 = vrot.lane.b32.xlu1 %v1110_v23, %s2283_s23  ;;  %v1102_v40 = vpop.f32.mrf.mxu0 }
 0x2ef   : > { %v1103_v14 = vadd.f32 %v1102_v40, %v3580_v46 }
 0x2f0   : > { %v1104_v22 = vpop.f32.mrf.mxu0 }
 0x2f1   : > { %vm1107_vm13 = vcmp.gt.f32.partialorder %v1103_v14, 0.0  ;;  %v1109_v42 = vmul.f32 -2.579492, %v1103_v14 }
 0x2f2   : > { %1301 = vrot.lane.b32.xlu1 %v1297_v38, %s2284_s24 }
 0x2f3   : > { %v1111_v20 = vsel %vm1107_vm13, %v1103_v14, %v1109_v42 }
 0x2f4   : > { %1116 = vrot.lane.b32.xlu0 %v1111_v20, %s2283_s23 }
 0x2f8   : > { %1303 = vrot.lane.b32.xlu0 %v1298_v44, %s2284_s24 }
 0x335   : > { %v1658_v11 = vpop.f32.mrf.mxu1 }
 0x336   : > { %v1659_v33 = vadd.f32 %v1658_v11, %v3602_v53 }
 0x337   : > { %v1471_v62 = vpop.f32.mrf.mxu0  ;;  %v1660_v6 = vpop.f32.mrf.mxu1 }
 0x338   : > { %v1472_v58 = vadd.f32 %v1471_v62, %v3602_v53  ;;  %v1669_v56 = vmul.f32 -2.579492, %v1659_v33  ;;  %vm1667_vm0 = vcmp.gt.f32.partialorder %v1659_v33, 0.0 }
 0x339   : > { %v1473_v49 = vpop.f32.mrf.mxu0 }
 0x33a   : > { %vm1480_vm15 = vcmp.gt.f32.partialorder %v1472_v58, 0.0  ;;  %v1482_v4 = vmul.f32 -2.579492, %v1472_v58  ;;  %v1671_v60 = vsel %vm1667_vm0, %v1659_v33, %v1669_v56 }
 0x33c   : > { %v1484_v16 = vsel %vm1480_vm15, %v1472_v58, %v1482_v4 }
 0x33d   : > { %1488 = vrot.lane.b32.xlu1 %v1484_v16, %s2285_s25 }
 0x341   : > { %1675 = vrot.lane.b32.xlu1 %v1671_v60, %s2286_s26 }
 0x343   : > { %v1476_v0 = vpop.f32.mrf.mxu0 }
 0x344   : > { %v1477_v26 = vadd.f32 %v1476_v0, %v3580_v46 }
 0x345   : > { %v1478_v50 = vpop.f32.mrf.mxu0 }
 0x346   : > { %vm1481_vm1 = vcmp.gt.f32.partialorder %v1477_v26, 0.0  ;;  %v1483_v55 = vmul.f32 -2.579492, %v1477_v26 }
 0x347   : > { %v1663_v10 = vpop.f32.mrf.mxu1 }
 0x348   : > { %v1664_v7 = vadd.f32 %v1663_v10, %v3580_v46  ;;  %v1485_v37 = vsel %vm1481_vm1, %v1477_v26, %v1483_v55  ;;  %vm1494_vm1 = vcmask 285936  }
 0x349   : > { %1490 = vrot.lane.b32.xlu0 %v1485_v37, %s2285_s25  ;;  %v1665_v63 = vpop.f32.mrf.mxu1 }
 0x34a   : > { %vm1668_vm3 = vcmp.gt.f32.partialorder %v1664_v7, 0.0  ;;  %v1670_v59 = vmul.f32 -2.579492, %v1664_v7 }
 0x34b   : > { %v556_v1 = vpop.permute.xlu0 %555 }
 0x34c   : > { %562 = vst.msk [vmem:[%s3598_s20 + $0x8] sm:$0x3] %vm561_vm2, %v556_v1  ;;  %v1672_v28 = vsel %vm1668_vm3, %v1664_v7, %v1670_v59  ;;  %vm1681_vm2 = vcmask 326936   ;;  %vm1496_vm3 = vcmask 279792  }
 0x34d   : > { %1677 = vrot.lane.b32.xlu0 %v1672_v28, %s2286_s26 }
 0x34f   : > { %v743_v61 = vpop.permute.xlu0 %742 }
 0x350   : > { %749 = vst.msk [vmem:[%s3598_s20 + $0x8] sm:$0x3] %vm748_vm4, %v743_v61  ;;  %vm1683_vm4 = vcmask 320792  }
 0x353   : > { %v930_v52 = vpop.permute.xlu0 %929 }
 0x354   : > { %v554_v36 = vpop.permute.xlu1 %553  ;;  %936 = vst.msk [vmem:[%s3598_s20 + $0x8] sm:$0x3] %vm935_vm5, %v930_v52  ;;  %vm1868_vm5 = vcmask 367936  }
 0x355   : > { %560 = vst.msk [vmem:[%s3598_s20] sm:$0xff] %vm559_vm6, %v554_v36  ;;  %vm2055_vm6 = vcmask 408936  }
 0x358   : > { %v741_v31 = vpop.permute.xlu1 %740 }
 0x359   : > { %747 = vst.msk [vmem:[%s3598_s20] sm:$0xff] %vm746_vm7, %v741_v31  ;;  %vm1870_vm7 = vcmask 361792  }
 0x35c   : > { %v928_v9 = vpop.permute.xlu1 %927 }
 0x35d   : > { %934 = vst.msk [vmem:[%s3598_s20] sm:$0xff] %vm933_vm8, %v928_v9  ;;  %vm2057_vm8 = vcmask 402792  }
 0x360   : > { %v1115_v18 = vpop.permute.xlu1 %1114 }
 0x361   : > { %1121 = vst.msk [vmem:[%s3598_s20] sm:$0xff] %vm1120_vm9, %v1115_v18 }
 0x364   : > { %v1302_v21 = vpop.permute.xlu1 %1301 }
 0x365   : > { %1308 = vst.msk [vmem:[%s3598_s20] sm:$0xff] %vm1307_vm10, %v1302_v21 }
 0x366   : > { %v1117_v54 = vpop.permute.xlu0 %1116 }
 0x367   : > { %1123 = vst.msk [vmem:[%s3598_s20 + $0x8] sm:$0x3] %vm1122_vm11, %v1117_v54 }
 0x36a   : > { %v1304_v43 = vpop.permute.xlu0 %1303 }
 0x36b   : > { %1310 = vst.msk [vmem:[%s3598_s20 + $0x8] sm:$0x3] %vm1309_vm12, %v1304_v43 }
 0x38c   : > { %v2032_v5 = vpop.f32.mrf.mxu1 }
 0x38d   : > { %v2033_v19 = vadd.f32 %v2032_v5, %v3602_v53 }
 0x38e   : > { %v2034_v57 = vpop.f32.mrf.mxu1 }
 0x38f   : > { %v2043_v32 = vmul.f32 -2.579492, %v2033_v19  ;;  %vm2041_vm14 = vcmp.gt.f32.partialorder %v2033_v19, 0.0 }
 0x390   : > { %v2037_v34 = vpop.f32.mrf.mxu1 }
 0x391   : > { %v2038_v25 = vadd.f32 %v2037_v34, %v3580_v46  ;;  %v2045_v17 = vsel %vm2041_vm14, %v2033_v19, %v2043_v32 }
 0x392   : > { %v2039_v51 = vpop.f32.mrf.mxu1 }
 0x393   : > { %v2044_v12 = vmul.f32 -2.579492, %v2038_v25  ;;  %vm2042_vm0 = vcmp.gt.f32.partialorder %v2038_v25, 0.0 }
 0x395   : > { %v1845_v29 = vpop.f32.mrf.mxu0  ;;  %v2046_v39 = vsel %vm2042_vm0, %v2038_v25, %v2044_v12 }
 0x396   : > { %v1846_v15 = vadd.f32 %v1845_v29, %v3602_v53 }
 0x397   : > { %v1847_v27 = vpop.f32.mrf.mxu0 }
 0x398   : > { %vm1854_vm13 = vcmp.gt.f32.partialorder %v1846_v15, 0.0  ;;  %v1856_v35 = vmul.f32 -2.579492, %v1846_v15 }
 0x399   : > { %v1850_v2 = vpop.f32.mrf.mxu0 }
 0x39a   : > { %v1851_v8 = vadd.f32 %v1850_v2, %v3580_v46  ;;  %v1858_v48 = vsel %vm1854_vm13, %v1846_v15, %v1856_v35 }
 0x39b   : > { %v1852_v30 = vpop.f32.mrf.mxu0  ;;  %1862 = vrot.lane.b32.xlu1 %v1858_v48, %s2287_s27 }
 0x39c   : > { %vm1855_vm15 = vcmp.gt.f32.partialorder %v1851_v8, 0.0  ;;  %v1857_v24 = vmul.f32 -2.579492, %v1851_v8 }
 0x39e   : > { %v1859_v53 = vsel %vm1855_vm15, %v1851_v8, %v1857_v24 }
 0x39f   : > { %1864 = vrot.lane.b32.xlu0 %v1859_v53, %s2287_s27  ;;  %2049 = vrot.lane.b32.xlu1 %v2045_v17, %s2288_s28 }
 0x3a3   : > { %2051 = vrot.lane.b32.xlu0 %v2046_v39, %s2288_s28 }
 0x3af   : > { %v1489_v46 = vpop.permute.xlu1 %1488 }
 0x3b0   : > { %1495 = vst.msk [vmem:[%s3598_s20] sm:$0xff] %vm1494_vm1, %v1489_v46 }
 0x3b3   : > { %v1676_v41 = vpop.permute.xlu1 %1675 }
 0x3b4   : > { %1682 = vst.msk [vmem:[%s3598_s20] sm:$0xff] %vm1681_vm2, %v1676_v41 }
 0x3bb   : > { %v1491_v13 = vpop.permute.xlu0 %1490 }
 0x3bc   : > { %1497 = vst.msk [vmem:[%s3598_s20 + $0x8] sm:$0x3] %vm1496_vm3, %v1491_v13 }
 0x3bf   : > { %v1678_v3 = vpop.permute.xlu0 %1677 }
 0x3c0   : > { %1684 = vst.msk [vmem:[%s3598_s20 + $0x8] sm:$0x3] %vm1683_vm4, %v1678_v3 }
 0x40d   : > { %v1863_v23 = vpop.permute.xlu1 %1862 }
 0x40e   : > { %1869 = vst.msk [vmem:[%s3598_s20] sm:$0xff] %vm1868_vm5, %v1863_v23 }
 0x411   : > { %v2050_v47 = vpop.permute.xlu1 %2049  ;;  %v1865_v40 = vpop.permute.xlu0 %1864 }
 0x412   : > { %2056 = vst.msk [vmem:[%s3598_s20] sm:$0xff] %vm2055_vm6, %v2050_v47 }
 0x413   : > { %1871 = vst.msk [vmem:[%s3598_s20 + $0x8] sm:$0x3] %vm1870_vm7, %v1865_v40 }
 0x415   : > { %v2052_v38 = vpop.permute.xlu0 %2051 }
 0x416   : > { %2058 = vst.msk [vmem:[%s3598_s20 + $0x8] sm:$0x3] %vm2057_vm8, %v2052_v38 }
 0x417 PF: > { %s13_s12 = sadd.s32 1, %s2272_s12  }
 0x418   : > { %p10_p4 = scmp.ge.s32.totalorder %s13_s12, 4  }
 0x41a   :  { %12 = sbr.rel (!%p10_p4) target bundleno = 1 (0x1), region = 105 }

</bundles_post_ra>
